<compile_context>
chip_gen: v7x
topology: tpu7x:2x2x1
jax: 0.10.0
libtpu: 0.0.40
codegen_flags: <defaults>
</compile_context>

<pallas_src>
import jax
import jax.numpy as jnp
import numpy as np
from jax import lax
from jax.experimental import pallas as pl
from jax.experimental.pallas import tpu as pltpu

BN_EPS = 1e-5
LEAKY_SLOPE = 0.2
KW = 4          # every conv is 4x4, padding=1
LANE = 128
SUBLANE = 8


def _round_up(a, b):
    return ((a + b - 1) // b) * b


# -----------------------------------------------------------------------------
# Static layer configuration (mirrors NLayerDiscriminator.__init__)
# -----------------------------------------------------------------------------
def _layer_specs(input_nc, ndf, n_layers):
    """(cin, cout, stride, use_bn) per conv layer."""
    specs = [(input_nc, ndf, 2, False)]                          # conv+bias, LReLU
    nf_mult = 1
    for n in range(1, n_layers):
        nf_mult_prev, nf_mult = nf_mult, min(2 ** n, 8)
        specs.append((ndf * nf_mult_prev, ndf * nf_mult, 2, True))   # conv+BN, LReLU
    nf_mult_prev, nf_mult = nf_mult, min(2 ** n_layers, 8)
    specs.append((ndf * nf_mult_prev, ndf * nf_mult, 1, True))       # conv+BN, LReLU
    specs.append((ndf * nf_mult, 1, 1, False))                       # conv+bias
    return specs


def _geometry(H, W, specs):
    geo, h, w = [], H, W
    for cin, cout, stride, use_bn in specs:
        ho = (h + 2 - KW) // stride + 1
        wo = (w + 2 - KW) // stride + 1
        assert ho > 0 and wo > 0, "input spatial size too small for this depth"
        geo.append(dict(cin=cin, cout=cout, stride=stride, use_bn=use_bn,
                        hin=h, win=w, hout=ho, wout=wo))
        h, w = ho, wo
    return geo


def _zero_map(ndim):
    return lambda i: (0,) * ndim


# -----------------------------------------------------------------------------
# Host-side precomputed static matrices (pure numpy -> constants under jit)
# -----------------------------------------------------------------------------
def _sel_matrices(B, H, Ho, stride):
    """(4, B*Ho, B*H) bf16: Sel[dy][b*Ho+ho, b*H+h] = 1 iff h == ho*stride+dy-1,
    0 <= h < H (block-diagonal over batch; zero rows implement vertical padding)."""
    bo = np.arange(B * Ho) // Ho
    ho = np.arange(B * Ho) % Ho
    bi = np.arange(B * H) // H
    hi = np.arange(B * H) % H
    sels = []
    for dy in range(KW):
        t = ho * stride + dy - 1
        sel = ((bo[:, None] == bi[None, :]) & (t[:, None] == hi[None, :])
               & (t[:, None] >= 0) & (t[:, None] < H))
        sels.append(sel.astype(np.float32))
    return jnp.asarray(np.stack(sels, 0), jnp.bfloat16)


def _chan_maps(Wo, cout):
    """reduce: (Wo*cout, cout) sums lanes per channel; expand = reduce.T."""
    nwc = Wo * cout
    lane_chan = np.arange(nwc) % cout
    expand = (lane_chan[None, :] == np.arange(cout)[:, None]).astype(np.float32)
    return jnp.asarray(expand.T), jnp.asarray(expand)   # (nwc,cout), (cout,nwc)


def _banded_weights_fat(w_hwio, stride, W, Wo, n_out, dtype=jnp.bfloat16):
    """Fold horizontal taps (kw, stride, padding) + channel contraction of a 4x4
    conv into ONE (4*W*Cin, n_out) matrix; K blocks ordered dy=0..3 to match the
    in-kernel lane concatenation of the four vertical-tap slabs."""
    kh, kw, cin, cout = w_hwio.shape
    w32 = w_hwio.astype(jnp.float32)
    w_pos = np.arange(W)[:, None]
    wo_pos = np.arange(Wo)[None, :]
    bands = []
    for dy in range(kh):
        band = jnp.zeros((W, cin, Wo, cout), jnp.float32)
        for dx in range(kw):
            pick = jnp.asarray((w_pos == wo_pos * stride + dx - 1).astype(np.float32))
            band = band + jnp.einsum("pw,cd->pcwd", pick, w32[dy, dx])
        bands.append(band.reshape(W * cin, Wo * cout))
    fat = jnp.concatenate(bands, axis=0)                    # (4*W*Cin, Wo*Cout)
    if n_out > Wo * cout:
        fat = jnp.pad(fat, ((0, 0), (0, n_out - Wo * cout)))
    return fat.astype(dtype)


# -----------------------------------------------------------------------------
# Fused kernel: whole network, activations live as values (no scratch)
# -----------------------------------------------------------------------------
def _make_fused_kernel(B, geo, plan, m_out_pad):
    n_conv = len(geo)

    def kernel(*refs):
        out_ref = refs[-1]
        x = refs[0][...]                                     # (B*H0, W0*C0p) bf16

        for l, g in enumerate(geo):
            ix = plan[l]
            sel_ref = refs[ix["sel"]]                        # (4, B*Ho, B*H) bf16
            band_ref = refs[ix["band"]]                      # (4*W*Cin, Nout) bf16

            # ---- conv: 4 tiny row-select matmuls + one fat-K banded matmul ----
            slabs = [
                jnp.dot(sel_ref[dy], x,
                        preferred_element_type=jnp.float32).astype(jnp.bfloat16)
                for dy in range(KW)                          # exact: 0/1 selection
            ]
            xt = jnp.concatenate(slabs, axis=1)              # (B*Ho, 4*W*Cin) bf16
            acc = jnp.dot(xt, band_ref[...],
                          preferred_element_type=jnp.float32)   # (B*Ho, Nout) f32

            # ---- epilogue: train-mode BatchNorm or pre-expanded conv bias ----
            if g["use_bn"]:
                gamma = refs[ix["gamma"]][...]               # (1, Cout) f32
                beta = refs[ix["beta"]][...]                 # (1, Cout) f32
                red = refs[ix["reduce"]][...]                # (nwc, Cout) f32
                exp = refs[ix["expand"]][...]                # (Cout, nwc) f32
                inv_n = 1.0 / float(B * g["hout"] * g["wout"])
                # two-pass (centered) statistics in f32
                mean_c = jnp.dot(jnp.sum(acc, axis=0, keepdims=True), red,
                                 preferred_element_type=jnp.float32) * inv_n
                mean_row = jnp.dot(mean_c, exp,
                                   preferred_element_type=jnp.float32)
                d = acc - mean_row
                var_c = jnp.dot(jnp.sum(d * d, axis=0, keepdims=True), red,
                                preferred_element_type=jnp.float32) * inv_n
                scale_c = gamma * lax.rsqrt(var_c + BN_EPS)
                rows = jnp.dot(jnp.concatenate([scale_c, beta], axis=0), exp,
                               preferred_element_type=jnp.float32)  # (2, nwc)
                z = d * rows[0:1, :] + rows[1:2, :]
            else:
                z = acc + refs[ix["bias"]][...]              # (1, Nout) f32

            if l < n_conv - 1:
                z = jnp.where(z >= 0.0, z, LEAKY_SLOPE * z)  # LeakyReLU(0.2)
                x = z.astype(jnp.bfloat16)                   # stays in registers
            else:
                m = z.shape[0]
                if m < m_out_pad:                            # sublane-dense store
                    z = jnp.concatenate(
                        [z, jnp.zeros((m_out_pad - m, z.shape[1]), z.dtype)],
                        axis=0)
                out_ref[...] = z

    return kernel


# -----------------------------------------------------------------------------
# Wrapper: host-side packing + one pallas_call
# -----------------------------------------------------------------------------
def nlayer_discriminator(x_nchw, params, *, input_nc=3, ndf=16, n_layers=3):
    """Forward pass: (B, C, H, W) -> (B, 1, H', W')."""
    B, C, H, W = x_nchw.shape
    assert C == input_nc
    geo = _geometry(H, W, _layer_specs(input_nc, ndf, n_layers))
    n_conv = len(geo)
    assert len(params) == n_conv

    # Layer-0 lane density: pad input channels so W0*Cin_pad is a multiple of 128.
    cin_pad = input_nc
    while (W * cin_pad) % LANE != 0:
        cin_pad += 1
    x_nhwc = jnp.transpose(x_nchw, (0, 2, 3, 1)).astype(jnp.float32)
    if cin_pad > input_nc:
        x_nhwc = jnp.pad(x_nhwc, ((0, 0), (0, 0), (0, 0), (0, cin_pad - input_nc)))
    x0 = x_nhwc.reshape(B * H, W * cin_pad).astype(jnp.bfloat16)

    # Final-layer lane/sublane padding (dense output store).
    gl = geo[-1]
    nwc_last = gl["wout"] * gl["cout"]
    n_out_last = _round_up(max(nwc_last, LANE), LANE)
    m_out = B * gl["hout"]
    m_out_pad = _round_up(max(m_out, SUBLANE), SUBLANE)

    # Host-side pre-packing of all static / weight operands.
    inputs = [x0]
    plan = []
    for l, (p, g) in enumerate(zip(params, geo)):
        ix = {}
        w = p["w"].astype(jnp.float32)
        if l == 0 and cin_pad > input_nc:
            w = jnp.pad(w, ((0, 0), (0, 0), (0, cin_pad - input_nc), (0, 0)))
        nwc = g["wout"] * g["cout"]
        n_out = n_out_last if l == n_conv - 1 else nwc

        ix["sel"] = len(inputs)
        inputs.append(_sel_matrices(B, g["hin"], g["hout"], g["stride"]))
        ix["band"] = len(inputs)
        inputs.append(_banded_weights_fat(w, g["stride"], g["win"], g["wout"], n_out))

        if g["use_bn"]:
            ix["gamma"] = len(inputs)
            inputs.append(p["gamma"].reshape(1, g["cout"]).astype(jnp.float32))
            ix["beta"] = len(inputs)
            inputs.append(p["beta"].reshape(1, g["cout"]).astype(jnp.float32))
            red, exp = _chan_maps(g["wout"], g["cout"])
            ix["reduce"] = len(inputs)
            inputs.append(red)
            ix["expand"] = len(inputs)
            inputs.append(exp)
        else:
            bias_row = jnp.tile(p["beta"].astype(jnp.float32), g["wout"])  # (nwc,)
            if n_out > nwc:
                bias_row = jnp.pad(bias_row, (0, n_out - nwc))
            ix["bias"] = len(inputs)
            inputs.append(bias_row.reshape(1, n_out))
        plan.append(ix)

    in_specs = [pl.BlockSpec(a.shape, _zero_map(a.ndim)) for a in inputs]
    out_shape = (m_out_pad, n_out_last)

    out2d = pl.pallas_call(
        _make_fused_kernel(B, geo, plan, m_out_pad),
        out_shape=jax.ShapeDtypeStruct(out_shape, jnp.float32),
        grid=(1,),
        in_specs=in_specs,
        out_specs=pl.BlockSpec(out_shape, _zero_map(2)),
        compiler_params=pltpu.CompilerParams(
            dimension_semantics=("arbitrary",),
            vmem_limit_bytes=32 * 1024 * 1024),
    )(*inputs)

    out = out2d[:m_out, :nwc_last].reshape(B, gl["hout"], gl["wout"], gl["cout"])
    return jnp.transpose(out, (0, 3, 1, 2))                  # NHWC -> NCHW


# -----------------------------------------------------------------------------
# Deterministic synthetic parameters + pure-JAX reference (sanity check)
# -----------------------------------------------------------------------------
def init_params(key, input_nc=3, ndf=16, n_layers=3):
    params = []
    for cin, cout, stride, use_bn in _layer_specs(input_nc, ndf, n_layers):
        key, wk, bk = jax.random.split(key, 3)
        w = 0.02 * jax.random.normal(wk, (KW, KW, cin, cout), jnp.float32)
        if use_bn:
            gamma = jnp.ones((cout,), jnp.float32)           # BN weight init
            beta = jnp.zeros((cout,), jnp.float32)           # BN bias init
        else:
            gamma = jnp.ones((cout,), jnp.float32)           # unused for non-BN
            beta = 0.01 * jax.random.normal(bk, (cout,), jnp.float32)  # conv bias
        params.append(dict(w=w, gamma=gamma, beta=beta,
                           stride=stride, use_bn=use_bn))
    return params


def reference_forward(x_nchw, params):
    """Pure-JAX f32 reference with identical semantics (train-mode BN)."""
    x = jnp.transpose(x_nchw, (0, 2, 3, 1)).astype(jnp.float32)
    n = len(params)
    for i, p in enumerate(params):
        y = lax.conv_general_dilated(
            x, p["w"].astype(jnp.float32),
            window_strides=(p["stride"], p["stride"]),
            padding=((1, 1), (1, 1)),
            dimension_numbers=("NHWC", "HWIO", "NHWC"))
        if p["use_bn"]:
            mean = jnp.mean(y, axis=(0, 1, 2), keepdims=True)
            var = jnp.mean(jnp.square(y - mean), axis=(0, 1, 2), keepdims=True)
            y = (p["gamma"].reshape(1, 1, 1, -1) * (y - mean)
                 * lax.rsqrt(var + BN_EPS) + p["beta"].reshape(1, 1, 1, -1))
        else:
            y = y + p["beta"].reshape(1, 1, 1, -1)
        if i < n - 1:
            y = jnp.where(y >= 0.0, y, LEAKY_SLOPE * y)
        x = y
    return jnp.transpose(x, (0, 3, 1, 2))


if __name__ == "__main__":
    key = jax.random.PRNGKey(0)
    pkey, xkey = jax.random.split(key)

    params = init_params(pkey, input_nc=3, ndf=16, n_layers=3)
    x = jax.random.normal(xkey, (2, 3, 32, 32), jnp.float32)   # NCHW, like PyTorch

    fwd = jax.jit(lambda inp: nlayer_discriminator(inp, params,
                                                   input_nc=3, ndf=16, n_layers=3))
    out = fwd(x)
    jax.block_until_ready(out)

    # PatchGAN output shape for 32x32 input, n_layers=3
    assert out.shape == (2, 1, 2, 2), out.shape
    assert bool(jnp.all(jnp.isfinite(out)))

    # Loose sanity check vs. an f32 XLA reference (kernel matmuls run in bf16).
    ref = reference_forward(x, params)
    err = float(jnp.max(jnp.abs(out.astype(jnp.float32) - ref)))
    scale = float(jnp.max(jnp.abs(ref)))
    assert err <= 0.1 * scale + 0.1, (err, scale)

    print("KERNEL_OK")
</pallas_src>

<mosaic_0001>
module attributes {stable_mosaic.version = 11 : i64} {
  func.func @kernel(%arg0: i32, %arg1: memref<64x128xbf16, #tpu.memory_space<vmem>>, %arg2: memref<4x32x64xbf16, #tpu.memory_space<vmem>>, %arg3: memref<512x256xbf16, #tpu.memory_space<vmem>>, %arg4: memref<1x256xf32, #tpu.memory_space<vmem>>, %arg5: memref<4x16x32xbf16, #tpu.memory_space<vmem>>, %arg6: memref<1024x256xbf16, #tpu.memory_space<vmem>>, %arg7: memref<1x32xf32, #tpu.memory_space<vmem>>, %arg8: memref<1x32xf32, #tpu.memory_space<vmem>>, %arg9: memref<256x32xf32, #tpu.memory_space<vmem>>, %arg10: memref<32x256xf32, #tpu.memory_space<vmem>>, %arg11: memref<4x8x16xbf16, #tpu.memory_space<vmem>>, %arg12: memref<1024x256xbf16, #tpu.memory_space<vmem>>, %arg13: memref<1x64xf32, #tpu.memory_space<vmem>>, %arg14: memref<1x64xf32, #tpu.memory_space<vmem>>, %arg15: memref<256x64xf32, #tpu.memory_space<vmem>>, %arg16: memref<64x256xf32, #tpu.memory_space<vmem>>, %arg17: memref<4x6x8xbf16, #tpu.memory_space<vmem>>, %arg18: memref<1024x384xbf16, #tpu.memory_space<vmem>>, %arg19: memref<1x128xf32, #tpu.memory_space<vmem>>, %arg20: memref<1x128xf32, #tpu.memory_space<vmem>>, %arg21: memref<384x128xf32, #tpu.memory_space<vmem>>, %arg22: memref<128x384xf32, #tpu.memory_space<vmem>>, %arg23: memref<4x4x6xbf16, #tpu.memory_space<vmem>>, %arg24: memref<1536x128xbf16, #tpu.memory_space<vmem>>, %arg25: memref<1x128xf32, #tpu.memory_space<vmem>>, %arg26: memref<8x128xf32, #tpu.memory_space<vmem>>) attributes {dimension_semantics = [#tpu.dimension_semantics<arbitrary>], iteration_bounds = array<i64: 1>, scalar_prefetch = 0 : i64, scratch_operands = 0 : i64, tpu.core_type = #tpu.core_type<tc>, window_params = [{pipeline_mode = #tpu.pipeline_mode<synchronous>, transform_indices = @transform_0, window_bounds = array<i64: 64, 128>}, {pipeline_mode = #tpu.pipeline_mode<synchronous>, transform_indices = @transform_1, window_bounds = array<i64: 4, 32, 64>}, {pipeline_mode = #tpu.pipeline_mode<synchronous>, transform_indices = @transform_2, window_bounds = array<i64: 512, 256>}, {pipeline_mode = #tpu.pipeline_mode<synchronous>, transform_indices = @transform_3, window_bounds = array<i64: 1, 256>}, {pipeline_mode = #tpu.pipeline_mode<synchronous>, transform_indices = @transform_4, window_bounds = array<i64: 4, 16, 32>}, {pipeline_mode = #tpu.pipeline_mode<synchronous>, transform_indices = @transform_5, window_bounds = array<i64: 1024, 256>}, {pipeline_mode = #tpu.pipeline_mode<synchronous>, transform_indices = @transform_6, window_bounds = array<i64: 1, 32>}, {pipeline_mode = #tpu.pipeline_mode<synchronous>, transform_indices = @transform_7, window_bounds = array<i64: 1, 32>}, {pipeline_mode = #tpu.pipeline_mode<synchronous>, transform_indices = @transform_8, window_bounds = array<i64: 256, 32>}, {pipeline_mode = #tpu.pipeline_mode<synchronous>, transform_indices = @transform_9, window_bounds = array<i64: 32, 256>}, {pipeline_mode = #tpu.pipeline_mode<synchronous>, transform_indices = @transform_10, window_bounds = array<i64: 4, 8, 16>}, {pipeline_mode = #tpu.pipeline_mode<synchronous>, transform_indices = @transform_11, window_bounds = array<i64: 1024, 256>}, {pipeline_mode = #tpu.pipeline_mode<synchronous>, transform_indices = @transform_12, window_bounds = array<i64: 1, 64>}, {pipeline_mode = #tpu.pipeline_mode<synchronous>, transform_indices = @transform_13, window_bounds = array<i64: 1, 64>}, {pipeline_mode = #tpu.pipeline_mode<synchronous>, transform_indices = @transform_14, window_bounds = array<i64: 256, 64>}, {pipeline_mode = #tpu.pipeline_mode<synchronous>, transform_indices = @transform_15, window_bounds = array<i64: 64, 256>}, {pipeline_mode = #tpu.pipeline_mode<synchronous>, transform_indices = @transform_16, window_bounds = array<i64: 4, 6, 8>}, {pipeline_mode = #tpu.pipeline_mode<synchronous>, transform_indices = @transform_17, window_bounds = array<i64: 1024, 384>}, {pipeline_mode = #tpu.pipeline_mode<synchronous>, transform_indices = @transform_18, window_bounds = array<i64: 1, 128>}, {pipeline_mode = #tpu.pipeline_mode<synchronous>, transform_indices = @transform_19, window_bounds = array<i64: 1, 128>}, {pipeline_mode = #tpu.pipeline_mode<synchronous>, transform_indices = @transform_20, window_bounds = array<i64: 384, 128>}, {pipeline_mode = #tpu.pipeline_mode<synchronous>, transform_indices = @transform_21, window_bounds = array<i64: 128, 384>}, {pipeline_mode = #tpu.pipeline_mode<synchronous>, transform_indices = @transform_22, window_bounds = array<i64: 4, 4, 6>}, {pipeline_mode = #tpu.pipeline_mode<synchronous>, transform_indices = @transform_23, window_bounds = array<i64: 1536, 128>}, {pipeline_mode = #tpu.pipeline_mode<synchronous>, transform_indices = @transform_24, window_bounds = array<i64: 1, 128>}, {pipeline_mode = #tpu.pipeline_mode<synchronous>, transform_indices = @transform_25, window_bounds = array<i64: 8, 128>}]} {
    %c0 = arith.constant 0 : index
    %c0_0 = arith.constant 0 : index
    %0 = vector.load %arg1[%c0, %c0_0] : memref<64x128xbf16, #tpu.memory_space<vmem>>, vector<64x128xbf16>
    %c0_1 = arith.constant 0 : index
    %c0_2 = arith.constant 0 : index
    %c0_3 = arith.constant 0 : index
    %1 = vector.load %arg2[%c0_1, %c0_2, %c0_3] : memref<4x32x64xbf16, #tpu.memory_space<vmem>>, vector<1x32x64xbf16>
    %2 = vector.shape_cast %1 : vector<1x32x64xbf16> to vector<32x64xbf16>
    %cst = arith.constant dense<0.000000e+00> : vector<32x128xf32>
    %3 = tpu.matmul %2, %0, %cst {dimension_numbers = #tpu.dot_dimension_numbers<[1], [0], [0], [1], [0, 0, 1, 1], [], []>} : vector<32x64xbf16>, vector<64x128xbf16>, vector<32x128xf32> -> vector<32x128xf32>
    %4 = arith.truncf %3 : vector<32x128xf32> to vector<32x128xbf16>
    %c1 = arith.constant 1 : index
    %c0_4 = arith.constant 0 : index
    %c0_5 = arith.constant 0 : index
    %5 = vector.load %arg2[%c1, %c0_4, %c0_5] : memref<4x32x64xbf16, #tpu.memory_space<vmem>>, vector<1x32x64xbf16>
    %6 = vector.shape_cast %5 : vector<1x32x64xbf16> to vector<32x64xbf16>
    %cst_6 = arith.constant dense<0.000000e+00> : vector<32x128xf32>
    %7 = tpu.matmul %6, %0, %cst_6 {dimension_numbers = #tpu.dot_dimension_numbers<[1], [0], [0], [1], [0, 0, 1, 1], [], []>} : vector<32x64xbf16>, vector<64x128xbf16>, vector<32x128xf32> -> vector<32x128xf32>
    %8 = arith.truncf %7 : vector<32x128xf32> to vector<32x128xbf16>
    %c2 = arith.constant 2 : index
    %c0_7 = arith.constant 0 : index
    %c0_8 = arith.constant 0 : index
    %9 = vector.load %arg2[%c2, %c0_7, %c0_8] : memref<4x32x64xbf16, #tpu.memory_space<vmem>>, vector<1x32x64xbf16>
    %10 = vector.shape_cast %9 : vector<1x32x64xbf16> to vector<32x64xbf16>
    %cst_9 = arith.constant dense<0.000000e+00> : vector<32x128xf32>
    %11 = tpu.matmul %10, %0, %cst_9 {dimension_numbers = #tpu.dot_dimension_numbers<[1], [0], [0], [1], [0, 0, 1, 1], [], []>} : vector<32x64xbf16>, vector<64x128xbf16>, vector<32x128xf32> -> vector<32x128xf32>
    %12 = arith.truncf %11 : vector<32x128xf32> to vector<32x128xbf16>
    %c3 = arith.constant 3 : index
    %c0_10 = arith.constant 0 : index
    %c0_11 = arith.constant 0 : index
    %13 = vector.load %arg2[%c3, %c0_10, %c0_11] : memref<4x32x64xbf16, #tpu.memory_space<vmem>>, vector<1x32x64xbf16>
    %14 = vector.shape_cast %13 : vector<1x32x64xbf16> to vector<32x64xbf16>
    %cst_12 = arith.constant dense<0.000000e+00> : vector<32x128xf32>
    %15 = tpu.matmul %14, %0, %cst_12 {dimension_numbers = #tpu.dot_dimension_numbers<[1], [0], [0], [1], [0, 0, 1, 1], [], []>} : vector<32x64xbf16>, vector<64x128xbf16>, vector<32x128xf32> -> vector<32x128xf32>
    %16 = arith.truncf %15 : vector<32x128xf32> to vector<32x128xbf16>
    %17 = tpu.concatenate %4, %8, %12, %16 in 1 : vector<32x128xbf16>, vector<32x128xbf16>, vector<32x128xbf16>, vector<32x128xbf16> -> vector<32x512xbf16>
    %c0_13 = arith.constant 0 : index
    %c0_14 = arith.constant 0 : index
    %18 = vector.load %arg3[%c0_13, %c0_14] : memref<512x256xbf16, #tpu.memory_space<vmem>>, vector<512x256xbf16>
    %cst_15 = arith.constant dense<0.000000e+00> : vector<32x256xf32>
    %19 = tpu.matmul %17, %18, %cst_15 {dimension_numbers = #tpu.dot_dimension_numbers<[1], [0], [0], [1], [0, 0, 1, 1], [], []>} : vector<32x512xbf16>, vector<512x256xbf16>, vector<32x256xf32> -> vector<32x256xf32>
    %c0_16 = arith.constant 0 : index
    %c0_17 = arith.constant 0 : index
    %20 = vector.load %arg4[%c0_16, %c0_17] : memref<1x256xf32, #tpu.memory_space<vmem>>, vector<1x256xf32>
    %21 = vector.broadcast %20 : vector<1x256xf32> to vector<32x256xf32>
    %22 = arith.addf %19, %21 : vector<32x256xf32>
    %cst_18 = arith.constant 0.000000e+00 : f32
    %23 = vector.broadcast %cst_18 : f32 to vector<32x256xf32>
    %24 = arith.cmpf oge, %22, %23 : vector<32x256xf32>
    %cst_19 = arith.constant 2.000000e-01 : f32
    %25 = vector.broadcast %cst_19 : f32 to vector<32x256xf32>
    %26 = arith.mulf %25, %22 : vector<32x256xf32>
    %27 = arith.select %24, %22, %26 : vector<32x256xi1>, vector<32x256xf32>
    %28 = arith.truncf %27 : vector<32x256xf32> to vector<32x256xbf16>
    %c0_20 = arith.constant 0 : index
    %c0_21 = arith.constant 0 : index
    %c0_22 = arith.constant 0 : index
    %29 = vector.load %arg5[%c0_20, %c0_21, %c0_22] : memref<4x16x32xbf16, #tpu.memory_space<vmem>>, vector<1x16x32xbf16>
    %30 = vector.shape_cast %29 : vector<1x16x32xbf16> to vector<16x32xbf16>
    %cst_23 = arith.constant dense<0.000000e+00> : vector<16x256xf32>
    %31 = tpu.matmul %30, %28, %cst_23 {dimension_numbers = #tpu.dot_dimension_numbers<[1], [0], [0], [1], [0, 0, 1, 1], [], []>} : vector<16x32xbf16>, vector<32x256xbf16>, vector<16x256xf32> -> vector<16x256xf32>
    %32 = arith.truncf %31 : vector<16x256xf32> to vector<16x256xbf16>
    %c1_24 = arith.constant 1 : index
    %c0_25 = arith.constant 0 : index
    %c0_26 = arith.constant 0 : index
    %33 = vector.load %arg5[%c1_24, %c0_25, %c0_26] : memref<4x16x32xbf16, #tpu.memory_space<vmem>>, vector<1x16x32xbf16>
    %34 = vector.shape_cast %33 : vector<1x16x32xbf16> to vector<16x32xbf16>
    %cst_27 = arith.constant dense<0.000000e+00> : vector<16x256xf32>
    %35 = tpu.matmul %34, %28, %cst_27 {dimension_numbers = #tpu.dot_dimension_numbers<[1], [0], [0], [1], [0, 0, 1, 1], [], []>} : vector<16x32xbf16>, vector<32x256xbf16>, vector<16x256xf32> -> vector<16x256xf32>
    %36 = arith.truncf %35 : vector<16x256xf32> to vector<16x256xbf16>
    %c2_28 = arith.constant 2 : index
    %c0_29 = arith.constant 0 : index
    %c0_30 = arith.constant 0 : index
    %37 = vector.load %arg5[%c2_28, %c0_29, %c0_30] : memref<4x16x32xbf16, #tpu.memory_space<vmem>>, vector<1x16x32xbf16>
    %38 = vector.shape_cast %37 : vector<1x16x32xbf16> to vector<16x32xbf16>
    %cst_31 = arith.constant dense<0.000000e+00> : vector<16x256xf32>
    %39 = tpu.matmul %38, %28, %cst_31 {dimension_numbers = #tpu.dot_dimension_numbers<[1], [0], [0], [1], [0, 0, 1, 1], [], []>} : vector<16x32xbf16>, vector<32x256xbf16>, vector<16x256xf32> -> vector<16x256xf32>
    %40 = arith.truncf %39 : vector<16x256xf32> to vector<16x256xbf16>
    %c3_32 = arith.constant 3 : index
    %c0_33 = arith.constant 0 : index
    %c0_34 = arith.constant 0 : index
    %41 = vector.load %arg5[%c3_32, %c0_33, %c0_34] : memref<4x16x32xbf16, #tpu.memory_space<vmem>>, vector<1x16x32xbf16>
    %42 = vector.shape_cast %41 : vector<1x16x32xbf16> to vector<16x32xbf16>
    %cst_35 = arith.constant dense<0.000000e+00> : vector<16x256xf32>
    %43 = tpu.matmul %42, %28, %cst_35 {dimension_numbers = #tpu.dot_dimension_numbers<[1], [0], [0], [1], [0, 0, 1, 1], [], []>} : vector<16x32xbf16>, vector<32x256xbf16>, vector<16x256xf32> -> vector<16x256xf32>
    %44 = arith.truncf %43 : vector<16x256xf32> to vector<16x256xbf16>
    %45 = tpu.concatenate %32, %36, %40, %44 in 1 : vector<16x256xbf16>, vector<16x256xbf16>, vector<16x256xbf16>, vector<16x256xbf16> -> vector<16x1024xbf16>
    %c0_36 = arith.constant 0 : index
    %c0_37 = arith.constant 0 : index
    %46 = vector.load %arg6[%c0_36, %c0_37] : memref<1024x256xbf16, #tpu.memory_space<vmem>>, vector<1024x256xbf16>
    %cst_38 = arith.constant dense<0.000000e+00> : vector<16x256xf32>
    %47 = tpu.matmul %45, %46, %cst_38 {dimension_numbers = #tpu.dot_dimension_numbers<[1], [0], [0], [1], [0, 0, 1, 1], [], []>} : vector<16x1024xbf16>, vector<1024x256xbf16>, vector<16x256xf32> -> vector<16x256xf32>
    %c0_39 = arith.constant 0 : index
    %c0_40 = arith.constant 0 : index
    %48 = vector.load %arg7[%c0_39, %c0_40] : memref<1x32xf32, #tpu.memory_space<vmem>>, vector<1x32xf32>
    %c0_41 = arith.constant 0 : index
    %c0_42 = arith.constant 0 : index
    %49 = vector.load %arg8[%c0_41, %c0_42] : memref<1x32xf32, #tpu.memory_space<vmem>>, vector<1x32xf32>
    %c0_43 = arith.constant 0 : index
    %c0_44 = arith.constant 0 : index
    %50 = vector.load %arg9[%c0_43, %c0_44] : memref<256x32xf32, #tpu.memory_space<vmem>>, vector<256x32xf32>
    %c0_45 = arith.constant 0 : index
    %c0_46 = arith.constant 0 : index
    %51 = vector.load %arg10[%c0_45, %c0_46] : memref<32x256xf32, #tpu.memory_space<vmem>>, vector<32x256xf32>
    %cst_47 = arith.constant dense<0.000000e+00> : vector<256xf32>
    %52 = vector.multi_reduction <add>, %47, %cst_47 [0] : vector<16x256xf32> to vector<256xf32>
    %53 = vector.shape_cast %52 : vector<256xf32> to vector<1x256xf32>
    %cst_48 = arith.constant dense<0.000000e+00> : vector<1x32xf32>
    %54 = tpu.matmul %53, %50, %cst_48 {dimension_numbers = #tpu.dot_dimension_numbers<[1], [0], [0], [1], [0, 0, 1, 1], [], []>} : vector<1x256xf32>, vector<256x32xf32>, vector<1x32xf32> -> vector<1x32xf32>
    %cst_49 = arith.constant 7.812500e-03 : f32
    %55 = vector.broadcast %cst_49 : f32 to vector<1x32xf32>
    %56 = arith.mulf %54, %55 : vector<1x32xf32>
    %cst_50 = arith.constant dense<0.000000e+00> : vector<1x256xf32>
    %57 = tpu.matmul %56, %51, %cst_50 {dimension_numbers = #tpu.dot_dimension_numbers<[1], [0], [0], [1], [0, 0, 1, 1], [], []>} : vector<1x32xf32>, vector<32x256xf32>, vector<1x256xf32> -> vector<1x256xf32>
    %58 = vector.broadcast %57 : vector<1x256xf32> to vector<16x256xf32>
    %59 = arith.subf %47, %58 : vector<16x256xf32>
    %60 = arith.mulf %59, %59 : vector<16x256xf32>
    %cst_51 = arith.constant dense<0.000000e+00> : vector<256xf32>
    %61 = vector.multi_reduction <add>, %60, %cst_51 [0] : vector<16x256xf32> to vector<256xf32>
    %62 = vector.shape_cast %61 : vector<256xf32> to vector<1x256xf32>
    %cst_52 = arith.constant dense<0.000000e+00> : vector<1x32xf32>
    %63 = tpu.matmul %62, %50, %cst_52 {dimension_numbers = #tpu.dot_dimension_numbers<[1], [0], [0], [1], [0, 0, 1, 1], [], []>} : vector<1x256xf32>, vector<256x32xf32>, vector<1x32xf32> -> vector<1x32xf32>
    %cst_53 = arith.constant 7.812500e-03 : f32
    %64 = vector.broadcast %cst_53 : f32 to vector<1x32xf32>
    %65 = arith.mulf %63, %64 : vector<1x32xf32>
    %cst_54 = arith.constant 9.99999974E-6 : f32
    %66 = vector.broadcast %cst_54 : f32 to vector<1x32xf32>
    %67 = arith.addf %65, %66 : vector<1x32xf32>
    %68 = math.rsqrt %67 : vector<1x32xf32>
    %69 = arith.mulf %48, %68 : vector<1x32xf32>
    %70 = tpu.concatenate %69, %49 in 0 : vector<1x32xf32>, vector<1x32xf32> -> vector<2x32xf32>
    %cst_55 = arith.constant dense<0.000000e+00> : vector<2x256xf32>
    %71 = tpu.matmul %70, %51, %cst_55 {dimension_numbers = #tpu.dot_dimension_numbers<[1], [0], [0], [1], [0, 0, 1, 1], [], []>} : vector<2x32xf32>, vector<32x256xf32>, vector<2x256xf32> -> vector<2x256xf32>
    %72 = vector.extract_strided_slice %71 {offsets = [0, 0], sizes = [1, 256], strides = [1, 1]} : vector<2x256xf32> to vector<1x256xf32>
    %73 = vector.broadcast %72 : vector<1x256xf32> to vector<16x256xf32>
    %74 = arith.mulf %59, %73 : vector<16x256xf32>
    %75 = vector.extract_strided_slice %71 {offsets = [1, 0], sizes = [1, 256], strides = [1, 1]} : vector<2x256xf32> to vector<1x256xf32>
    %76 = vector.broadcast %75 : vector<1x256xf32> to vector<16x256xf32>
    %77 = arith.addf %74, %76 : vector<16x256xf32>
    %cst_56 = arith.constant 0.000000e+00 : f32
    %78 = vector.broadcast %cst_56 : f32 to vector<16x256xf32>
    %79 = arith.cmpf oge, %77, %78 : vector<16x256xf32>
    %cst_57 = arith.constant 2.000000e-01 : f32
    %80 = vector.broadcast %cst_57 : f32 to vector<16x256xf32>
    %81 = arith.mulf %80, %77 : vector<16x256xf32>
    %82 = arith.select %79, %77, %81 : vector<16x256xi1>, vector<16x256xf32>
    %83 = arith.truncf %82 : vector<16x256xf32> to vector<16x256xbf16>
    %c0_58 = arith.constant 0 : index
    %c0_59 = arith.constant 0 : index
    %c0_60 = arith.constant 0 : index
    %84 = vector.load %arg11[%c0_58, %c0_59, %c0_60] : memref<4x8x16xbf16, #tpu.memory_space<vmem>>, vector<1x8x16xbf16>
    %85 = vector.shape_cast %84 : vector<1x8x16xbf16> to vector<8x16xbf16>
    %cst_61 = arith.constant dense<0.000000e+00> : vector<8x256xf32>
    %86 = tpu.matmul %85, %83, %cst_61 {dimension_numbers = #tpu.dot_dimension_numbers<[1], [0], [0], [1], [0, 0, 1, 1], [], []>} : vector<8x16xbf16>, vector<16x256xbf16>, vector<8x256xf32> -> vector<8x256xf32>
    %87 = arith.truncf %86 : vector<8x256xf32> to vector<8x256xbf16>
    %c1_62 = arith.constant 1 : index
    %c0_63 = arith.constant 0 : index
    %c0_64 = arith.constant 0 : index
    %88 = vector.load %arg11[%c1_62, %c0_63, %c0_64] : memref<4x8x16xbf16, #tpu.memory_space<vmem>>, vector<1x8x16xbf16>
    %89 = vector.shape_cast %88 : vector<1x8x16xbf16> to vector<8x16xbf16>
    %cst_65 = arith.constant dense<0.000000e+00> : vector<8x256xf32>
    %90 = tpu.matmul %89, %83, %cst_65 {dimension_numbers = #tpu.dot_dimension_numbers<[1], [0], [0], [1], [0, 0, 1, 1], [], []>} : vector<8x16xbf16>, vector<16x256xbf16>, vector<8x256xf32> -> vector<8x256xf32>
    %91 = arith.truncf %90 : vector<8x256xf32> to vector<8x256xbf16>
    %c2_66 = arith.constant 2 : index
    %c0_67 = arith.constant 0 : index
    %c0_68 = arith.constant 0 : index
    %92 = vector.load %arg11[%c2_66, %c0_67, %c0_68] : memref<4x8x16xbf16, #tpu.memory_space<vmem>>, vector<1x8x16xbf16>
    %93 = vector.shape_cast %92 : vector<1x8x16xbf16> to vector<8x16xbf16>
    %cst_69 = arith.constant dense<0.000000e+00> : vector<8x256xf32>
    %94 = tpu.matmul %93, %83, %cst_69 {dimension_numbers = #tpu.dot_dimension_numbers<[1], [0], [0], [1], [0, 0, 1, 1], [], []>} : vector<8x16xbf16>, vector<16x256xbf16>, vector<8x256xf32> -> vector<8x256xf32>
    %95 = arith.truncf %94 : vector<8x256xf32> to vector<8x256xbf16>
    %c3_70 = arith.constant 3 : index
    %c0_71 = arith.constant 0 : index
    %c0_72 = arith.constant 0 : index
    %96 = vector.load %arg11[%c3_70, %c0_71, %c0_72] : memref<4x8x16xbf16, #tpu.memory_space<vmem>>, vector<1x8x16xbf16>
    %97 = vector.shape_cast %96 : vector<1x8x16xbf16> to vector<8x16xbf16>
    %cst_73 = arith.constant dense<0.000000e+00> : vector<8x256xf32>
    %98 = tpu.matmul %97, %83, %cst_73 {dimension_numbers = #tpu.dot_dimension_numbers<[1], [0], [0], [1], [0, 0, 1, 1], [], []>} : vector<8x16xbf16>, vector<16x256xbf16>, vector<8x256xf32> -> vector<8x256xf32>
    %99 = arith.truncf %98 : vector<8x256xf32> to vector<8x256xbf16>
    %100 = tpu.concatenate %87, %91, %95, %99 in 1 : vector<8x256xbf16>, vector<8x256xbf16>, vector<8x256xbf16>, vector<8x256xbf16> -> vector<8x1024xbf16>
    %c0_74 = arith.constant 0 : index
    %c0_75 = arith.constant 0 : index
    %101 = vector.load %arg12[%c0_74, %c0_75] : memref<1024x256xbf16, #tpu.memory_space<vmem>>, vector<1024x256xbf16>
    %cst_76 = arith.constant dense<0.000000e+00> : vector<8x256xf32>
    %102 = tpu.matmul %100, %101, %cst_76 {dimension_numbers = #tpu.dot_dimension_numbers<[1], [0], [0], [1], [0, 0, 1, 1], [], []>} : vector<8x1024xbf16>, vector<1024x256xbf16>, vector<8x256xf32> -> vector<8x256xf32>
    %c0_77 = arith.constant 0 : index
    %c0_78 = arith.constant 0 : index
    %103 = vector.load %arg13[%c0_77, %c0_78] : memref<1x64xf32, #tpu.memory_space<vmem>>, vector<1x64xf32>
    %c0_79 = arith.constant 0 : index
    %c0_80 = arith.constant 0 : index
    %104 = vector.load %arg14[%c0_79, %c0_80] : memref<1x64xf32, #tpu.memory_space<vmem>>, vector<1x64xf32>
    %c0_81 = arith.constant 0 : index
    %c0_82 = arith.constant 0 : index
    %105 = vector.load %arg15[%c0_81, %c0_82] : memref<256x64xf32, #tpu.memory_space<vmem>>, vector<256x64xf32>
    %c0_83 = arith.constant 0 : index
    %c0_84 = arith.constant 0 : index
    %106 = vector.load %arg16[%c0_83, %c0_84] : memref<64x256xf32, #tpu.memory_space<vmem>>, vector<64x256xf32>
    %cst_85 = arith.constant dense<0.000000e+00> : vector<256xf32>
    %107 = vector.multi_reduction <add>, %102, %cst_85 [0] : vector<8x256xf32> to vector<256xf32>
    %108 = vector.shape_cast %107 : vector<256xf32> to vector<1x256xf32>
    %cst_86 = arith.constant dense<0.000000e+00> : vector<1x64xf32>
    %109 = tpu.matmul %108, %105, %cst_86 {dimension_numbers = #tpu.dot_dimension_numbers<[1], [0], [0], [1], [0, 0, 1, 1], [], []>} : vector<1x256xf32>, vector<256x64xf32>, vector<1x64xf32> -> vector<1x64xf32>
    %cst_87 = arith.constant 3.125000e-02 : f32
    %110 = vector.broadcast %cst_87 : f32 to vector<1x64xf32>
    %111 = arith.mulf %109, %110 : vector<1x64xf32>
    %cst_88 = arith.constant dense<0.000000e+00> : vector<1x256xf32>
    %112 = tpu.matmul %111, %106, %cst_88 {dimension_numbers = #tpu.dot_dimension_numbers<[1], [0], [0], [1], [0, 0, 1, 1], [], []>} : vector<1x64xf32>, vector<64x256xf32>, vector<1x256xf32> -> vector<1x256xf32>
    %113 = vector.broadcast %112 : vector<1x256xf32> to vector<8x256xf32>
    %114 = arith.subf %102, %113 : vector<8x256xf32>
    %115 = arith.mulf %114, %114 : vector<8x256xf32>
    %cst_89 = arith.constant dense<0.000000e+00> : vector<256xf32>
    %116 = vector.multi_reduction <add>, %115, %cst_89 [0] : vector<8x256xf32> to vector<256xf32>
    %117 = vector.shape_cast %116 : vector<256xf32> to vector<1x256xf32>
    %cst_90 = arith.constant dense<0.000000e+00> : vector<1x64xf32>
    %118 = tpu.matmul %117, %105, %cst_90 {dimension_numbers = #tpu.dot_dimension_numbers<[1], [0], [0], [1], [0, 0, 1, 1], [], []>} : vector<1x256xf32>, vector<256x64xf32>, vector<1x64xf32> -> vector<1x64xf32>
    %cst_91 = arith.constant 3.125000e-02 : f32
    %119 = vector.broadcast %cst_91 : f32 to vector<1x64xf32>
    %120 = arith.mulf %118, %119 : vector<1x64xf32>
    %cst_92 = arith.constant 9.99999974E-6 : f32
    %121 = vector.broadcast %cst_92 : f32 to vector<1x64xf32>
    %122 = arith.addf %120, %121 : vector<1x64xf32>
    %123 = math.rsqrt %122 : vector<1x64xf32>
    %124 = arith.mulf %103, %123 : vector<1x64xf32>
    %125 = tpu.concatenate %124, %104 in 0 : vector<1x64xf32>, vector<1x64xf32> -> vector<2x64xf32>
    %cst_93 = arith.constant dense<0.000000e+00> : vector<2x256xf32>
    %126 = tpu.matmul %125, %106, %cst_93 {dimension_numbers = #tpu.dot_dimension_numbers<[1], [0], [0], [1], [0, 0, 1, 1], [], []>} : vector<2x64xf32>, vector<64x256xf32>, vector<2x256xf32> -> vector<2x256xf32>
    %127 = vector.extract_strided_slice %126 {offsets = [0, 0], sizes = [1, 256], strides = [1, 1]} : vector<2x256xf32> to vector<1x256xf32>
    %128 = vector.broadcast %127 : vector<1x256xf32> to vector<8x256xf32>
    %129 = arith.mulf %114, %128 : vector<8x256xf32>
    %130 = vector.extract_strided_slice %126 {offsets = [1, 0], sizes = [1, 256], strides = [1, 1]} : vector<2x256xf32> to vector<1x256xf32>
    %131 = vector.broadcast %130 : vector<1x256xf32> to vector<8x256xf32>
    %132 = arith.addf %129, %131 : vector<8x256xf32>
    %cst_94 = arith.constant 0.000000e+00 : f32
    %133 = vector.broadcast %cst_94 : f32 to vector<8x256xf32>
    %134 = arith.cmpf oge, %132, %133 : vector<8x256xf32>
    %cst_95 = arith.constant 2.000000e-01 : f32
    %135 = vector.broadcast %cst_95 : f32 to vector<8x256xf32>
    %136 = arith.mulf %135, %132 : vector<8x256xf32>
    %137 = arith.select %134, %132, %136 : vector<8x256xi1>, vector<8x256xf32>
    %138 = arith.truncf %137 : vector<8x256xf32> to vector<8x256xbf16>
    %c0_96 = arith.constant 0 : index
    %c0_97 = arith.constant 0 : index
    %c0_98 = arith.constant 0 : index
    %139 = vector.load %arg17[%c0_96, %c0_97, %c0_98] : memref<4x6x8xbf16, #tpu.memory_space<vmem>>, vector<1x6x8xbf16>
    %140 = vector.shape_cast %139 : vector<1x6x8xbf16> to vector<6x8xbf16>
    %cst_99 = arith.constant dense<0.000000e+00> : vector<6x256xf32>
    %141 = tpu.matmul %140, %138, %cst_99 {dimension_numbers = #tpu.dot_dimension_numbers<[1], [0], [0], [1], [0, 0, 1, 1], [], []>} : vector<6x8xbf16>, vector<8x256xbf16>, vector<6x256xf32> -> vector<6x256xf32>
    %142 = arith.truncf %141 : vector<6x256xf32> to vector<6x256xbf16>
    %c1_100 = arith.constant 1 : index
    %c0_101 = arith.constant 0 : index
    %c0_102 = arith.constant 0 : index
    %143 = vector.load %arg17[%c1_100, %c0_101, %c0_102] : memref<4x6x8xbf16, #tpu.memory_space<vmem>>, vector<1x6x8xbf16>
    %144 = vector.shape_cast %143 : vector<1x6x8xbf16> to vector<6x8xbf16>
    %cst_103 = arith.constant dense<0.000000e+00> : vector<6x256xf32>
    %145 = tpu.matmul %144, %138, %cst_103 {dimension_numbers = #tpu.dot_dimension_numbers<[1], [0], [0], [1], [0, 0, 1, 1], [], []>} : vector<6x8xbf16>, vector<8x256xbf16>, vector<6x256xf32> -> vector<6x256xf32>
    %146 = arith.truncf %145 : vector<6x256xf32> to vector<6x256xbf16>
    %c2_104 = arith.constant 2 : index
    %c0_105 = arith.constant 0 : index
    %c0_106 = arith.constant 0 : index
    %147 = vector.load %arg17[%c2_104, %c0_105, %c0_106] : memref<4x6x8xbf16, #tpu.memory_space<vmem>>, vector<1x6x8xbf16>
    %148 = vector.shape_cast %147 : vector<1x6x8xbf16> to vector<6x8xbf16>
    %cst_107 = arith.constant dense<0.000000e+00> : vector<6x256xf32>
    %149 = tpu.matmul %148, %138, %cst_107 {dimension_numbers = #tpu.dot_dimension_numbers<[1], [0], [0], [1], [0, 0, 1, 1], [], []>} : vector<6x8xbf16>, vector<8x256xbf16>, vector<6x256xf32> -> vector<6x256xf32>
    %150 = arith.truncf %149 : vector<6x256xf32> to vector<6x256xbf16>
    %c3_108 = arith.constant 3 : index
    %c0_109 = arith.constant 0 : index
    %c0_110 = arith.constant 0 : index
    %151 = vector.load %arg17[%c3_108, %c0_109, %c0_110] : memref<4x6x8xbf16, #tpu.memory_space<vmem>>, vector<1x6x8xbf16>
    %152 = vector.shape_cast %151 : vector<1x6x8xbf16> to vector<6x8xbf16>
    %cst_111 = arith.constant dense<0.000000e+00> : vector<6x256xf32>
    %153 = tpu.matmul %152, %138, %cst_111 {dimension_numbers = #tpu.dot_dimension_numbers<[1], [0], [0], [1], [0, 0, 1, 1], [], []>} : vector<6x8xbf16>, vector<8x256xbf16>, vector<6x256xf32> -> vector<6x256xf32>
    %154 = arith.truncf %153 : vector<6x256xf32> to vector<6x256xbf16>
    %155 = tpu.concatenate %142, %146, %150, %154 in 1 : vector<6x256xbf16>, vector<6x256xbf16>, vector<6x256xbf16>, vector<6x256xbf16> -> vector<6x1024xbf16>
    %c0_112 = arith.constant 0 : index
    %c0_113 = arith.constant 0 : index
    %156 = vector.load %arg18[%c0_112, %c0_113] : memref<1024x384xbf16, #tpu.memory_space<vmem>>, vector<1024x384xbf16>
    %cst_114 = arith.constant dense<0.000000e+00> : vector<6x384xf32>
    %157 = tpu.matmul %155, %156, %cst_114 {dimension_numbers = #tpu.dot_dimension_numbers<[1], [0], [0], [1], [0, 0, 1, 1], [], []>} : vector<6x1024xbf16>, vector<1024x384xbf16>, vector<6x384xf32> -> vector<6x384xf32>
    %c0_115 = arith.constant 0 : index
    %c0_116 = arith.constant 0 : index
    %158 = vector.load %arg19[%c0_115, %c0_116] : memref<1x128xf32, #tpu.memory_space<vmem>>, vector<1x128xf32>
    %c0_117 = arith.constant 0 : index
    %c0_118 = arith.constant 0 : index
    %159 = vector.load %arg20[%c0_117, %c0_118] : memref<1x128xf32, #tpu.memory_space<vmem>>, vector<1x128xf32>
    %c0_119 = arith.constant 0 : index
    %c0_120 = arith.constant 0 : index
    %160 = vector.load %arg21[%c0_119, %c0_120] : memref<384x128xf32, #tpu.memory_space<vmem>>, vector<384x128xf32>
    %c0_121 = arith.constant 0 : index
    %c0_122 = arith.constant 0 : index
    %161 = vector.load %arg22[%c0_121, %c0_122] : memref<128x384xf32, #tpu.memory_space<vmem>>, vector<128x384xf32>
    %cst_123 = arith.constant dense<0.000000e+00> : vector<384xf32>
    %162 = vector.multi_reduction <add>, %157, %cst_123 [0] : vector<6x384xf32> to vector<384xf32>
    %163 = vector.shape_cast %162 : vector<384xf32> to vector<1x384xf32>
    %cst_124 = arith.constant dense<0.000000e+00> : vector<1x128xf32>
    %164 = tpu.matmul %163, %160, %cst_124 {dimension_numbers = #tpu.dot_dimension_numbers<[1], [0], [0], [1], [0, 0, 1, 1], [], []>} : vector<1x384xf32>, vector<384x128xf32>, vector<1x128xf32> -> vector<1x128xf32>
    %cst_125 = arith.constant 0.055555556 : f32
    %165 = vector.broadcast %cst_125 : f32 to vector<1x128xf32>
    %166 = arith.mulf %164, %165 : vector<1x128xf32>
    %cst_126 = arith.constant dense<0.000000e+00> : vector<1x384xf32>
    %167 = tpu.matmul %166, %161, %cst_126 {dimension_numbers = #tpu.dot_dimension_numbers<[1], [0], [0], [1], [0, 0, 1, 1], [], []>} : vector<1x128xf32>, vector<128x384xf32>, vector<1x384xf32> -> vector<1x384xf32>
    %168 = vector.broadcast %167 : vector<1x384xf32> to vector<6x384xf32>
    %169 = arith.subf %157, %168 : vector<6x384xf32>
    %170 = arith.mulf %169, %169 : vector<6x384xf32>
    %cst_127 = arith.constant dense<0.000000e+00> : vector<384xf32>
    %171 = vector.multi_reduction <add>, %170, %cst_127 [0] : vector<6x384xf32> to vector<384xf32>
    %172 = vector.shape_cast %171 : vector<384xf32> to vector<1x384xf32>
    %cst_128 = arith.constant dense<0.000000e+00> : vector<1x128xf32>
    %173 = tpu.matmul %172, %160, %cst_128 {dimension_numbers = #tpu.dot_dimension_numbers<[1], [0], [0], [1], [0, 0, 1, 1], [], []>} : vector<1x384xf32>, vector<384x128xf32>, vector<1x128xf32> -> vector<1x128xf32>
    %cst_129 = arith.constant 0.055555556 : f32
    %174 = vector.broadcast %cst_129 : f32 to vector<1x128xf32>
    %175 = arith.mulf %173, %174 : vector<1x128xf32>
    %cst_130 = arith.constant 9.99999974E-6 : f32
    %176 = vector.broadcast %cst_130 : f32 to vector<1x128xf32>
    %177 = arith.addf %175, %176 : vector<1x128xf32>
    %178 = math.rsqrt %177 : vector<1x128xf32>
    %179 = arith.mulf %158, %178 : vector<1x128xf32>
    %180 = tpu.concatenate %179, %159 in 0 : vector<1x128xf32>, vector<1x128xf32> -> vector<2x128xf32>
    %cst_131 = arith.constant dense<0.000000e+00> : vector<2x384xf32>
    %181 = tpu.matmul %180, %161, %cst_131 {dimension_numbers = #tpu.dot_dimension_numbers<[1], [0], [0], [1], [0, 0, 1, 1], [], []>} : vector<2x128xf32>, vector<128x384xf32>, vector<2x384xf32> -> vector<2x384xf32>
    %182 = vector.extract_strided_slice %181 {offsets = [0, 0], sizes = [1, 384], strides = [1, 1]} : vector<2x384xf32> to vector<1x384xf32>
    %183 = vector.broadcast %182 : vector<1x384xf32> to vector<6x384xf32>
    %184 = arith.mulf %169, %183 : vector<6x384xf32>
    %185 = vector.extract_strided_slice %181 {offsets = [1, 0], sizes = [1, 384], strides = [1, 1]} : vector<2x384xf32> to vector<1x384xf32>
    %186 = vector.broadcast %185 : vector<1x384xf32> to vector<6x384xf32>
    %187 = arith.addf %184, %186 : vector<6x384xf32>
    %cst_132 = arith.constant 0.000000e+00 : f32
    %188 = vector.broadcast %cst_132 : f32 to vector<6x384xf32>
    %189 = arith.cmpf oge, %187, %188 : vector<6x384xf32>
    %cst_133 = arith.constant 2.000000e-01 : f32
    %190 = vector.broadcast %cst_133 : f32 to vector<6x384xf32>
    %191 = arith.mulf %190, %187 : vector<6x384xf32>
    %192 = arith.select %189, %187, %191 : vector<6x384xi1>, vector<6x384xf32>
    %193 = arith.truncf %192 : vector<6x384xf32> to vector<6x384xbf16>
    %c0_134 = arith.constant 0 : index
    %c0_135 = arith.constant 0 : index
    %c0_136 = arith.constant 0 : index
    %194 = vector.load %arg23[%c0_134, %c0_135, %c0_136] : memref<4x4x6xbf16, #tpu.memory_space<vmem>>, vector<1x4x6xbf16>
    %195 = vector.shape_cast %194 : vector<1x4x6xbf16> to vector<4x6xbf16>
    %cst_137 = arith.constant dense<0.000000e+00> : vector<4x384xf32>
    %196 = tpu.matmul %195, %193, %cst_137 {dimension_numbers = #tpu.dot_dimension_numbers<[1], [0], [0], [1], [0, 0, 1, 1], [], []>} : vector<4x6xbf16>, vector<6x384xbf16>, vector<4x384xf32> -> vector<4x384xf32>
    %197 = arith.truncf %196 : vector<4x384xf32> to vector<4x384xbf16>
    %c1_138 = arith.constant 1 : index
    %c0_139 = arith.constant 0 : index
    %c0_140 = arith.constant 0 : index
    %198 = vector.load %arg23[%c1_138, %c0_139, %c0_140] : memref<4x4x6xbf16, #tpu.memory_space<vmem>>, vector<1x4x6xbf16>
    %199 = vector.shape_cast %198 : vector<1x4x6xbf16> to vector<4x6xbf16>
    %cst_141 = arith.constant dense<0.000000e+00> : vector<4x384xf32>
    %200 = tpu.matmul %199, %193, %cst_141 {dimension_numbers = #tpu.dot_dimension_numbers<[1], [0], [0], [1], [0, 0, 1, 1], [], []>} : vector<4x6xbf16>, vector<6x384xbf16>, vector<4x384xf32> -> vector<4x384xf32>
    %201 = arith.truncf %200 : vector<4x384xf32> to vector<4x384xbf16>
    %c2_142 = arith.constant 2 : index
    %c0_143 = arith.constant 0 : index
    %c0_144 = arith.constant 0 : index
    %202 = vector.load %arg23[%c2_142, %c0_143, %c0_144] : memref<4x4x6xbf16, #tpu.memory_space<vmem>>, vector<1x4x6xbf16>
    %203 = vector.shape_cast %202 : vector<1x4x6xbf16> to vector<4x6xbf16>
    %cst_145 = arith.constant dense<0.000000e+00> : vector<4x384xf32>
    %204 = tpu.matmul %203, %193, %cst_145 {dimension_numbers = #tpu.dot_dimension_numbers<[1], [0], [0], [1], [0, 0, 1, 1], [], []>} : vector<4x6xbf16>, vector<6x384xbf16>, vector<4x384xf32> -> vector<4x384xf32>
    %205 = arith.truncf %204 : vector<4x384xf32> to vector<4x384xbf16>
    %c3_146 = arith.constant 3 : index
    %c0_147 = arith.constant 0 : index
    %c0_148 = arith.constant 0 : index
    %206 = vector.load %arg23[%c3_146, %c0_147, %c0_148] : memref<4x4x6xbf16, #tpu.memory_space<vmem>>, vector<1x4x6xbf16>
    %207 = vector.shape_cast %206 : vector<1x4x6xbf16> to vector<4x6xbf16>
    %cst_149 = arith.constant dense<0.000000e+00> : vector<4x384xf32>
    %208 = tpu.matmul %207, %193, %cst_149 {dimension_numbers = #tpu.dot_dimension_numbers<[1], [0], [0], [1], [0, 0, 1, 1], [], []>} : vector<4x6xbf16>, vector<6x384xbf16>, vector<4x384xf32> -> vector<4x384xf32>
    %209 = arith.truncf %208 : vector<4x384xf32> to vector<4x384xbf16>
    %210 = tpu.concatenate %197, %201, %205, %209 in 1 : vector<4x384xbf16>, vector<4x384xbf16>, vector<4x384xbf16>, vector<4x384xbf16> -> vector<4x1536xbf16>
    %c0_150 = arith.constant 0 : index
    %c0_151 = arith.constant 0 : index
    %211 = vector.load %arg24[%c0_150, %c0_151] : memref<1536x128xbf16, #tpu.memory_space<vmem>>, vector<1536x128xbf16>
    %cst_152 = arith.constant dense<0.000000e+00> : vector<4x128xf32>
    %212 = tpu.matmul %210, %211, %cst_152 {dimension_numbers = #tpu.dot_dimension_numbers<[1], [0], [0], [1], [0, 0, 1, 1], [], []>} : vector<4x1536xbf16>, vector<1536x128xbf16>, vector<4x128xf32> -> vector<4x128xf32>
    %c0_153 = arith.constant 0 : index
    %c0_154 = arith.constant 0 : index
    %213 = vector.load %arg25[%c0_153, %c0_154] : memref<1x128xf32, #tpu.memory_space<vmem>>, vector<1x128xf32>
    %214 = vector.broadcast %213 : vector<1x128xf32> to vector<4x128xf32>
    %215 = arith.addf %212, %214 : vector<4x128xf32>
    %cst_155 = arith.constant 0.000000e+00 : f32
    %216 = vector.broadcast %cst_155 : f32 to vector<4x128xf32>
    %217 = tpu.concatenate %215, %216 in 0 : vector<4x128xf32>, vector<4x128xf32> -> vector<8x128xf32>
    %c0_156 = arith.constant 0 : index
    %c0_157 = arith.constant 0 : index
    %218 = vector.load %arg26[%c0_156, %c0_157] : memref<8x128xf32, #tpu.memory_space<vmem>>, vector<8x128xf32>
    tpu.vector_store %arg26[%c0_156, %c0_157], %217 {strides = array<i32>} : memref<8x128xf32, #tpu.memory_space<vmem>>, vector<8x128xf32>,
    return
  }
  func.func @transform_0(%arg0: i32) -> (i32, i32) {
    %c0_i32 = arith.constant 0 : i32
    %c0_i32_0 = arith.constant 0 : i32
    %c0_i32_1 = arith.constant 0 : i32
    return %c0_i32, %c0_i32_0 : i32, i32
  }
  func.func @transform_1(%arg0: i32) -> (i32, i32, i32) {
    %c0_i32 = arith.constant 0 : i32
    %c0_i32_0 = arith.constant 0 : i32
    %c0_i32_1 = arith.constant 0 : i32
    %c0_i32_2 = arith.constant 0 : i32
    return %c0_i32, %c0_i32_0, %c0_i32_1 : i32, i32, i32
  }
  func.func @transform_2(%arg0: i32) -> (i32, i32) {
    %c0_i32 = arith.constant 0 : i32
    %c0_i32_0 = arith.constant 0 : i32
    %c0_i32_1 = arith.constant 0 : i32
    return %c0_i32, %c0_i32_0 : i32, i32
  }
  func.func @transform_3(%arg0: i32) -> (i32, i32) {
    %c0_i32 = arith.constant 0 : i32
    %c0_i32_0 = arith.constant 0 : i32
    %c0_i32_1 = arith.constant 0 : i32
    return %c0_i32, %c0_i32_0 : i32, i32
  }
  func.func @transform_4(%arg0: i32) -> (i32, i32, i32) {
    %c0_i32 = arith.constant 0 : i32
    %c0_i32_0 = arith.constant 0 : i32
    %c0_i32_1 = arith.constant 0 : i32
    %c0_i32_2 = arith.constant 0 : i32
    return %c0_i32, %c0_i32_0, %c0_i32_1 : i32, i32, i32
  }
  func.func @transform_5(%arg0: i32) -> (i32, i32) {
    %c0_i32 = arith.constant 0 : i32
    %c0_i32_0 = arith.constant 0 : i32
    %c0_i32_1 = arith.constant 0 : i32
    return %c0_i32, %c0_i32_0 : i32, i32
  }
  func.func @transform_6(%arg0: i32) -> (i32, i32) {
    %c0_i32 = arith.constant 0 : i32
    %c0_i32_0 = arith.constant 0 : i32
    %c0_i32_1 = arith.constant 0 : i32
    return %c0_i32, %c0_i32_0 : i32, i32
  }
  func.func @transform_7(%arg0: i32) -> (i32, i32) {
    %c0_i32 = arith.constant 0 : i32
    %c0_i32_0 = arith.constant 0 : i32
    %c0_i32_1 = arith.constant 0 : i32
    return %c0_i32, %c0_i32_0 : i32, i32
  }
  func.func @transform_8(%arg0: i32) -> (i32, i32) {
    %c0_i32 = arith.constant 0 : i32
    %c0_i32_0 = arith.constant 0 : i32
    %c0_i32_1 = arith.constant 0 : i32
    return %c0_i32, %c0_i32_0 : i32, i32
  }
  func.func @transform_9(%arg0: i32) -> (i32, i32) {
    %c0_i32 = arith.constant 0 : i32
    %c0_i32_0 = arith.constant 0 : i32
    %c0_i32_1 = arith.constant 0 : i32
    return %c0_i32, %c0_i32_0 : i32, i32
  }
  func.func @transform_10(%arg0: i32) -> (i32, i32, i32) {
    %c0_i32 = arith.constant 0 : i32
    %c0_i32_0 = arith.constant 0 : i32
    %c0_i32_1 = arith.constant 0 : i32
    %c0_i32_2 = arith.constant 0 : i32
    return %c0_i32, %c0_i32_0, %c0_i32_1 : i32, i32, i32
  }
  func.func @transform_11(%arg0: i32) -> (i32, i32) {
    %c0_i32 = arith.constant 0 : i32
    %c0_i32_0 = arith.constant 0 : i32
    %c0_i32_1 = arith.constant 0 : i32
    return %c0_i32, %c0_i32_0 : i32, i32
  }
  func.func @transform_12(%arg0: i32) -> (i32, i32) {
    %c0_i32 = arith.constant 0 : i32
    %c0_i32_0 = arith.constant 0 : i32
    %c0_i32_1 = arith.constant 0 : i32
    return %c0_i32, %c0_i32_0 : i32, i32
  }
  func.func @transform_13(%arg0: i32) -> (i32, i32) {
    %c0_i32 = arith.constant 0 : i32
    %c0_i32_0 = arith.constant 0 : i32
    %c0_i32_1 = arith.constant 0 : i32
    return %c0_i32, %c0_i32_0 : i32, i32
  }
  func.func @transform_14(%arg0: i32) -> (i32, i32) {
    %c0_i32 = arith.constant 0 : i32
    %c0_i32_0 = arith.constant 0 : i32
    %c0_i32_1 = arith.constant 0 : i32
    return %c0_i32, %c0_i32_0 : i32, i32
  }
  func.func @transform_15(%arg0: i32) -> (i32, i32) {
    %c0_i32 = arith.constant 0 : i32
    %c0_i32_0 = arith.constant 0 : i32
    %c0_i32_1 = arith.constant 0 : i32
    return %c0_i32, %c0_i32_0 : i32, i32
  }
  func.func @transform_16(%arg0: i32) -> (i32, i32, i32) {
    %c0_i32 = arith.constant 0 : i32
    %c0_i32_0 = arith.constant 0 : i32
    %c0_i32_1 = arith.constant 0 : i32
    %c0_i32_2 = arith.constant 0 : i32
    return %c0_i32, %c0_i32_0, %c0_i32_1 : i32, i32, i32
  }
  func.func @transform_17(%arg0: i32) -> (i32, i32) {
    %c0_i32 = arith.constant 0 : i32
    %c0_i32_0 = arith.constant 0 : i32
    %c0_i32_1 = arith.constant 0 : i32
    return %c0_i32, %c0_i32_0 : i32, i32
  }
  func.func @transform_18(%arg0: i32) -> (i32, i32) {
    %c0_i32 = arith.constant 0 : i32
    %c0_i32_0 = arith.constant 0 : i32
    %c0_i32_1 = arith.constant 0 : i32
    return %c0_i32, %c0_i32_0 : i32, i32
  }
  func.func @transform_19(%arg0: i32) -> (i32, i32) {
    %c0_i32 = arith.constant 0 : i32
    %c0_i32_0 = arith.constant 0 : i32
    %c0_i32_1 = arith.constant 0 : i32
    return %c0_i32, %c0_i32_0 : i32, i32
  }
  func.func @transform_20(%arg0: i32) -> (i32, i32) {
    %c0_i32 = arith.constant 0 : i32
    %c0_i32_0 = arith.constant 0 : i32
    %c0_i32_1 = arith.constant 0 : i32
    return %c0_i32, %c0_i32_0 : i32, i32
  }
  func.func @transform_21(%arg0: i32) -> (i32, i32) {
    %c0_i32 = arith.constant 0 : i32
    %c0_i32_0 = arith.constant 0 : i32
    %c0_i32_1 = arith.constant 0 : i32
    return %c0_i32, %c0_i32_0 : i32, i32
  }
  func.func @transform_22(%arg0: i32) -> (i32, i32, i32) {
    %c0_i32 = arith.constant 0 : i32
    %c0_i32_0 = arith.constant 0 : i32
    %c0_i32_1 = arith.constant 0 : i32
    %c0_i32_2 = arith.constant 0 : i32
    return %c0_i32, %c0_i32_0, %c0_i32_1 : i32, i32, i32
  }
  func.func @transform_23(%arg0: i32) -> (i32, i32) {
    %c0_i32 = arith.constant 0 : i32
    %c0_i32_0 = arith.constant 0 : i32
    %c0_i32_1 = arith.constant 0 : i32
    return %c0_i32, %c0_i32_0 : i32, i32
  }
  func.func @transform_24(%arg0: i32) -> (i32, i32) {
    %c0_i32 = arith.constant 0 : i32
    %c0_i32_0 = arith.constant 0 : i32
    %c0_i32_1 = arith.constant 0 : i32
    return %c0_i32, %c0_i32_0 : i32, i32
  }
  func.func @transform_25(%arg0: i32) -> (i32, i32) {
    %c0_i32 = arith.constant 0 : i32
    %c0_i32_0 = arith.constant 0 : i32
    %c0_i32_1 = arith.constant 0 : i32
    return %c0_i32, %c0_i32_0 : i32, i32
  }
}

</mosaic_0001>

<bundles_post_ra>
// kernel: tile.6
= control target key start
LH: loop header
LB: loop body
LE: loop exit
PB: predicated region body
PF: predicated region fallthrough
CT: control target
= control target key end

     0   :  { %s28_s0 = inlined_call_operand.vmem [shape: f32[16], index: 0, kind: input, shape index: {}]   ;;  %s29_s1 = inlined_call_operand.vmem [shape: f32[16,16], index: 1, kind: output, shape index: {}]  }
   0x1   :  { %v4_v0 = vld [vmem:[%s28_s0] ss:$0 sm:$0xff] }
   0x2   :  { %5 = vst [vmem:[%s29_s1] sm:$0xff] %v4_v0  ;;  %8 = vst [vmem:[%s29_s1 + $0x8] sm:$0xff] %v4_v0 }

// kernel: tile.7
= control target key start
LH: loop header
LB: loop body
LE: loop exit
PB: predicated region body
PF: predicated region fallthrough
CT: control target
= control target key end

     0   :  { %s7_s6 = smov 3  ;;  %s21_s9 = smov 3  ;;  %vm4_vm0 = vcmask 130048   ;;  %vm11_vm1 = vcmask 1048448   ;;  %vm18_vm2 = vcmask 917248   ;;  %vm25_vm3 = vcmask 786048   ;;  %s128_s0 = inlined_call_operand.vmem [shape: f32[16,16], index: 0, kind: input, shape index: {}]   ;;  %s129_s1 = inlined_call_operand.vmem [shape: f32[1,256], index: 1, kind: output, shape index: {}]  }
   0x1   :  { %v66_v0 = vld [vmem:[%s128_s0 + $0x7] ss:$8 sm:%s7_s6]   ;;  %s81_s10 = smov 112   ;;  %v68_v1 = vld [vmem:[%s128_s0 + $0x5] ss:$8 sm:%s21_s9]   ;;  %s14_s13 = smov 3 }
   0x2   :  { %9 = vrot.lane.b32.xlu0 %v66_v0, %s81_s10  ;;  %s82_s14 = smov 80   ;;  %v67_v2 = vld [vmem:[%s128_s0 + $0x6] ss:$8 sm:%s14_s13]   ;;  %s28_s17 = smov 3  ;;  %vm32_vm4 = vcmask 654848   ;;  %vm39_vm5 = vcmask 523648  }
   0x3   :  { %23 = vrot.lane.b32.xlu1 %v68_v1, %s82_s14  ;;  %v69_v3 = vld [vmem:[%s128_s0 + $0x4] ss:$8 sm:%s28_s17]   ;;  %s35_s20 = smov 3  ;;  %s42_s21 = smov 3  ;;  %vm46_vm6 = vcmask 392448   ;;  %vm53_vm7 = vcmask 261248  }
   0x4   :  { %s83_s22 = smov 96   ;;  %s84_s23 = smov 64   ;;  %v70_v4 = vld [vmem:[%s128_s0 + $0x3] ss:$8 sm:%s35_s20]   ;;  %v71_v5 = vld [vmem:[%s128_s0 + $0x2] ss:$8 sm:%s42_s21]  }
   0x5   :  { %s2_s26 = smov 3  ;;  %s49_s29 = smov 3 }
   0x6   :  { %16 = vrot.lane.b32.xlu0 %v67_v2, %s83_s22  ;;  %v3_v6 = vld [vmem:[%s128_s0] ss:$8 sm:%s2_s26]   ;;  %s85_s3 = smov 48   ;;  %s86_s4 = smov 32  }
   0x7   :  { %30 = vrot.lane.b32.xlu1 %v69_v3, %s84_s23  ;;  %5 = vst.msk [vmem:[#allocation0] ss:$8 sm:$0x3] %vm4_vm0, %v3_v6   ;;  %v72_v7 = vld [vmem:[%s128_s0 + $0x1] ss:$8 sm:%s49_s29]   ;;  %s87_s0 = smov 16  }
   0xa   :  { %37 = vrot.lane.b32.xlu0 %v70_v4, %s85_s3 }
   0xb   :  { %44 = vrot.lane.b32.xlu1 %v71_v5, %s86_s4 }
   0xe   :  { %51 = vrot.lane.b32.xlu0 %v72_v7, %s87_s0 }
  0x74   :  { %v10_v8 = vpop.permute.xlu0 %9  }
  0x75   :  { %12 = vst.msk [vmem:[#allocation0] ss:$8 sm:$0x3] %vm11_vm1, %v10_v8   ;;  %v24_v9 = vpop.permute.xlu1 %23  }
  0x78   :  { %v17_v10 = vpop.permute.xlu0 %16  }
  0x79   :  { %19 = vst.msk [vmem:[#allocation0] ss:$8 sm:$0x3] %vm18_vm2, %v17_v10   ;;  %v31_v11 = vpop.permute.xlu1 %30  }
  0x7a   :  { %26 = vst.msk [vmem:[#allocation0] ss:$8 sm:$0x3] %vm25_vm3, %v24_v9  }
  0x7b   :  { %33 = vst.msk [vmem:[#allocation0] ss:$8 sm:$0x3] %vm32_vm4, %v31_v11  }
  0x7c   :  { %v38_v12 = vpop.permute.xlu0 %37  }
  0x7d   :  { %40 = vst.msk [vmem:[#allocation0] ss:$8 sm:$0x3] %vm39_vm5, %v38_v12   ;;  %v45_v13 = vpop.permute.xlu1 %44  }
  0x7e   :  { %47 = vst.msk [vmem:[#allocation0] ss:$8 sm:$0x3] %vm46_vm6, %v45_v13  }
  0x80   :  { %v52_v14 = vpop.permute.xlu0 %51  }
  0x81   :  { %54 = vst.msk [vmem:[#allocation0] ss:$8 sm:$0x3] %vm53_vm7, %v52_v14  }
  0x88   :  { %v58_v15 = vld [vmem:[#allocation0] sm:$0x1]  ;;  %v62_v16 = vld [vmem:[#allocation0 + $0x8] sm:$0x1] }
  0x89   :  { %60 = vst [vmem:[%s129_s1] sm:$0x1] %v58_v15  ;;  %73 = vst [vmem:[%s129_s1 + $0x1] sm:$0x1] %v62_v16 }

// kernel: _lambda_.1
= control target key start
LH: loop header
LB: loop body
LE: loop exit
PB: predicated region body
PF: predicated region fallthrough
CT: control target
= control target key end

     0   :  { %vm127_vm0 = vcmask 523264   ;;  %vm938_vm9 = vcmask 261120   ;;  %vm2406_vm10 = vcmask 1040384   ;;  %vm2521_vm15 = vcmask 130048   ;;  %s14048_s0 = inlined_call_operand.vmem [shape: bf16[64,128], index: 0, kind: input, shape index: {}]   ;;  %s14049_s1 = inlined_call_operand.vmem [shape: bf16[4,32,64], index: 1, kind: input, shape index: {}]   ;;  %s14050_s2 = inlined_call_operand.vmem [shape: bf16[512,256], index: 2, kind: input, shape index: {}]   ;;  %s14051_s4 = inlined_call_operand.vmem [shape: bf16[4,16,32], index: 4, kind: input, shape index: {}]   ;;  %s14052_s5 = inlined_call_operand.vmem [shape: bf16[1024,256], index: 5, kind: input, shape index: {}]   ;;  %s14053_s3 = inlined_call_operand.vmem [shape: f32[1,256], index: 3, kind: input, shape index: {}]   ;;  %s14054_s8 = inlined_call_operand.vmem [shape: f32[256,32], index: 8, kind: input, shape index: {}]   ;;  %s14055_s9 = inlined_call_operand.vmem [shape: f32[32,256], index: 9, kind: input, shape index: {}]   ;;  %s14056_s6 = inlined_call_operand.vmem [shape: f32[1,32], index: 6, kind: input, shape index: {}]   ;;  %s14057_s7 = inlined_call_operand.vmem [shape: f32[1,32], index: 7, kind: input, shape index: {}]   ;;  %s14058_s11 = inlined_call_operand.vmem [shape: bf16[1024,256], index: 11, kind: input, shape index: {}]   ;;  %s14059_s10 = inlined_call_operand.vmem [shape: bf16[4,8,16], index: 10, kind: input, shape index: {}]   ;;  %s14060_s14 = inlined_call_operand.vmem [shape: f32[256,64], index: 14, kind: input, shape index: {}]   ;;  %s14061_s15 = inlined_call_operand.vmem [shape: f32[64,256], index: 15, kind: input, shape index: {}]   ;;  %s14062_s12 = inlined_call_operand.vmem [shape: f32[1,64], index: 12, kind: input, shape index: {}]   ;;  %s14063_s13 = inlined_call_operand.vmem [shape: f32[1,64], index: 13, kind: input, shape index: {}]   ;;  %s14064_s17 = inlined_call_operand.vmem [shape: bf16[1024,384], index: 17, kind: input, shape index: {}]   ;;  %s14065_s16 = inlined_call_operand.vmem [shape: bf16[4,6,8], index: 16, kind: input, shape index: {}]   ;;  %s14066_s20 = inlined_call_operand.vmem [shape: f32[384,128], index: 20, kind: input, shape index: {}]   ;;  %s14067_s21 = inlined_call_operand.vmem [shape: f32[128,384], index: 21, kind: input, shape index: {}]   ;;  %s14068_s18 = inlined_call_operand.vmem [shape: f32[1,128], index: 18, kind: input, shape index: {}]   ;;  %s14069_s19 = inlined_call_operand.vmem [shape: f32[1,128], index: 19, kind: input, shape index: {}]   ;;  %s14070_s23 = inlined_call_operand.vmem [shape: bf16[1536,128], index: 23, kind: input, shape index: {}]   ;;  %s14071_s22 = inlined_call_operand.vmem [shape: bf16[4,4,6], index: 22, kind: input, shape index: {}]   ;;  %s14072_s24 = inlined_call_operand.vmem [shape: f32[1,128], index: 24, kind: input, shape index: {}]   ;;  %s14073_s25 = inlined_call_operand.vmem [shape: f32[8,128], index: 25, kind: output, shape index: {}]  }
   0x1   :  { %14083 = sst [smem:[#allocation2_spill]] %s14048_s0 }
   0x2   :  { %14084 = sst [smem:[#allocation3_spill]] %s14049_s1 }
   0x3   :  { %14085 = sst [smem:[#allocation4_spill]] %s14050_s2  ;;  %s14094_s27 = sld [smem:[#allocation3_spill]] }
   0x4   :  { %14086 = sst [smem:[#allocation5_spill]] %s14051_s4 }
   0x5   :  { %14087 = sst [smem:[#allocation6_spill]] %s14052_s5  ;;  %s14095_s5 = sld [smem:[#allocation4_spill]] }
   0x6   :  { %14088 = sst [smem:[#allocation7_spill]] %s14053_s3 }
   0x7   :  { %14089 = sst [smem:[#allocation8_spill]] %s14054_s8  ;;  %s14093_s8 = sld [smem:[#allocation2_spill]] }
   0x8   :  { %14090 = sst [smem:[#allocation9_spill]] %s14055_s9  ;;  %s14096_s30 = sld [smem:[#allocation7_spill]] }
   0x9   :  { %14091 = sst [smem:[#allocation10_spill]] %s14056_s6  ;;  %v9920_v3 = vld [vmem:[%s14094_s27] sm:$0xff]   ;;  %v9921_v4 = vld [vmem:[%s14094_s27 + $0x10] sm:$0xff]   ;;  %v9922_v6 = vld [vmem:[%s14094_s27 + $0x8] sm:$0xff]   ;;  %s14099_s3 = sld [smem:[#allocation8_spill]] }
   0xa   :  { %14092 = sst [smem:[#allocation11_spill]] %s14057_s7  ;;  %9256 = vmatprep.mubr.msk.bf16.mxu0 %vm127_vm0, %v9920_v3  ;;  %9268 = vmatprep.mubr.msk.bf16.mxu1 %vm127_vm0, %v9921_v4  ;;  %v9923_v7 = vld [vmem:[%s14094_s27 + $0x18] sm:$0xff]   ;;  %v9924_v8 = vld [vmem:[%s14094_s27 + $0x30] sm:$0xff]   ;;  %v9925_v9 = vld [vmem:[%s14094_s27 + $0x20] sm:$0xff]   ;;  %s14098_s7 = sld [smem:[#allocation6_spill]] }
   0xb   :  { %v9930_v10 = vld [vmem:[%s14095_s5 + $0x4] ss:$8 sps:$4 sm:$0xff]   ;;  %v9926_v11 = vld [vmem:[%s14094_s27 + $0x38] sm:$0xff]   ;;  %v9928_v13 = vld [vmem:[%s14095_s5] ss:$8 sps:$4 sm:$0xff]   ;;  %s14100_s1 = sld [smem:[#allocation9_spill]] }
   0xc   :  { %v9927_v12 = vld [vmem:[%s14094_s27 + $0x28] sm:$0xff]   ;;  %v9933_v14 = vld [vmem:[%s14095_s5 + $0x14] ss:$8 sps:$4 sm:$0xff]   ;;  %v9931_v15 = vld [vmem:[%s14095_s5 + $0x10] ss:$8 sps:$4 sm:$0xff]   ;;  %s14101_s28 = sld [smem:[#allocation10_spill]] }
   0xd   :  { %v9916_v0 = vld [vmem:[%s14093_s8] sm:$0xff]   ;;  %v9917_v1 = vld [vmem:[%s14093_s8 + $0x8] sm:$0xff]   ;;  %v9918_v2 = vld [vmem:[%s14093_s8 + $0x10] sm:$0xff]   ;;  %s14102_s29 = sld [smem:[#allocation11_spill]] }
   0xe   :  { %9248 = vmatprep.subr.bf16.mxu0 %v9916_v0  ;;  %9260 = vmatprep.subr.bf16.mxu1 %v9916_v0  ;;  %v9919_v5 = vld [vmem:[%s14093_s8 + $0x18] sm:$0xff]   ;;  %v9936_v16 = vld [vmem:[%s14095_s5 + $0x24] ss:$8 sps:$4 sm:$0xff]   ;;  %v9934_v17 = vld [vmem:[%s14095_s5 + $0x20] ss:$8 sps:$4 sm:$0xff]   ;;  %s14097_s8 = sld [smem:[#allocation5_spill]] }
   0xf   :  { %9249 = vmatpush3.bf16.msra.mxu0 %v9916_v0  ;;  %9261 = vmatpush3.bf16.msra.mxu1 %v9916_v0  ;;  %v9939_v18 = vld [vmem:[%s14095_s5 + $0x34] ss:$8 sps:$4 sm:$0xff]   ;;  %v9937_v19 = vld [vmem:[%s14095_s5 + $0x30] ss:$8 sps:$4 sm:$0xff]   ;;  %v9942_v20 = vld [vmem:[%s14095_s5 + $0x44] ss:$8 sps:$4 sm:$0xff]  }
  0x10   :  { %9250 = vmatprep.subr.bf16.mxu0 %v9917_v1  ;;  %9262 = vmatprep.subr.bf16.mxu1 %v9917_v1  ;;  %v9940_v21 = vld [vmem:[%s14095_s5 + $0x40] ss:$8 sps:$4 sm:$0xff]   ;;  %v9945_v22 = vld [vmem:[%s14095_s5 + $0x54] ss:$8 sps:$4 sm:$0xff]   ;;  %v9943_v23 = vld [vmem:[%s14095_s5 + $0x50] ss:$8 sps:$4 sm:$0xff]  }
  0x11   :  { %v9948_v24 = vld [vmem:[%s14095_s5 + $0x64] ss:$8 sps:$4 sm:$0xff]   ;;  %v9946_v25 = vld [vmem:[%s14095_s5 + $0x60] ss:$8 sps:$4 sm:$0xff]   ;;  %v9951_v26 = vld [vmem:[%s14095_s5 + $0x74] ss:$8 sps:$4 sm:$0xff]  }
  0x12   :  { %v9949_v27 = vld [vmem:[%s14095_s5 + $0x70] ss:$8 sps:$4 sm:$0xff]   ;;  %v9954_v28 = vld [vmem:[%s14095_s5 + $0x84] ss:$8 sps:$4 sm:$0xff]   ;;  %v9952_v29 = vld [vmem:[%s14095_s5 + $0x80] ss:$8 sps:$4 sm:$0xff]  }
  0x13   :  { %9251 = vmatpush3.bf16.msra.mxu0 %v9917_v1  ;;  %9263 = vmatpush3.bf16.msra.mxu1 %v9917_v1  ;;  %v9957_v30 = vld [vmem:[%s14095_s5 + $0x94] ss:$8 sps:$4 sm:$0xff]   ;;  %v9955_v31 = vld [vmem:[%s14095_s5 + $0x90] ss:$8 sps:$4 sm:$0xff]   ;;  %v9960_v32 = vld [vmem:[%s14095_s5 + $0xa4] ss:$8 sps:$4 sm:$0xff]  }
  0x14   :  { %9252 = vmatprep.subr.bf16.mxu0 %v9918_v2  ;;  %9264 = vmatprep.subr.bf16.mxu1 %v9918_v2  ;;  %v9958_v33 = vld [vmem:[%s14095_s5 + $0xa0] ss:$8 sps:$4 sm:$0xff]   ;;  %v9963_v34 = vld [vmem:[%s14095_s5 + $0xb4] ss:$8 sps:$4 sm:$0xff]   ;;  %v9961_v35 = vld [vmem:[%s14095_s5 + $0xb0] ss:$8 sps:$4 sm:$0xff]  }
  0x15   :  { %v9966_v36 = vld [vmem:[%s14095_s5 + $0xc4] ss:$8 sps:$4 sm:$0xff]   ;;  %v9964_v37 = vld [vmem:[%s14095_s5 + $0xc0] ss:$8 sps:$4 sm:$0xff]   ;;  %v9969_v38 = vld [vmem:[%s14095_s5 + $0xd4] ss:$8 sps:$4 sm:$0xff]  }
  0x16   :  { %v9967_v39 = vld [vmem:[%s14095_s5 + $0xd0] ss:$8 sps:$4 sm:$0xff]   ;;  %v9972_v40 = vld [vmem:[%s14095_s5 + $0xe4] ss:$8 sps:$4 sm:$0xff]   ;;  %v9970_v41 = vld [vmem:[%s14095_s5 + $0xe0] ss:$8 sps:$4 sm:$0xff]  }
  0x17   :  { %9253 = vmatpush3.bf16.msra.mxu0 %v9918_v2  ;;  %9265 = vmatpush3.bf16.msra.mxu1 %v9918_v2  ;;  %v9975_v42 = vld [vmem:[%s14095_s5 + $0xf4] ss:$8 sps:$4 sm:$0xff]   ;;  %v9973_v43 = vld [vmem:[%s14095_s5 + $0xf0] ss:$8 sps:$4 sm:$0xff]   ;;  %v9978_v44 = vld [vmem:[%s14095_s5 + $0x104] ss:$8 sps:$4 sm:$0xff]  }
  0x18   :  { %9254 = vmatprep.subr.bf16.mxu0 %v9919_v5  ;;  %9266 = vmatprep.subr.bf16.mxu1 %v9919_v5  ;;  %v9976_v57 = vld [vmem:[%s14095_s5 + $0x100] ss:$8 sps:$4 sm:$0xff]   ;;  %v9981_v58 = vld [vmem:[%s14095_s5 + $0x114] ss:$8 sps:$4 sm:$0xff]   ;;  %v9979_v59 = vld [vmem:[%s14095_s5 + $0x110] ss:$8 sps:$4 sm:$0xff]  }
  0x19   :  { %v9984_v60 = vld [vmem:[%s14095_s5 + $0x124] ss:$8 sps:$4 sm:$0xff]   ;;  %v9982_v61 = vld [vmem:[%s14095_s5 + $0x120] ss:$8 sps:$4 sm:$0xff]   ;;  %v9987_v62 = vld [vmem:[%s14095_s5 + $0x134] ss:$8 sps:$4 sm:$0xff]  }
  0x1a   :  { %v9985_v63 = vld [vmem:[%s14095_s5 + $0x130] ss:$8 sps:$4 sm:$0xff]  }
  0x1b   :  { %9255 = vmatpush3.bf16.msra.mxu0 %v9919_v5  ;;  %9267 = vmatpush3.bf16.msra.mxu1 %v9919_v5 }
  0x1c   :  { %9284 = vmatprep.subr.bf16.mxu1 %v9916_v0  ;;  %9272 = vmatprep.subr.bf16.mxu0 %v9916_v0 }
  0x1e   :  { %9257 = vmatmul.mubr.msk.bf16.vlgmr.msra.gmra.mrb[0].mxu0 %vm127_vm0, %v9922_v6  ;;  %9269 = vmatmul.mubr.msk.bf16.vlgmr.msra.gmra.mrb[0].mxu1 %vm127_vm0, %v9923_v7 }
  0x1f   :  { %9285 = vmatpush3.bf16.msra.mxu1 %v9916_v0  ;;  %9273 = vmatpush3.bf16.msra.mxu0 %v9916_v0 }
  0x20   :  { %9286 = vmatprep.subr.bf16.mxu1 %v9917_v1  ;;  %9274 = vmatprep.subr.bf16.mxu0 %v9917_v1 }
  0x21   :  { %9292 = vmatprep.mubr.msk.bf16.mxu1 %vm127_vm0, %v9924_v8  ;;  %9280 = vmatprep.mubr.msk.bf16.mxu0 %vm127_vm0, %v9925_v9 }
  0x23   :  { %9287 = vmatpush3.bf16.msra.mxu1 %v9917_v1  ;;  %9275 = vmatpush3.bf16.msra.mxu0 %v9917_v1 }
  0x24   :  { %9288 = vmatprep.subr.bf16.mxu1 %v9918_v2  ;;  %9276 = vmatprep.subr.bf16.mxu0 %v9918_v2 }
  0x27   :  { %9289 = vmatpush3.bf16.msra.mxu1 %v9918_v2  ;;  %9277 = vmatpush3.bf16.msra.mxu0 %v9918_v2  ;;  %v9990_v2 = vld [vmem:[%s14095_s5 + $0x144] ss:$8 sps:$4 sm:$0xff]  }
  0x28   :  { %9290 = vmatprep.subr.bf16.mxu1 %v9919_v5  ;;  %9278 = vmatprep.subr.bf16.mxu0 %v9919_v5 }
  0x2b   :  { %9291 = vmatpush3.bf16.msra.mxu1 %v9919_v5  ;;  %9279 = vmatpush3.bf16.msra.mxu0 %v9919_v5 }
  0x2c   :  { %797 = vmatprep.subr.bf16.mxu0 %v9930_v10 }
  0x2e   :  { %9293 = vmatmul.mubr.msk.bf16.vlgmr.msra.gmra.mrb[4].mxu1 %vm127_vm0, %v9926_v11  ;;  %9281 = vmatmul.mubr.msk.bf16.vlgmr.msra.gmra.mrb[4].mxu0 %vm127_vm0, %v9927_v12  ;;  %v9988_v11 = vld [vmem:[%s14095_s5 + $0x140] ss:$8 sps:$4 sm:$0xff]  }
  0x2f   :  { %798 = vmatpush1.bf16.msra.mxu0 %v9928_v13 }
  0x30   :  { %799 = vmatprep.subr.bf16.mxu0 %v9933_v14  ;;  %v9993_v14 = vld [vmem:[%s14095_s5 + $0x154] ss:$8 sps:$4 sm:$0xff]  }
  0x33   :  { %800 = vmatpush1.bf16.msra.mxu0 %v9931_v15  ;;  %v9991_v15 = vld [vmem:[%s14095_s5 + $0x150] ss:$8 sps:$4 sm:$0xff]  }
  0x34   :  { %801 = vmatprep.subr.bf16.mxu0 %v9936_v16  ;;  %v9996_v16 = vld [vmem:[%s14095_s5 + $0x164] ss:$8 sps:$4 sm:$0xff]  }
  0x37   :  { %802 = vmatpush1.bf16.msra.mxu0 %v9934_v17  ;;  %v9994_v17 = vld [vmem:[%s14095_s5 + $0x160] ss:$8 sps:$4 sm:$0xff]  }
  0x38   :  { %803 = vmatprep.subr.bf16.mxu0 %v9939_v18  ;;  %v9999_v18 = vld [vmem:[%s14095_s5 + $0x174] ss:$8 sps:$4 sm:$0xff]  }
  0x3b   :  { %804 = vmatpush1.bf16.msra.mxu0 %v9937_v19  ;;  %v9997_v19 = vld [vmem:[%s14095_s5 + $0x170] ss:$8 sps:$4 sm:$0xff]  }
  0x3c   :  { %805 = vmatprep.subr.bf16.mxu0 %v9942_v20  ;;  %v10002_v20 = vld [vmem:[%s14095_s5 + $0x184] ss:$8 sps:$4 sm:$0xff]  }
  0x3f   :  { %806 = vmatpush1.bf16.msra.mxu0 %v9940_v21  ;;  %v10000_v21 = vld [vmem:[%s14095_s5 + $0x180] ss:$8 sps:$4 sm:$0xff]  }
  0x40   :  { %807 = vmatprep.subr.bf16.mxu0 %v9945_v22  ;;  %v10005_v22 = vld [vmem:[%s14095_s5 + $0x194] ss:$8 sps:$4 sm:$0xff]  }
  0x43   :  { %808 = vmatpush1.bf16.msra.mxu0 %v9943_v23  ;;  %v10003_v23 = vld [vmem:[%s14095_s5 + $0x190] ss:$8 sps:$4 sm:$0xff]  }
  0x44   :  { %809 = vmatprep.subr.bf16.mxu0 %v9948_v24  ;;  %v10008_v24 = vld [vmem:[%s14095_s5 + $0x1a4] ss:$8 sps:$4 sm:$0xff]  }
  0x47   :  { %810 = vmatpush1.bf16.msra.mxu0 %v9946_v25  ;;  %v10006_v25 = vld [vmem:[%s14095_s5 + $0x1a0] ss:$8 sps:$4 sm:$0xff]  }
  0x48   :  { %811 = vmatprep.subr.bf16.mxu0 %v9951_v26  ;;  %v10011_v26 = vld [vmem:[%s14095_s5 + $0x1b4] ss:$8 sps:$4 sm:$0xff]  }
  0x4b   :  { %812 = vmatpush1.bf16.msra.mxu0 %v9949_v27  ;;  %v10009_v27 = vld [vmem:[%s14095_s5 + $0x1b0] ss:$8 sps:$4 sm:$0xff]  }
  0x4c   :  { %813 = vmatprep.subr.bf16.mxu0 %v9954_v28  ;;  %v10014_v28 = vld [vmem:[%s14095_s5 + $0x1c4] ss:$8 sps:$4 sm:$0xff]  }
  0x4f   :  { %814 = vmatpush1.bf16.msra.mxu0 %v9952_v29  ;;  %v10012_v29 = vld [vmem:[%s14095_s5 + $0x1c0] ss:$8 sps:$4 sm:$0xff]  }
  0x50   :  { %815 = vmatprep.subr.bf16.mxu0 %v9957_v30  ;;  %v10017_v30 = vld [vmem:[%s14095_s5 + $0x1d4] ss:$8 sps:$4 sm:$0xff]  }
  0x53   :  { %816 = vmatpush1.bf16.msra.mxu0 %v9955_v31  ;;  %v10015_v31 = vld [vmem:[%s14095_s5 + $0x1d0] ss:$8 sps:$4 sm:$0xff]  }
  0x54   :  { %817 = vmatprep.subr.bf16.mxu0 %v9960_v32  ;;  %v10020_v32 = vld [vmem:[%s14095_s5 + $0x1e4] ss:$8 sps:$4 sm:$0xff]  }
  0x57   :  { %818 = vmatpush1.bf16.msra.mxu0 %v9958_v33  ;;  %v10018_v33 = vld [vmem:[%s14095_s5 + $0x1e0] ss:$8 sps:$4 sm:$0xff]  }
  0x58   :  { %819 = vmatprep.subr.bf16.mxu0 %v9963_v34  ;;  %v10023_v34 = vld [vmem:[%s14095_s5 + $0x1f4] ss:$8 sps:$4 sm:$0xff]  }
  0x5b   :  { %820 = vmatpush1.bf16.msra.mxu0 %v9961_v35  ;;  %v10021_v35 = vld [vmem:[%s14095_s5 + $0x1f0] ss:$8 sps:$4 sm:$0xff]  }
  0x5c   :  { %821 = vmatprep.subr.bf16.mxu0 %v9966_v36  ;;  %v14081_v36 = vmov 0  }
  0x5d   :  { %974 = vmatprep.mubr.bf16.mxu1 %v14081_v36 }
  0x5f   :  { %822 = vmatpush1.bf16.msra.mxu0 %v9964_v37  ;;  %v467_v37 = vlaneseq }
  0x60   :  { %823 = vmatprep.subr.bf16.mxu0 %v9969_v38 }
  0x61   :  { %v468_v38 = vshrl.u32 %v467_v37, 7  ;;  %v10054_v37 = vld [vmem:[%s14098_s7 + $0x84] ss:$8 sps:$4 sm:$0xff]  }
  0x63   :  { %824 = vmatpush1.bf16.msra.mxu0 %v9967_v39  ;;  %v11147_v39 = vsub.s32 0, %v468_v38 }
  0x64   :  { %825 = vmatprep.subr.bf16.mxu0 %v9972_v40  ;;  %v465_v40 = vld [vmem:[%s14096_s30] sm:$0x3] }
  0x67   :  { %826 = vmatpush1.bf16.msra.mxu0 %v9970_v41  ;;  %v11152_v41 = vsub.s32 1, %v468_v38  ;;  %v10052_v38 = vld [vmem:[%s14098_s7 + $0x80] ss:$8 sps:$4 sm:$0xff]  }
  0x68   :  { %827 = vmatprep.subr.bf16.mxu0 %v9975_v42  ;;  %v470_v42 = vrot.slane %v465_v40, %v11147_v39 }
  0x6b   :  { %828 = vmatpush1.bf16.msra.mxu0 %v9973_v43  ;;  %v474_v43 = vrot.slane %v465_v40, %v11152_v41  ;;  %v10057_v40 = vld [vmem:[%s14098_s7 + $0x94] ss:$8 sps:$4 sm:$0xff]  }
  0x6c   :  { %850 = vmatprep.subr.bf16.mxu0 %v9978_v44 }
  0xf1   :  { %v9258_v45 = vpop.f32.mrb[0].mxu0  ;;  %v9270_v46 = vpop.f32.mrb[0].mxu1 }
  0xf2   :  { %v168_v47 = vpop.f32.mrb[1].mxu0  ;;  %v240_v48 = vpop.f32.mrb[1].mxu1 }
  0xf3   :  { %v9259_v49 = vpop.f32.mrb[2].mxu0  ;;  %v9271_v50 = vpop.f32.mrb[2].mxu1 }
  0xf4   :  { %v184_v51 = vpack.c.bf16 %v9259_v49, %v9258_v45  ;;  %v256_v52 = vpack.c.bf16 %v9271_v50, %v9270_v46  ;;  %v171_v53 = vpop.f32.mrb[3].mxu0  ;;  %v243_v54 = vpop.f32.mrb[3].mxu1 }
  0xf5   :  { %v183_v55 = vpack.c.bf16 %v171_v53, %v168_v47  ;;  %v255_v56 = vpack.c.bf16 %v243_v54, %v240_v48 }
  0xf7   :  { %829 = vmatprep.mubr.bf16.mxu0 %v255_v56 }
  0xf8   :  { %830 = vmatmul.mubr.bf16.vlgmr.msra.gmra.mrb[8].mxu0 %v183_v55 }
  0xf9   :  { %851 = vmatpush1.bf16.msra.mxu0 %v9976_v57  ;;  %839 = vmatprep.mubr.bf16.mxu0 %v256_v52 }
  0xfa   :  { %852 = vmatprep.subr.bf16.mxu0 %v9981_v58 }
  0xfd   :  { %853 = vmatpush1.bf16.msra.mxu0 %v9979_v59 }
  0xfe   :  { %854 = vmatprep.subr.bf16.mxu0 %v9984_v60 }
 0x100   :  { %840 = vmatmul.mubr.bf16.gmra.mrb[12].mxu0 %v184_v51 }
 0x101   :  { %855 = vmatpush1.bf16.msra.mxu0 %v9982_v61  ;;  %v11068_v0 = vpop.f32.mrb[4].mxu1  ;;  %v11070_v1 = vpop.f32.mrb[4].mxu0 }
 0x102   :  { %856 = vmatprep.subr.bf16.mxu0 %v9987_v62  ;;  %v384_v3 = vpop.f32.mrb[5].mxu1  ;;  %v312_v4 = vpop.f32.mrb[5].mxu0 }
 0x103   :  { %v9295_v5 = vpop.f32.mrb[6].mxu1  ;;  %v9283_v6 = vpop.f32.mrb[6].mxu0 }
 0x104   :  { %v400_v7 = vpack.c.bf16 %v9295_v5, %v11068_v0  ;;  %v328_v8 = vpack.c.bf16 %v9283_v6, %v11070_v1  ;;  %v387_v9 = vpop.f32.mrb[7].mxu1  ;;  %v315_v10 = vpop.f32.mrb[7].mxu0 }
 0x105   :  { %857 = vmatpush1.bf16.msra.mxu0 %v9985_v63  ;;  %v399_v12 = vpack.c.bf16 %v387_v9, %v384_v3  ;;  %v327_v13 = vpack.c.bf16 %v315_v10, %v312_v4 }
 0x106   :  { %858 = vmatprep.subr.bf16.mxu0 %v9990_v2 }
 0x107   :  { %882 = vmatprep.mubr.bf16.mxu0 %v399_v12 }
 0x109   :  { %859 = vmatpush1.bf16.msra.mxu0 %v9988_v11 }
 0x10a   :  { %860 = vmatprep.subr.bf16.mxu0 %v9993_v14 }
 0x10d   :  { %861 = vmatpush1.bf16.msra.mxu0 %v9991_v15 }
 0x10e   :  { %862 = vmatprep.subr.bf16.mxu0 %v9996_v16  ;;  %v10024_v16 = vld [vmem:[%s14097_s8] sm:$0xff]  }
 0x111   :  { %863 = vmatpush1.bf16.msra.mxu0 %v9994_v17  ;;  %v10025_v17 = vld [vmem:[%s14097_s8 + $0x8] sm:$0xff]  }
 0x112   :  { %864 = vmatprep.subr.bf16.mxu0 %v9999_v18  ;;  %v10026_v18 = vld [vmem:[%s14097_s8 + $0x10] sm:$0xff]  }
 0x115   :  { %865 = vmatpush1.bf16.msra.mxu0 %v9997_v19  ;;  %v10030_v19 = vld [vmem:[%s14098_s7 + $0x4] ss:$8 sps:$4 sm:$0xff]  }
 0x116   :  { %866 = vmatprep.subr.bf16.mxu0 %v10002_v20  ;;  %v10027_v20 = vld [vmem:[%s14097_s8 + $0x18] sm:$0xff]  }
 0x119   :  { %867 = vmatpush1.bf16.msra.mxu0 %v10000_v21  ;;  %v10028_v21 = vld [vmem:[%s14098_s7] ss:$8 sps:$4 sm:$0xff]  }
 0x11a   :  { %868 = vmatprep.subr.bf16.mxu0 %v10005_v22  ;;  %v10033_v22 = vld [vmem:[%s14098_s7 + $0x14] ss:$8 sps:$4 sm:$0xff]  }
 0x11d   :  { %869 = vmatpush1.bf16.msra.mxu0 %v10003_v23  ;;  %v10031_v23 = vld [vmem:[%s14098_s7 + $0x10] ss:$8 sps:$4 sm:$0xff]  }
 0x11e   :  { %870 = vmatprep.subr.bf16.mxu0 %v10008_v24  ;;  %v10036_v24 = vld [vmem:[%s14098_s7 + $0x24] ss:$8 sps:$4 sm:$0xff]  }
 0x121   :  { %871 = vmatpush1.bf16.msra.mxu0 %v10006_v25  ;;  %v10034_v25 = vld [vmem:[%s14098_s7 + $0x20] ss:$8 sps:$4 sm:$0xff]  }
 0x122   :  { %872 = vmatprep.subr.bf16.mxu0 %v10011_v26  ;;  %v10039_v26 = vld [vmem:[%s14098_s7 + $0x34] ss:$8 sps:$4 sm:$0xff]  }
 0x125   :  { %873 = vmatpush1.bf16.msra.mxu0 %v10009_v27  ;;  %v10037_v27 = vld [vmem:[%s14098_s7 + $0x30] ss:$8 sps:$4 sm:$0xff]  }
 0x126   :  { %874 = vmatprep.subr.bf16.mxu0 %v10014_v28  ;;  %v10042_v28 = vld [vmem:[%s14098_s7 + $0x44] ss:$8 sps:$4 sm:$0xff]  }
 0x129   :  { %875 = vmatpush1.bf16.msra.mxu0 %v10012_v29  ;;  %v10040_v29 = vld [vmem:[%s14098_s7 + $0x40] ss:$8 sps:$4 sm:$0xff]  }
 0x12a   :  { %876 = vmatprep.subr.bf16.mxu0 %v10017_v30  ;;  %v10045_v30 = vld [vmem:[%s14098_s7 + $0x54] ss:$8 sps:$4 sm:$0xff]  }
 0x12d   :  { %877 = vmatpush1.bf16.msra.mxu0 %v10015_v31  ;;  %v10043_v31 = vld [vmem:[%s14098_s7 + $0x50] ss:$8 sps:$4 sm:$0xff]  }
 0x12e   :  { %878 = vmatprep.subr.bf16.mxu0 %v10020_v32  ;;  %v10048_v32 = vld [vmem:[%s14098_s7 + $0x64] ss:$8 sps:$4 sm:$0xff]  }
 0x131   :  { %879 = vmatpush1.bf16.msra.mxu0 %v10018_v33  ;;  %v10046_v33 = vld [vmem:[%s14098_s7 + $0x60] ss:$8 sps:$4 sm:$0xff]  }
 0x132   :  { %880 = vmatprep.subr.bf16.mxu0 %v10023_v34  ;;  %v10051_v34 = vld [vmem:[%s14098_s7 + $0x74] ss:$8 sps:$4 sm:$0xff]  }
 0x135   :  { %881 = vmatpush1.bf16.msra.mxu0 %v10021_v35  ;;  %v10049_v35 = vld [vmem:[%s14098_s7 + $0x70] ss:$8 sps:$4 sm:$0xff]  }
 0x138   :  { %883 = vmatmul.mubr.bf16.vlgmr.msra.gmra.mrb[8].mxu0 %v327_v13 }
 0x139   :  { %892 = vmatprep.mubr.bf16.mxu0 %v400_v7 }
 0x140   :  { %893 = vmatmul.mubr.bf16.gmra.mrb[12].mxu0 %v328_v8 }
 0x20b   :  { %v884_v44 = vpop.f32.mrb[8].mxu0 }
 0x20c   :  { %v9860_v45 = vadd.f32 %v884_v44, %v470_v42  ;;  %v886_v46 = vpop.f32.mrb[9].mxu0  ;;  %v10058_v44 = vld [vmem:[%s14098_s7 + $0xa0] ss:$8 sps:$4 sm:$0xff]  }
 0x20d   :  { %v9861_v47 = vadd.f32 %v886_v46, %v474_v43  ;;  %v888_v48 = vpop.f32.mrb[10].mxu0  ;;  %v10061_v46 = vld [vmem:[%s14098_s7 + $0xb0] ss:$8 sps:$4 sm:$0xff]  }
 0x20e   :  { %v911_v49 = vmul.f32 0.2, %v9860_v45  ;;  %v9862_v50 = vadd.f32 %v888_v48, %v470_v42  ;;  %v890_v51 = vpop.f32.mrb[11].mxu0  ;;  %vm903_vm1 = vcmp.ge.f32.partialorder %v9860_v45, 0.0  ;;  %v10064_v48 = vld [vmem:[%s14098_s7 + $0xc0] ss:$8 sps:$4 sm:$0xff]  }
 0x20f   :  { %v912_v52 = vmul.f32 0.2, %v9861_v47  ;;  %v9863_v53 = vadd.f32 %v890_v51, %v474_v43  ;;  %vm904_vm2 = vcmp.ge.f32.partialorder %v9861_v47, 0.0  ;;  %v10072_v51 = vld [vmem:[%s14098_s7 + $0xe4] ss:$8 sps:$4 sm:$0xff]  }
 0x210   :  { %vm905_vm3 = vcmp.ge.f32.partialorder %v9862_v50, 0.0  ;;  %v913_v54 = vmul.f32 0.2, %v9862_v50  ;;  %v919_v56 = vsel %vm903_vm1, %v9860_v45, %v911_v49  ;;  %v10063_v45 = vld [vmem:[%s14098_s7 + $0xb4] ss:$8 sps:$4 sm:$0xff]  }
 0x211   :  { %vm906_vm4 = vcmp.ge.f32.partialorder %v9863_v53, 0.0  ;;  %v914_v55 = vmul.f32 0.2, %v9863_v53  ;;  %v920_v58 = vsel %vm904_vm2, %v9861_v47, %v912_v52  ;;  %v10066_v47 = vld [vmem:[%s14098_s7 + $0xc4] ss:$8 sps:$4 sm:$0xff]   ;;  %vm4063_vm2 = vcmask 1043456  }
 0x212   :  { %v921_v57 = vsel %vm905_vm3, %v9862_v50, %v913_v54  ;;  %v10069_v49 = vld [vmem:[%s14098_s7 + $0xd4] ss:$8 sps:$4 sm:$0xff]   ;;  %v10067_v50 = vld [vmem:[%s14098_s7 + $0xd0] ss:$8 sps:$4 sm:$0xff]   ;;  %v10070_v52 = vld [vmem:[%s14098_s7 + $0xe0] ss:$8 sps:$4 sm:$0xff]  }
 0x213   :  { %v927_v59 = vpack.c.bf16 %v921_v57, %v919_v56  ;;  %v922_v60 = vsel %vm906_vm4, %v9863_v53, %v914_v55  ;;  %v894_v61 = vpop.f32.mrb[12].mxu0  ;;  %v10075_v53 = vld [vmem:[%s14098_s7 + $0xf4] ss:$8 sps:$4 sm:$0xff]   ;;  %v10073_v54 = vld [vmem:[%s14098_s7 + $0xf0] ss:$8 sps:$4 sm:$0xff]   ;;  %vm4059_vm3 = vcmask 64512  }
 0x214   :  { %v928_v62 = vpack.c.bf16 %v922_v60, %v920_v58  ;;  %v9864_v63 = vadd.f32 %v894_v61, %v470_v42  ;;  %v896_v0 = vpop.f32.mrb[13].mxu0  ;;  %v10078_v55 = vld [vmem:[%s14098_s7 + $0x104] ss:$8 sps:$4 sm:$0xff]   ;;  %vm5959_vm4 = vcmask 1045504  }
 0x215   :  { %v9865_v1 = vadd.f32 %v896_v0, %v474_v43  ;;  %v898_v2 = vpop.f32.mrb[14].mxu0  ;;  %v10079_v0 = vld [vmem:[%s14098_s7 + $0x110] ss:$8 sps:$4 sm:$0xff]  }
 0x216   :  { %v915_v3 = vmul.f32 0.2, %v9864_v63  ;;  %v9866_v4 = vadd.f32 %v898_v2, %v470_v42  ;;  %v900_v5 = vpop.f32.mrb[15].mxu0  ;;  %942 = vmatprep.subr.bf16.mxu1 %v928_v62  ;;  %vm907_vm5 = vcmp.ge.f32.partialorder %v9864_v63, 0.0  ;;  %v10055_v42 = vld [vmem:[%s14098_s7 + $0x90] ss:$8 sps:$4 sm:$0xff]  }
 0x217   :  { %v916_v6 = vmul.f32 0.2, %v9865_v1  ;;  %v9867_v7 = vadd.f32 %v900_v5, %v474_v43  ;;  %943 = vmatpush1.bf16.msra.mxu1 %v927_v59  ;;  %vm908_vm6 = vcmp.ge.f32.partialorder %v9865_v1, 0.0  ;;  %v10060_v43 = vld [vmem:[%s14098_s7 + $0xa4] ss:$8 sps:$4 sm:$0xff]  }
 0x218   :  { %vm909_vm7 = vcmp.ge.f32.partialorder %v9866_v4, 0.0  ;;  %v917_v8 = vmul.f32 0.2, %v9866_v4  ;;  %v923_v10 = vsel %vm907_vm5, %v9864_v63, %v915_v3  ;;  %v10081_v63 = vld [vmem:[%s14098_s7 + $0x114] ss:$8 sps:$4 sm:$0xff]   ;;  %vm10773_vm5 = vmmov 0  }
 0x219   :  { %vm910_vm8 = vcmp.ge.f32.partialorder %v9867_v7, 0.0  ;;  %v918_v9 = vmul.f32 0.2, %v9867_v7  ;;  %v924_v12 = vsel %vm908_vm6, %v9865_v1, %v916_v6  ;;  %v10084_v2 = vld [vmem:[%s14098_s7 + $0x124] ss:$8 sps:$4 sm:$0xff]  }
 0x21a   :  { %v925_v11 = vsel %vm909_vm7, %v9866_v4, %v917_v8 }
 0x21b   :  { %v929_v13 = vpack.c.bf16 %v925_v11, %v923_v10  ;;  %v926_v14 = vsel %vm910_vm8, %v9867_v7, %v918_v9  ;;  %v10082_v7 = vld [vmem:[%s14098_s7 + $0x120] ss:$8 sps:$4 sm:$0xff]   ;;  %v10087_v9 = vld [vmem:[%s14098_s7 + $0x134] ss:$8 sps:$4 sm:$0xff]   ;;  %v10085_v10 = vld [vmem:[%s14098_s7 + $0x130] ss:$8 sps:$4 sm:$0xff]  }
 0x21c   :  { %v930_v15 = vpack.c.bf16 %v926_v14, %v924_v12  ;;  %v10090_v12 = vld [vmem:[%s14098_s7 + $0x144] ss:$8 sps:$4 sm:$0xff]  }
 0x21e   :  { %944 = vmatprep.subr.bf16.mxu1 %v930_v15 }
 0x21f   :  { %945 = vmatpush1.bf16.msra.mxu1 %v929_v13 }
 0x220   :  { %998 = vmatprep.subr.bf16.mxu1 %v928_v62 }
 0x222   :  { %8120 = vmatmul.mubr.msk.bf16.vlgmr.msra.gmra.mrb[8].mxu1 %vm938_vm9, %v10024_v16 }
 0x223   :  { %999 = vmatpush1.bf16.msra.mxu1 %v927_v59  ;;  %1030 = vmatprep.mubr.bf16.mxu1 %v14081_v36 }
 0x224   :  { %1000 = vmatprep.subr.bf16.mxu1 %v930_v15 }
 0x227   :  { %1001 = vmatpush1.bf16.msra.mxu1 %v929_v13 }
 0x228   :  { %1054 = vmatprep.subr.bf16.mxu1 %v928_v62 }
 0x22a   :  { %8124 = vmatmul.mubr.msk.bf16.vlgmr.msra.gmra.mrb[12].mxu1 %vm938_vm9, %v10025_v17  ;;  %v10088_v17 = vld [vmem:[%s14098_s7 + $0x140] ss:$8 sps:$4 sm:$0xff]  }
 0x22b   :  { %1055 = vmatpush1.bf16.msra.mxu1 %v927_v59  ;;  %1086 = vmatprep.mubr.bf16.mxu1 %v14081_v36 }
 0x22c   :  { %1056 = vmatprep.subr.bf16.mxu1 %v930_v15 }
 0x22f   :  { %1057 = vmatpush1.bf16.msra.mxu1 %v929_v13 }
 0x230   :  { %1110 = vmatprep.subr.bf16.mxu1 %v928_v62  ;;  %v10076_v62 = vld [vmem:[%s14098_s7 + $0x100] ss:$8 sps:$4 sm:$0xff]  }
 0x232   :  { %8128 = vmatmul.mubr.msk.bf16.vlgmr.msra.gmra.mrb[16].mxu1 %vm938_vm9, %v10026_v18 }
 0x233   :  { %1111 = vmatpush1.bf16.msra.mxu1 %v927_v59  ;;  %1142 = vmatprep.mubr.bf16.mxu1 %v14081_v36 }
 0x234   :  { %1112 = vmatprep.subr.bf16.mxu1 %v930_v15 }
 0x237   :  { %1113 = vmatpush1.bf16.msra.mxu1 %v929_v13 }
 0x238   :  { %1923 = vmatprep.subr.bf16.mxu1 %v10030_v19  ;;  %v10093_v19 = vld [vmem:[%s14098_s7 + $0x154] ss:$8 sps:$4 sm:$0xff]  }
 0x23a   :  { %8132 = vmatmul.mubr.msk.bf16.vlgmr.msra.gmra.mrb[20].mxu1 %vm938_vm9, %v10027_v20  ;;  %v10091_v20 = vld [vmem:[%s14098_s7 + $0x150] ss:$8 sps:$4 sm:$0xff]  }
 0x23b   :  { %1924 = vmatpush1.bf16.msra.mxu1 %v10028_v21 }
 0x23c   :  { %1925 = vmatprep.subr.bf16.mxu1 %v10033_v22  ;;  %v10096_v22 = vld [vmem:[%s14098_s7 + $0x164] ss:$8 sps:$4 sm:$0xff]  }
 0x23f   :  { %1926 = vmatpush1.bf16.msra.mxu1 %v10031_v23 }
 0x240   :  { %1927 = vmatprep.subr.bf16.mxu1 %v10036_v24 }
 0x243   :  { %1928 = vmatpush1.bf16.msra.mxu1 %v10034_v25 }
 0x244   :  { %1929 = vmatprep.subr.bf16.mxu1 %v10039_v26 }
 0x247   :  { %1930 = vmatpush1.bf16.msra.mxu1 %v10037_v27  ;;  %v10094_v27 = vld [vmem:[%s14098_s7 + $0x160] ss:$8 sps:$4 sm:$0xff]  }
 0x248   :  { %1931 = vmatprep.subr.bf16.mxu1 %v10042_v28 }
 0x24b   :  { %1932 = vmatpush1.bf16.msra.mxu1 %v10040_v29  ;;  %v10099_v29 = vld [vmem:[%s14098_s7 + $0x174] ss:$8 sps:$4 sm:$0xff]  }
 0x24c   :  { %1933 = vmatprep.subr.bf16.mxu1 %v10045_v30  ;;  %v10097_v30 = vld [vmem:[%s14098_s7 + $0x170] ss:$8 sps:$4 sm:$0xff]  }
 0x24f   :  { %1934 = vmatpush1.bf16.msra.mxu1 %v10043_v31  ;;  %v10102_v31 = vld [vmem:[%s14098_s7 + $0x184] ss:$8 sps:$4 sm:$0xff]  }
 0x250   :  { %1935 = vmatprep.subr.bf16.mxu1 %v10048_v32  ;;  %v10100_v32 = vld [vmem:[%s14098_s7 + $0x180] ss:$8 sps:$4 sm:$0xff]  }
 0x253   :  { %1936 = vmatpush1.bf16.msra.mxu1 %v10046_v33  ;;  %v10105_v33 = vld [vmem:[%s14098_s7 + $0x194] ss:$8 sps:$4 sm:$0xff]  }
 0x254   :  { %1937 = vmatprep.subr.bf16.mxu1 %v10051_v34  ;;  %v10103_v34 = vld [vmem:[%s14098_s7 + $0x190] ss:$8 sps:$4 sm:$0xff]  }
 0x257   :  { %1938 = vmatpush1.bf16.msra.mxu1 %v10049_v35  ;;  %v10108_v35 = vld [vmem:[%s14098_s7 + $0x1a4] ss:$8 sps:$4 sm:$0xff]  }
 0x258   :  { %1939 = vmatprep.subr.bf16.mxu1 %v10054_v37  ;;  %v10106_v37 = vld [vmem:[%s14098_s7 + $0x1a0] ss:$8 sps:$4 sm:$0xff]  }
 0x25b   :  { %1940 = vmatpush1.bf16.msra.mxu1 %v10052_v38  ;;  %v10111_v38 = vld [vmem:[%s14098_s7 + $0x1b4] ss:$8 sps:$4 sm:$0xff]  }
 0x25c   :  { %1941 = vmatprep.subr.bf16.mxu1 %v10057_v40  ;;  %v10109_v40 = vld [vmem:[%s14098_s7 + $0x1b0] ss:$8 sps:$4 sm:$0xff]  }
 0x25f   :  { %1942 = vmatpush1.bf16.msra.mxu1 %v10055_v42  ;;  %v10114_v42 = vld [vmem:[%s14098_s7 + $0x1c4] ss:$8 sps:$4 sm:$0xff]  }
 0x260   :  { %1943 = vmatprep.subr.bf16.mxu1 %v10060_v43  ;;  %v10112_v43 = vld [vmem:[%s14098_s7 + $0x1c0] ss:$8 sps:$4 sm:$0xff]  }
 0x263   :  { %1944 = vmatpush1.bf16.msra.mxu1 %v10058_v44  ;;  %v10117_v44 = vld [vmem:[%s14098_s7 + $0x1d4] ss:$8 sps:$4 sm:$0xff]  }
 0x264   :  { %1945 = vmatprep.subr.bf16.mxu1 %v10063_v45  ;;  %v10115_v45 = vld [vmem:[%s14098_s7 + $0x1d0] ss:$8 sps:$4 sm:$0xff]  }
 0x267   :  { %1946 = vmatpush1.bf16.msra.mxu1 %v10061_v46  ;;  %v10120_v46 = vld [vmem:[%s14098_s7 + $0x1e4] ss:$8 sps:$4 sm:$0xff]  }
 0x268   :  { %1947 = vmatprep.subr.bf16.mxu1 %v10066_v47  ;;  %v10118_v47 = vld [vmem:[%s14098_s7 + $0x1e0] ss:$8 sps:$4 sm:$0xff]  }
 0x26b   :  { %1948 = vmatpush1.bf16.msra.mxu1 %v10064_v48  ;;  %v10123_v48 = vld [vmem:[%s14098_s7 + $0x1f4] ss:$8 sps:$4 sm:$0xff]  }
 0x26c   :  { %1949 = vmatprep.subr.bf16.mxu1 %v10069_v49  ;;  %v10121_v49 = vld [vmem:[%s14098_s7 + $0x1f0] ss:$8 sps:$4 sm:$0xff]  }
 0x26f   :  { %1950 = vmatpush1.bf16.msra.mxu1 %v10067_v50  ;;  %v10126_v50 = vld [vmem:[%s14098_s7 + $0x204] ss:$8 sps:$4 sm:$0xff]  }
 0x270   :  { %1951 = vmatprep.subr.bf16.mxu1 %v10072_v51  ;;  %v10124_v51 = vld [vmem:[%s14098_s7 + $0x200] ss:$8 sps:$4 sm:$0xff]  }
 0x273   :  { %1952 = vmatpush1.bf16.msra.mxu1 %v10070_v52  ;;  %v10129_v52 = vld [vmem:[%s14098_s7 + $0x214] ss:$8 sps:$4 sm:$0xff]  }
 0x274   :  { %1953 = vmatprep.subr.bf16.mxu1 %v10075_v53  ;;  %v10127_v53 = vld [vmem:[%s14098_s7 + $0x210] ss:$8 sps:$4 sm:$0xff]  }
 0x277   :  { %1954 = vmatpush1.bf16.msra.mxu1 %v10073_v54  ;;  %v10132_v54 = vld [vmem:[%s14098_s7 + $0x224] ss:$8 sps:$4 sm:$0xff]  }
 0x278   :  { %1966 = vmatprep.subr.bf16.mxu1 %v10078_v55  ;;  %v2113_v55 = vld [vmem:[%s14099_s3 + $0x80] sm:$0xff] }
 0x2f5   :  { %v976_v56 = vpop.f32.mrb[8].mxu1 }
 0x2f6   :  { %v978_v57 = vpop.f32.mrb[9].mxu1 }
 0x2f7   :  { %v980_v58 = vpop.f32.mrb[10].mxu1 }
 0x2f8   :  { %v985_v59 = vpack.c.bf16 %v980_v58, %v976_v56  ;;  %v982_v60 = vpop.f32.mrb[11].mxu1  ;;  %v2114_v56 = vld [vmem:[%s14099_s3 + $0x88] sm:$0xff] }
 0x2f9   :  { %v986_v61 = vpack.c.bf16 %v982_v60, %v978_v57  ;;  %v2097_v57 = vld [vmem:[%s14099_s3] sm:$0xff]  ;;  %v11424_v58 = vpack.c.bf16 %v2114_v56, %v2113_v55  ;;  %v2115_v60 = vld [vmem:[%s14099_s3 + $0x90] sm:$0xff] }
 0x2fa   :  { %v10180_v55 = vld [vmem:[%s14098_s7 + $0x324] ss:$8 sps:$4 sm:$0xff]   ;;  %v10187_v56 = vld [vmem:[%s14098_s7 + $0x350] ss:$8 sps:$4 sm:$0xff]  }
 0x2fb   :  { %1955 = vmatprep.mubr.bf16.mxu1 %v986_v61  ;;  %v2116_v61 = vld [vmem:[%s14099_s3 + $0x98] sm:$0xff]  ;;  %9461 = vmatprep.subr.bf16.mxu0 %v11424_v58 }
 0x2fc   :  { %1956 = vmatmul.mubr.bf16.vlgmr.msra.gmra.mrb[24].mxu1 %v985_v59  ;;  %v2098_v59 = vld [vmem:[%s14099_s3 + $0x8] sm:$0xff] }
 0x2fd   :  { %1967 = vmatpush1.bf16.msra.mxu1 %v10076_v62  ;;  %v11283_v1 = vpop.f32.mrb[12].mxu1  ;;  %v11435_v62 = vpack.c.bf16 %v2098_v59, %v2097_v57  ;;  %v10192_v57 = vld [vmem:[%s14098_s7 + $0x364] ss:$8 sps:$4 sm:$0xff]   ;;  %v10190_v59 = vld [vmem:[%s14098_s7 + $0x360] ss:$8 sps:$4 sm:$0xff]  }
 0x2fe   :  { %1968 = vmatprep.subr.bf16.mxu1 %v10081_v63  ;;  %v1034_v3 = vpop.f32.mrb[13].mxu1  ;;  %v11437_v63 = vpack.c.bf16 %v2116_v61, %v2115_v60  ;;  %v10195_v60 = vld [vmem:[%s14098_s7 + $0x374] ss:$8 sps:$4 sm:$0xff]   ;;  %v10193_v61 = vld [vmem:[%s14098_s7 + $0x370] ss:$8 sps:$4 sm:$0xff]  }
 0x2ff   :  { %v11288_v4 = vpop.f32.mrb[14].mxu1  ;;  %9463 = vmatpush3.bf16.msra.mxu0 %v11435_v62 }
 0x300   :  { %v1041_v5 = vpack.c.bf16 %v11288_v4, %v11283_v1  ;;  %v1038_v6 = vpop.f32.mrb[15].mxu1  ;;  %v2100_v1 = vld [vmem:[%s14099_s3 + $0x18] sm:$0xff]  ;;  %v10130_v4 = vld [vmem:[%s14098_s7 + $0x220] ss:$8 sps:$4 sm:$0xff]   ;;  %9465 = vmatprep.subr.bf16.mxu0 %v11437_v63 }
 0x301   :  { %1969 = vmatpush1.bf16.msra.mxu1 %v10079_v0  ;;  %v1042_v8 = vpack.c.bf16 %v1038_v6, %v1034_v3  ;;  %v2099_v0 = vld [vmem:[%s14099_s3 + $0x10] sm:$0xff]  ;;  %v2118_v3 = vld [vmem:[%s14099_s3 + $0xa8] sm:$0xff] }
 0x302   :  { %1970 = vmatprep.subr.bf16.mxu1 %v10084_v2  ;;  %v2117_v2 = vld [vmem:[%s14099_s3 + $0xa0] sm:$0xff]  ;;  %v10135_v6 = vld [vmem:[%s14098_s7 + $0x234] ss:$8 sps:$4 sm:$0xff]  }
 0x303   :  { %1998 = vmatprep.mubr.bf16.mxu1 %v1042_v8  ;;  %v2101_v8 = vld [vmem:[%s14099_s3 + $0x20] sm:$0xff] }
 0x305   :  { %1971 = vmatpush1.bf16.msra.mxu1 %v10082_v7  ;;  %v11301_v11 = vpop.f32.mrb[16].mxu1  ;;  %v11462_v7 = vpack.c.bf16 %v2118_v3, %v2117_v2  ;;  %v10201_v2 = vld [vmem:[%s14098_s7 + $0x394] ss:$8 sps:$4 sm:$0xff]   ;;  %v10199_v3 = vld [vmem:[%s14098_s7 + $0x390] ss:$8 sps:$4 sm:$0xff]  }
 0x306   :  { %1972 = vmatprep.subr.bf16.mxu1 %v10087_v9  ;;  %v11306_v13 = vpop.f32.mrb[17].mxu1  ;;  %v2102_v9 = vld [vmem:[%s14099_s3 + $0x28] sm:$0xff] }
 0x307   :  { %v11308_v14 = vpop.f32.mrb[18].mxu1 }
 0x308   :  { %v1097_v15 = vpack.c.bf16 %v11308_v14, %v11301_v11  ;;  %v11312_v16 = vpop.f32.mrb[19].mxu1  ;;  %v10178_v11 = vld [vmem:[%s14098_s7 + $0x320] ss:$8 sps:$4 sm:$0xff]   ;;  %v10183_v14 = vld [vmem:[%s14098_s7 + $0x334] ss:$8 sps:$4 sm:$0xff]  }
 0x309   :  { %1973 = vmatpush1.bf16.msra.mxu1 %v10085_v10  ;;  %v1098_v18 = vpack.c.bf16 %v11312_v16, %v11306_v13  ;;  %v2119_v10 = vld [vmem:[%s14099_s3 + $0xb0] sm:$0xff]  ;;  %v11480_v16 = vpack.c.bf16 %v2102_v9, %v2101_v8 }
 0x30a   :  { %1974 = vmatprep.subr.bf16.mxu1 %v10090_v12  ;;  %v2120_v12 = vld [vmem:[%s14099_s3 + $0xb8] sm:$0xff] }
 0x30b   :  { %v10133_v13 = vld [vmem:[%s14098_s7 + $0x230] ss:$8 sps:$4 sm:$0xff]   ;;  %v10207_v8 = vld [vmem:[%s14098_s7 + $0x3b4] ss:$8 sps:$4 sm:$0xff]  }
 0x30c   :  { %v10205_v9 = vld [vmem:[%s14098_s7 + $0x3b0] ss:$8 sps:$4 sm:$0xff]  }
 0x30d   :  { %1975 = vmatpush1.bf16.msra.mxu1 %v10088_v17  ;;  %v11325_v21 = vpop.f32.mrb[20].mxu1  ;;  %v10138_v17 = vld [vmem:[%s14098_s7 + $0x244] ss:$8 sps:$4 sm:$0xff]  }
 0x30e   :  { %1976 = vmatprep.subr.bf16.mxu1 %v10093_v19  ;;  %v11330_v23 = vpop.f32.mrb[21].mxu1  ;;  %v10136_v19 = vld [vmem:[%s14098_s7 + $0x240] ss:$8 sps:$4 sm:$0xff]  }
 0x30f   :  { %v11332_v24 = vpop.f32.mrb[22].mxu1 }
 0x310   :  { %v1153_v25 = vpack.c.bf16 %v11332_v24, %v11325_v21  ;;  %v11336_v26 = vpop.f32.mrb[23].mxu1  ;;  %v2122_v21 = vld [vmem:[%s14099_s3 + $0xc8] sm:$0xff] }
 0x311   :  { %1977 = vmatpush1.bf16.msra.mxu1 %v10091_v20  ;;  %v1154_v28 = vpack.c.bf16 %v11336_v26, %v11330_v23  ;;  %v10141_v20 = vld [vmem:[%s14098_s7 + $0x254] ss:$8 sps:$4 sm:$0xff]   ;;  %v10186_v23 = vld [vmem:[%s14098_s7 + $0x344] ss:$8 sps:$4 sm:$0xff]   ;;  %v10184_v26 = vld [vmem:[%s14098_s7 + $0x340] ss:$8 sps:$4 sm:$0xff]  }
 0x312   :  { %1978 = vmatprep.subr.bf16.mxu1 %v10096_v22  ;;  %v10139_v22 = vld [vmem:[%s14098_s7 + $0x250] ss:$8 sps:$4 sm:$0xff]  }
 0x315   :  { %1979 = vmatpush1.bf16.msra.mxu1 %v10094_v27  ;;  %v10144_v27 = vld [vmem:[%s14098_s7 + $0x264] ss:$8 sps:$4 sm:$0xff]  }
 0x316   :  { %1980 = vmatprep.subr.bf16.mxu1 %v10099_v29  ;;  %v10142_v29 = vld [vmem:[%s14098_s7 + $0x260] ss:$8 sps:$4 sm:$0xff]  }
 0x319   :  { %1981 = vmatpush1.bf16.msra.mxu1 %v10097_v30  ;;  %v10147_v30 = vld [vmem:[%s14098_s7 + $0x274] ss:$8 sps:$4 sm:$0xff]  }
 0x31a   :  { %1982 = vmatprep.subr.bf16.mxu1 %v10102_v31  ;;  %v10145_v31 = vld [vmem:[%s14098_s7 + $0x270] ss:$8 sps:$4 sm:$0xff]  }
 0x31d   :  { %1983 = vmatpush1.bf16.msra.mxu1 %v10100_v32  ;;  %v10150_v32 = vld [vmem:[%s14098_s7 + $0x284] ss:$8 sps:$4 sm:$0xff]  }
 0x31e   :  { %1984 = vmatprep.subr.bf16.mxu1 %v10105_v33  ;;  %v10148_v33 = vld [vmem:[%s14098_s7 + $0x280] ss:$8 sps:$4 sm:$0xff]  }
 0x321   :  { %1985 = vmatpush1.bf16.msra.mxu1 %v10103_v34  ;;  %v10153_v34 = vld [vmem:[%s14098_s7 + $0x294] ss:$8 sps:$4 sm:$0xff]  }
 0x322   :  { %1986 = vmatprep.subr.bf16.mxu1 %v10108_v35  ;;  %v10151_v35 = vld [vmem:[%s14098_s7 + $0x290] ss:$8 sps:$4 sm:$0xff]  }
 0x325   :  { %1987 = vmatpush1.bf16.msra.mxu1 %v10106_v37  ;;  %v10156_v37 = vld [vmem:[%s14098_s7 + $0x2a4] ss:$8 sps:$4 sm:$0xff]  }
 0x326   :  { %1988 = vmatprep.subr.bf16.mxu1 %v10111_v38  ;;  %v10154_v38 = vld [vmem:[%s14098_s7 + $0x2a0] ss:$8 sps:$4 sm:$0xff]  }
 0x329   :  { %1989 = vmatpush1.bf16.msra.mxu1 %v10109_v40  ;;  %v10159_v40 = vld [vmem:[%s14098_s7 + $0x2b4] ss:$8 sps:$4 sm:$0xff]  }
 0x32a   :  { %1990 = vmatprep.subr.bf16.mxu1 %v10114_v42  ;;  %v10157_v42 = vld [vmem:[%s14098_s7 + $0x2b0] ss:$8 sps:$4 sm:$0xff]  }
 0x32d   :  { %1991 = vmatpush1.bf16.msra.mxu1 %v10112_v43  ;;  %v10162_v43 = vld [vmem:[%s14098_s7 + $0x2c4] ss:$8 sps:$4 sm:$0xff]  }
 0x32e   :  { %1992 = vmatprep.subr.bf16.mxu1 %v10117_v44  ;;  %v10160_v44 = vld [vmem:[%s14098_s7 + $0x2c0] ss:$8 sps:$4 sm:$0xff]  }
 0x331   :  { %1993 = vmatpush1.bf16.msra.mxu1 %v10115_v45  ;;  %v10165_v45 = vld [vmem:[%s14098_s7 + $0x2d4] ss:$8 sps:$4 sm:$0xff]  }
 0x332   :  { %1994 = vmatprep.subr.bf16.mxu1 %v10120_v46  ;;  %v10163_v46 = vld [vmem:[%s14098_s7 + $0x2d0] ss:$8 sps:$4 sm:$0xff]  }
 0x335   :  { %1995 = vmatpush1.bf16.msra.mxu1 %v10118_v47  ;;  %v10168_v47 = vld [vmem:[%s14098_s7 + $0x2e4] ss:$8 sps:$4 sm:$0xff]  }
 0x336   :  { %1996 = vmatprep.subr.bf16.mxu1 %v10123_v48  ;;  %v10166_v48 = vld [vmem:[%s14098_s7 + $0x2e0] ss:$8 sps:$4 sm:$0xff]  }
 0x339   :  { %1997 = vmatpush1.bf16.msra.mxu1 %v10121_v49  ;;  %v10171_v49 = vld [vmem:[%s14098_s7 + $0x2f4] ss:$8 sps:$4 sm:$0xff]  }
 0x33a   :  { %2009 = vmatprep.subr.bf16.mxu1 %v10126_v50  ;;  %v10169_v50 = vld [vmem:[%s14098_s7 + $0x2f0] ss:$8 sps:$4 sm:$0xff]  }
 0x33c   :  { %1999 = vmatmul.mubr.bf16.vlgmr.msra.gmra.mrb[24].mxu1 %v1041_v5  ;;  %v11456_v5 = vpack.c.bf16 %v2100_v1, %v2099_v0  ;;  %v10198_v0 = vld [vmem:[%s14098_s7 + $0x384] ss:$8 sps:$4 sm:$0xff]   ;;  %v10196_v1 = vld [vmem:[%s14098_s7 + $0x380] ss:$8 sps:$4 sm:$0xff]  }
 0x33d   :  { %2010 = vmatpush1.bf16.msra.mxu1 %v10124_v51  ;;  %2041 = vmatprep.mubr.bf16.mxu1 %v1098_v18  ;;  %v11486_v18 = vpack.c.bf16 %v2120_v12, %v2119_v10  ;;  %v10174_v51 = vld [vmem:[%s14098_s7 + $0x304] ss:$8 sps:$4 sm:$0xff]   ;;  %v10208_v12 = vld [vmem:[%s14098_s7 + $0x3c0] ss:$8 sps:$4 sm:$0xff]  }
 0x33e   :  { %2011 = vmatprep.subr.bf16.mxu1 %v10129_v52  ;;  %9467 = vmatpush3.bf16.msra.mxu0 %v11456_v5  ;;  %v10172_v52 = vld [vmem:[%s14098_s7 + $0x300] ss:$8 sps:$4 sm:$0xff]   ;;  %v10210_v10 = vld [vmem:[%s14098_s7 + $0x3c4] ss:$8 sps:$4 sm:$0xff]  }
 0x33f   :  { %9469 = vmatprep.subr.bf16.mxu0 %v11462_v7 }
 0x341   :  { %2012 = vmatpush1.bf16.msra.mxu1 %v10127_v53  ;;  %v10177_v53 = vld [vmem:[%s14098_s7 + $0x314] ss:$8 sps:$4 sm:$0xff]  }
 0x342   :  { %2013 = vmatprep.subr.bf16.mxu1 %v10132_v54  ;;  %9471 = vmatpush3.bf16.msra.mxu0 %v11480_v16  ;;  %v10175_v54 = vld [vmem:[%s14098_s7 + $0x310] ss:$8 sps:$4 sm:$0xff]  }
 0x343   :  { %9473 = vmatprep.subr.bf16.mxu0 %v11486_v18 }
 0x345   :  { %2014 = vmatpush1.bf16.msra.mxu1 %v10130_v4  ;;  %v10204_v4 = vld [vmem:[%s14098_s7 + $0x3a4] ss:$8 sps:$4 sm:$0xff]  }
 0x346   :  { %2015 = vmatprep.subr.bf16.mxu1 %v10135_v6  ;;  %v10202_v6 = vld [vmem:[%s14098_s7 + $0x3a0] ss:$8 sps:$4 sm:$0xff]  }
 0x349   :  { %2016 = vmatpush1.bf16.msra.mxu1 %v10133_v13  ;;  %v10213_v13 = vld [vmem:[%s14098_s7 + $0x3d4] ss:$8 sps:$4 sm:$0xff]  }
 0x34a   :  { %2017 = vmatprep.subr.bf16.mxu1 %v10138_v17  ;;  %v10211_v17 = vld [vmem:[%s14098_s7 + $0x3d0] ss:$8 sps:$4 sm:$0xff]  }
 0x34d   :  { %2018 = vmatpush1.bf16.msra.mxu1 %v10136_v19  ;;  %v10216_v19 = vld [vmem:[%s14098_s7 + $0x3e4] ss:$8 sps:$4 sm:$0xff]  }
 0x34e   :  { %2019 = vmatprep.subr.bf16.mxu1 %v10141_v20  ;;  %v10214_v20 = vld [vmem:[%s14098_s7 + $0x3e0] ss:$8 sps:$4 sm:$0xff]  }
 0x351   :  { %2020 = vmatpush1.bf16.msra.mxu1 %v10139_v22  ;;  %v10219_v22 = vld [vmem:[%s14098_s7 + $0x3f4] ss:$8 sps:$4 sm:$0xff]  }
 0x352   :  { %2021 = vmatprep.subr.bf16.mxu1 %v10144_v27  ;;  %v10217_v27 = vld [vmem:[%s14098_s7 + $0x3f0] ss:$8 sps:$4 sm:$0xff]  }
 0x355   :  { %2022 = vmatpush1.bf16.msra.mxu1 %v10142_v29  ;;  %v2103_v29 = vld [vmem:[%s14099_s3 + $0x30] sm:$0xff] }
 0x356   :  { %2023 = vmatprep.subr.bf16.mxu1 %v10147_v30  ;;  %v2104_v30 = vld [vmem:[%s14099_s3 + $0x38] sm:$0xff] }
 0x359   :  { %2024 = vmatpush1.bf16.msra.mxu1 %v10145_v31  ;;  %v11670_v31 = vpack.c.bf16 %v2104_v30, %v2103_v29  ;;  %v2133_v29 = vld [vmem:[%s14100_s1 + $0x20] sm:$0xff]  ;;  %v2135_v30 = vld [vmem:[%s14100_s1 + $0x30] sm:$0xff] }
 0x35a   :  { %2025 = vmatprep.subr.bf16.mxu1 %v10150_v32  ;;  %v2121_v32 = vld [vmem:[%s14099_s3 + $0xc0] sm:$0xff] }
 0x35b   :  { %9475 = vmatpush3.bf16.msra.mxu0 %v11670_v31  ;;  %v11679_v24 = vpack.c.bf16 %v2122_v21, %v2121_v32  ;;  %v9498_v32 = vpack.c.bf16 %v2135_v30, %v2133_v29  ;;  %v10771_v21 = vmov 0.0  }
 0x35d   :  { %2026 = vmatpush1.bf16.msra.mxu1 %v10148_v33  ;;  %v2106_v33 = vld [vmem:[%s14099_s3 + $0x48] sm:$0xff]  ;;  %9477 = vmatprep.subr.bf16.mxu0 %v11679_v24 }
 0x35e   :  { %2027 = vmatprep.subr.bf16.mxu1 %v10153_v34 }
 0x361   :  { %2028 = vmatpush1.bf16.msra.mxu1 %v10151_v35  ;;  %v2123_v35 = vld [vmem:[%s14099_s3 + $0xd0] sm:$0xff] }
 0x362   :  { %2029 = vmatprep.subr.bf16.mxu1 %v10156_v37  ;;  %v2124_v37 = vld [vmem:[%s14099_s3 + $0xd8] sm:$0xff] }
 0x365   :  { %2030 = vmatpush1.bf16.msra.mxu1 %v10154_v38  ;;  %v11697_v38 = vpack.c.bf16 %v2124_v37, %v2123_v35 }
 0x366   :  { %2031 = vmatprep.subr.bf16.mxu1 %v10159_v40  ;;  %v2107_v40 = vld [vmem:[%s14099_s3 + $0x50] sm:$0xff] }
 0x369   :  { %2032 = vmatpush1.bf16.msra.mxu1 %v10157_v42  ;;  %v2108_v42 = vld [vmem:[%s14099_s3 + $0x58] sm:$0xff] }
 0x36a   :  { %2033 = vmatprep.subr.bf16.mxu1 %v10162_v43  ;;  %v11705_v43 = vpack.c.bf16 %v2108_v42, %v2107_v40 }
 0x36d   :  { %2034 = vmatpush1.bf16.msra.mxu1 %v10160_v44  ;;  %v2125_v44 = vld [vmem:[%s14099_s3 + $0xe0] sm:$0xff] }
 0x36e   :  { %2035 = vmatprep.subr.bf16.mxu1 %v10165_v45  ;;  %v2126_v45 = vld [vmem:[%s14099_s3 + $0xe8] sm:$0xff] }
 0x371   :  { %2036 = vmatpush1.bf16.msra.mxu1 %v10163_v46  ;;  %v11715_v46 = vpack.c.bf16 %v2126_v45, %v2125_v44 }
 0x372   :  { %2037 = vmatprep.subr.bf16.mxu1 %v10168_v47  ;;  %v2109_v47 = vld [vmem:[%s14099_s3 + $0x60] sm:$0xff] }
 0x375   :  { %2038 = vmatpush1.bf16.msra.mxu1 %v10166_v48  ;;  %v2110_v48 = vld [vmem:[%s14099_s3 + $0x68] sm:$0xff] }
 0x376   :  { %2039 = vmatprep.subr.bf16.mxu1 %v10171_v49  ;;  %v11723_v49 = vpack.c.bf16 %v2110_v48, %v2109_v47 }
 0x379   :  { %2040 = vmatpush1.bf16.msra.mxu1 %v10169_v50  ;;  %v2127_v50 = vld [vmem:[%s14099_s3 + $0xf0] sm:$0xff] }
 0x37a   :  { %2052 = vmatprep.subr.bf16.mxu1 %v10174_v51  ;;  %v2128_v51 = vld [vmem:[%s14099_s3 + $0xf8] sm:$0xff] }
 0x37c   :  { %2042 = vmatmul.mubr.bf16.vlgmr.msra.gmra.mrb[24].mxu1 %v1097_v15  ;;  %v10181_v15 = vld [vmem:[%s14098_s7 + $0x330] ss:$8 sps:$4 sm:$0xff]  }
 0x37d   :  { %2053 = vmatpush1.bf16.msra.mxu1 %v10172_v52  ;;  %2084 = vmatprep.mubr.bf16.mxu1 %v1154_v28  ;;  %v10189_v28 = vld [vmem:[%s14098_s7 + $0x354] ss:$8 sps:$4 sm:$0xff]   ;;  %v11733_v52 = vpack.c.bf16 %v2128_v51, %v2127_v50 }
 0x37e   :  { %2054 = vmatprep.subr.bf16.mxu1 %v10177_v53  ;;  %v2111_v53 = vld [vmem:[%s14099_s3 + $0x70] sm:$0xff] }
 0x381   :  { %2055 = vmatpush1.bf16.msra.mxu1 %v10175_v54  ;;  %v2112_v54 = vld [vmem:[%s14099_s3 + $0x78] sm:$0xff] }
 0x382   :  { %2056 = vmatprep.subr.bf16.mxu1 %v10180_v55  ;;  %v9490_v55 = vpack.c.bf16 %v2112_v54, %v2111_v53 }
 0x385   :  { %2057 = vmatpush1.bf16.msra.mxu1 %v10178_v11  ;;  %v2130_v11 = vld [vmem:[%s14100_s1 + $0x8] sm:$0xff] }
 0x386   :  { %2058 = vmatprep.subr.bf16.mxu1 %v10183_v14  ;;  %v2132_v14 = vld [vmem:[%s14100_s1 + $0x18] sm:$0xff] }
 0x389   :  { %2059 = vmatpush1.bf16.msra.mxu1 %v10181_v15  ;;  %v9492_v15 = vpack.c.bf16 %v2132_v14, %v2130_v11 }
 0x38a   :  { %2060 = vmatprep.subr.bf16.mxu1 %v10186_v23 }
 0x38d   :  { %2061 = vmatpush1.bf16.msra.mxu1 %v10184_v26 }
 0x38e   :  { %2062 = vmatprep.subr.bf16.mxu1 %v10189_v28 }
 0x391   :  { %2063 = vmatpush1.bf16.msra.mxu1 %v10187_v56 }
 0x392   :  { %2064 = vmatprep.subr.bf16.mxu1 %v10192_v57 }
 0x395   :  { %2065 = vmatpush1.bf16.msra.mxu1 %v10190_v59 }
 0x396   :  { %2066 = vmatprep.subr.bf16.mxu1 %v10195_v60 }
 0x399   :  { %2067 = vmatpush1.bf16.msra.mxu1 %v10193_v61 }
 0x39a   :  { %2068 = vmatprep.subr.bf16.mxu1 %v10198_v0 }
 0x39d   :  { %2069 = vmatpush1.bf16.msra.mxu1 %v10196_v1 }
 0x39e   :  { %2070 = vmatprep.subr.bf16.mxu1 %v10201_v2 }
 0x3a1   :  { %2071 = vmatpush1.bf16.msra.mxu1 %v10199_v3 }
 0x3a2   :  { %2072 = vmatprep.subr.bf16.mxu1 %v10204_v4 }
 0x3a5   :  { %2073 = vmatpush1.bf16.msra.mxu1 %v10202_v6 }
 0x3a6   :  { %2074 = vmatprep.subr.bf16.mxu1 %v10207_v8 }
 0x3a9   :  { %2075 = vmatpush1.bf16.msra.mxu1 %v10205_v9  ;;  %v2129_v9 = vld [vmem:[%s14100_s1] sm:$0xff] }
 0x3aa   :  { %2076 = vmatprep.subr.bf16.mxu1 %v10210_v10  ;;  %v2131_v10 = vld [vmem:[%s14100_s1 + $0x10] sm:$0xff] }
 0x3ad   :  { %2077 = vmatpush1.bf16.msra.mxu1 %v10208_v12 }
 0x3ae   :  { %2078 = vmatprep.subr.bf16.mxu1 %v10213_v13 }
 0x3b1   :  { %2079 = vmatpush1.bf16.msra.mxu1 %v10211_v17  ;;  %v11754_v17 = vpack.c.bf16 %v2131_v10, %v2129_v9 }
 0x3b2   :  { %2080 = vmatprep.subr.bf16.mxu1 %v10216_v19 }
 0x3b5   :  { %2081 = vmatpush1.bf16.msra.mxu1 %v10214_v20  ;;  %v2134_v20 = vld [vmem:[%s14100_s1 + $0x28] sm:$0xff] }
 0x3b6   :  { %2082 = vmatprep.subr.bf16.mxu1 %v10219_v22  ;;  %v2136_v22 = vld [vmem:[%s14100_s1 + $0x38] sm:$0xff] }
 0x3b9   :  { %2083 = vmatpush1.bf16.msra.mxu1 %v10217_v27  ;;  %v9496_v27 = vpack.c.bf16 %v2136_v22, %v2134_v20 }
 0x3bc   :  { %2085 = vmatmul.mubr.bf16.vlgmr.msra.gmra.mrb[24].mxu1 %v1153_v25  ;;  %v2105_v25 = vld [vmem:[%s14099_s3 + $0x40] sm:$0xff] }
 0x3bd   :  { %v11687_v34 = vpack.c.bf16 %v2106_v33, %v2105_v25 }
 0x3bf   :  { %9479 = vmatpush3.bf16.msra.mxu0 %v11687_v34 }
 0x3c0   :  { %9481 = vmatprep.subr.bf16.mxu0 %v11697_v38 }
 0x3c3   :  { %9483 = vmatpush3.bf16.msra.mxu0 %v11705_v43 }
 0x3c4   :  { %9485 = vmatprep.subr.bf16.mxu0 %v11715_v46 }
 0x3c7   :  { %9487 = vmatpush3.bf16.msra.mxu0 %v11723_v49 }
 0x3c8   :  { %9489 = vmatprep.subr.bf16.mxu0 %v11733_v52 }
 0x3cb   :  { %9491 = vmatpush3.bf16.msra.mxu0 %v9490_v55 }
 0x3cc   :  { %9493 = vmatprep.subr.bf16.mxu0 %v9492_v15 }
 0x48f   :  { %v2086_v23 = vpop.f32.mrb[24].mxu1 }
 0x490   :  { %v2088_v26 = vpop.f32.mrb[25].mxu1 }
 0x491   :  { %v2090_v28 = vpop.f32.mrb[26].mxu1 }
 0x492   :  { %v2137_v56 = vadd.f32 %v2090_v28, %v2086_v23  ;;  %v2092_v57 = vpop.f32.mrb[27].mxu1 }
 0x493   :  { %v2144_v59 = vadd.f32 %v2092_v57, %v2088_v26 }
 0x494   :  { %v2138_v60 = vrot.slane %v2137_v56, 4 }
 0x495   :  { %v2145_v61 = vrot.slane %v2144_v59, 4 }
 0x496   :  { %v2139_v0 = vadd.f32 %v2138_v60, %v2137_v56 }
 0x497   :  { %v2146_v1 = vadd.f32 %v2145_v61, %v2144_v59 }
 0x498   :  { %v2140_v2 = vrot.slane %v2139_v0, 2 }
 0x499   :  { %v2147_v3 = vrot.slane %v2146_v1, 2 }
 0x49a   :  { %v2141_v4 = vadd.f32 %v2140_v2, %v2139_v0 }
 0x49b   :  { %v2148_v6 = vadd.f32 %v2147_v3, %v2146_v1 }
 0x49c   :  { %v2142_v8 = vrot.slane %v2141_v4, 1 }
 0x49d   :  { %v2149_v12 = vrot.slane %v2148_v6, 1 }
 0x49e   :  { %v2143_v19 = vadd.f32 %v2142_v8, %v2141_v4 }
 0x49f   :  { %v2150_v13 = vadd.f32 %v2149_v12, %v2148_v6 }
 0x4a1   :  { %2215 = vmatprep.mubr.f32.mxu0 %v2150_v13 }
 0x4a2   :  { %2216 = vmatmul.mubr.f32.vlgmr.msra.gmra.mrb[16].mxu0 %v2143_v19 }
 0x4a3   :  { %9495 = vmatpush1.bf16.msra.mxu0 %v11754_v17  ;;  %2289 = vmatprep.mubr.f32.mxu0 %v10771_v21 }
 0x4a4   :  { %9497 = vmatprep.subr.bf16.mxu0 %v9496_v27 }
 0x4a7   :  { %9499 = vmatpush1.bf16.msra.mxu0 %v9498_v32 }
 0x4a8   :  { %9501 = vmatprep.subr.bf16.mxu0 %v11424_v58 }
 0x575   :  { %v8774_v25 = vpop.f32.mrb[16].mxu0 }
 0x576   :  { %v8775_v33 = vpop.f32.mrb[17].mxu0 }
 0x577   :  { %v8776_v35 = vadd.f32 %v8775_v33, %v8774_v25 }
 0x579   :  { %v2221_v37 = vmul.f32 0.0078125, %v8776_v35 }
 0x57b   :  { %8261 = vmatmul.mubr.msk.f32.vlgmr.msra.gmra.mrb[18].mxu0 %vm938_vm9, %v2221_v37 }
 0x57c   :  { %9503 = vmatpush3.bf16.msra.mxu0 %v11435_v62 }
 0x57d   :  { %9505 = vmatprep.subr.bf16.mxu0 %v11437_v63 }
 0x580   :  { %9507 = vmatpush3.bf16.msra.mxu0 %v11456_v5 }
 0x581   :  { %9509 = vmatprep.subr.bf16.mxu0 %v11462_v7 }
 0x584   :  { %9511 = vmatpush3.bf16.msra.mxu0 %v11480_v16 }
 0x585   :  { %9513 = vmatprep.subr.bf16.mxu0 %v11486_v18 }
 0x588   :  { %9515 = vmatpush3.bf16.msra.mxu0 %v11670_v31 }
 0x589   :  { %9517 = vmatprep.subr.bf16.mxu0 %v11679_v24 }
 0x58c   :  { %9519 = vmatpush3.bf16.msra.mxu0 %v11687_v34 }
 0x58d   :  { %9521 = vmatprep.subr.bf16.mxu0 %v11697_v38 }
 0x590   :  { %9523 = vmatpush3.bf16.msra.mxu0 %v11705_v43 }
 0x591   :  { %9525 = vmatprep.subr.bf16.mxu0 %v11715_v46 }
 0x594   :  { %9527 = vmatpush3.bf16.msra.mxu0 %v11723_v49 }
 0x595   :  { %9529 = vmatprep.subr.bf16.mxu0 %v11733_v52 }
 0x598   :  { %9531 = vmatpush3.bf16.msra.mxu0 %v9490_v55 }
 0x599   :  { %9533 = vmatprep.subr.bf16.mxu0 %v9492_v15 }
 0x64e   :  { %v2291_v58 = vpop.f32.mrb[18].mxu0 }
 0x64f   :  { %v2299_v62 = vrot.slane %v2291_v58, %v11147_v39  ;;  %v2293_v63 = vpop.f32.mrb[19].mxu0  ;;  %v2520_v58 = vld [vmem:[%s14059_s10] sm:$0xf] }
 0x650   :  { %v2303_v5 = vrot.slane %v2293_v63, %v11147_v39  ;;  %v8267_v63 = vld [vmem:[%s14059_s10 + $0x8] sm:$0xf] }
 0x651   :  { %v2304_v7 = vsub.f32 %v2086_v23, %v2299_v62  ;;  %v2306_v16 = vsub.f32 %v2090_v28, %v2299_v62  ;;  %v2095_v28 = vld [vmem:[%s14101_s28] sm:$0x1]  ;;  %v8265_v62 = vld [vmem:[%s14059_s10 + $0x4] sm:$0xf] }
 0x652   :  { %v2305_v18 = vsub.f32 %v2088_v26, %v2303_v5  ;;  %v2307_v31 = vsub.f32 %v2092_v57, %v2303_v5  ;;  %v8262_v57 = vld [vmem:[%s14102_s29] ss:$0 sm:$0xff]  ;;  %v10222_v5 = vld [vmem:[%s14058_s11 + $0x4] ss:$8 sps:$4 sm:$0xff]  }
 0x653   :  { %v2308_v24 = vmul.f32 %v2304_v7, %v2304_v7  ;;  %v2310_v34 = vmul.f32 %v2306_v16, %v2306_v16 }
 0x654   :  { %v2309_v38 = vmul.f32 %v2305_v18, %v2305_v18  ;;  %v2311_v40 = vmul.f32 %v2307_v31, %v2307_v31 }
 0x655   :  { %v2312_v42 = vadd.f32 %v2310_v34, %v2308_v24  ;;  %v10228_v24 = vld [vmem:[%s14058_s11 + $0x24] ss:$8 sps:$4 sm:$0xff]   ;;  %v10226_v34 = vld [vmem:[%s14058_s11 + $0x20] ss:$8 sps:$4 sm:$0xff]  }
 0x656   :  { %v2319_v43 = vadd.f32 %v2311_v40, %v2309_v38  ;;  %v10231_v38 = vld [vmem:[%s14058_s11 + $0x34] ss:$8 sps:$4 sm:$0xff]   ;;  %v10229_v40 = vld [vmem:[%s14058_s11 + $0x30] ss:$8 sps:$4 sm:$0xff]  }
 0x657   :  { %v2313_v44 = vrot.slane %v2312_v42, 4 }
 0x658   :  { %v2320_v45 = vrot.slane %v2319_v43, 4 }
 0x659   :  { %v2314_v46 = vadd.f32 %v2313_v44, %v2312_v42  ;;  %v10234_v42 = vld [vmem:[%s14058_s11 + $0x44] ss:$8 sps:$4 sm:$0xff]   ;;  %v10237_v44 = vld [vmem:[%s14058_s11 + $0x54] ss:$8 sps:$4 sm:$0xff]  }
 0x65a   :  { %v2321_v47 = vadd.f32 %v2320_v45, %v2319_v43  ;;  %v10232_v43 = vld [vmem:[%s14058_s11 + $0x40] ss:$8 sps:$4 sm:$0xff]   ;;  %v10235_v45 = vld [vmem:[%s14058_s11 + $0x50] ss:$8 sps:$4 sm:$0xff]  }
 0x65b   :  { %v2315_v48 = vrot.slane %v2314_v46, 2 }
 0x65c   :  { %v2322_v49 = vrot.slane %v2321_v47, 2 }
 0x65d   :  { %v2316_v50 = vadd.f32 %v2315_v48, %v2314_v46  ;;  %v10240_v46 = vld [vmem:[%s14058_s11 + $0x64] ss:$8 sps:$4 sm:$0xff]   ;;  %v10243_v48 = vld [vmem:[%s14058_s11 + $0x74] ss:$8 sps:$4 sm:$0xff]  }
 0x65e   :  { %v2323_v51 = vadd.f32 %v2322_v49, %v2321_v47  ;;  %v10238_v47 = vld [vmem:[%s14058_s11 + $0x60] ss:$8 sps:$4 sm:$0xff]   ;;  %v10241_v49 = vld [vmem:[%s14058_s11 + $0x70] ss:$8 sps:$4 sm:$0xff]  }
 0x65f   :  { %v2317_v52 = vrot.slane %v2316_v50, 1 }
 0x660   :  { %v2324_v53 = vrot.slane %v2323_v51, 1 }
 0x661   :  { %v2318_v55 = vadd.f32 %v2317_v52, %v2316_v50  ;;  %v10246_v50 = vld [vmem:[%s14058_s11 + $0x84] ss:$8 sps:$4 sm:$0xff]   ;;  %v10249_v52 = vld [vmem:[%s14058_s11 + $0x94] ss:$8 sps:$4 sm:$0xff]  }
 0x662   :  { %v2325_v54 = vadd.f32 %v2324_v53, %v2323_v51  ;;  %v10244_v51 = vld [vmem:[%s14058_s11 + $0x80] ss:$8 sps:$4 sm:$0xff]   ;;  %v10247_v53 = vld [vmem:[%s14058_s11 + $0x90] ss:$8 sps:$4 sm:$0xff]  }
 0x664   :  { %2390 = vmatprep.mubr.f32.mxu0 %v2325_v54  ;;  %v10252_v54 = vld [vmem:[%s14058_s11 + $0xa4] ss:$8 sps:$4 sm:$0xff]  }
 0x665   :  { %2391 = vmatmul.mubr.f32.vlgmr.msra.gmra.mrb[20].mxu0 %v2318_v55  ;;  %v10250_v55 = vld [vmem:[%s14058_s11 + $0xa0] ss:$8 sps:$4 sm:$0xff]  }
 0x666   :  { %9535 = vmatpush1.bf16.msra.mxu0 %v11754_v17  ;;  %2475 = vmatprep.mubr.f32.mxu0 %v10771_v21 }
 0x667   :  { %9537 = vmatprep.subr.bf16.mxu0 %v9496_v27 }
 0x66a   :  { %9539 = vmatpush1.bf16.msra.mxu0 %v9498_v32 }
 0x738   :  { %v8809_v11 = vpop.f32.mrb[20].mxu0 }
 0x739   :  { %v8810_v14 = vpop.f32.mrb[21].mxu0 }
 0x73a   :  { %v8811_v15 = vadd.f32 %v8810_v14, %v8809_v11  ;;  %v10255_v11 = vld [vmem:[%s14058_s11 + $0xb4] ss:$8 sps:$4 sm:$0xff]   ;;  %v10253_v14 = vld [vmem:[%s14058_s11 + $0xb0] ss:$8 sps:$4 sm:$0xff]  }
 0x73c   :  { %v2396_v23 = vmul.f32 0.0078125, %v8811_v15  ;;  %v10258_v15 = vld [vmem:[%s14058_s11 + $0xc4] ss:$8 sps:$4 sm:$0xff]  }
 0x73e   :  { %v2397_v26 = vadd.f32 1e-05, %v2396_v23  ;;  %v10256_v23 = vld [vmem:[%s14058_s11 + $0xc0] ss:$8 sps:$4 sm:$0xff]  }
 0x740   :  { %10764 = vrsqrt.f32 %v2397_v26  ;;  %v10261_v26 = vld [vmem:[%s14058_s11 + $0xd4] ss:$8 sps:$4 sm:$0xff]  }
 0x74a   :  { %v10765_v56 = vpop.eup %10764 }
 0x74b   :  { %v2399_v59 = vmul.f32 %v10765_v56, %v2095_v28  ;;  %v10259_v28 = vld [vmem:[%s14058_s11 + $0xd0] ss:$8 sps:$4 sm:$0xff]   ;;  %v10264_v56 = vld [vmem:[%s14058_s11 + $0xe4] ss:$8 sps:$4 sm:$0xff]  }
 0x74d   :  { %v2407_v60 = vsel %vm2406_vm10, %v2399_v59, %v8262_v57  ;;  %v10262_v57 = vld [vmem:[%s14058_s11 + $0xe0] ss:$8 sps:$4 sm:$0xff]   ;;  %v10267_v59 = vld [vmem:[%s14058_s11 + $0xf4] ss:$8 sps:$4 sm:$0xff]  }
 0x74e   :  { %8263 = vmatmul.mubr.msk.f32.vlgmr.msra.gmra.mrb[22].mxu0 %vm938_vm9, %v2407_v60  ;;  %v10265_v60 = vld [vmem:[%s14058_s11 + $0xf0] ss:$8 sps:$4 sm:$0xff]   ;;  %vm6641_vm9 = vcmask 1042432  }
 0x74f   :  { %2557 = vmatprep.mubr.bf16.mxu0 %v14081_v36 }
 0x821   :  { %v2477_v61 = vpop.f32.mrb[22].mxu0 }
 0x822   :  { %v2485_v0 = vrot.slane %v2477_v61, %v11147_v39  ;;  %v2479_v1 = vpop.f32.mrb[23].mxu0  ;;  %v2497_v6 = vrot.slane %v2477_v61, %v11152_v41  ;;  %v10270_v61 = vld [vmem:[%s14058_s11 + $0x104] ss:$8 sps:$4 sm:$0xff]  }
 0x823   :  { %v2489_v2 = vrot.slane %v2479_v1, %v11147_v39  ;;  %v2501_v10 = vrot.slane %v2479_v1, %v11152_v41 }
 0x824   :  { %v2490_v3 = vmul.f32 %v2485_v0, %v2304_v7  ;;  %v2492_v4 = vmul.f32 %v2485_v0, %v2306_v16  ;;  %v8269_v7 = vld [vmem:[%s14059_s10 + $0xc] sm:$0xf]  ;;  %v10220_v16 = vld [vmem:[%s14058_s11] ss:$8 sps:$4 sm:$0xff]  }
 0x825   :  { %v2491_v8 = vmul.f32 %v2489_v2, %v2305_v18  ;;  %v2493_v9 = vmul.f32 %v2489_v2, %v2307_v31  ;;  %v10225_v18 = vld [vmem:[%s14058_s11 + $0x14] ss:$8 sps:$4 sm:$0xff]   ;;  %v10223_v31 = vld [vmem:[%s14058_s11 + $0x10] ss:$8 sps:$4 sm:$0xff]  }
 0x826   :  { %v2502_v12 = vadd.f32 %v2497_v6, %v2490_v3  ;;  %v2504_v13 = vadd.f32 %v2497_v6, %v2492_v4  ;;  %v10268_v4 = vld [vmem:[%s14058_s11 + $0x100] ss:$8 sps:$4 sm:$0xff]  }
 0x827   :  { %v2503_v17 = vadd.f32 %v2501_v10, %v2491_v8  ;;  %v2505_v19 = vadd.f32 %v2501_v10, %v2493_v9  ;;  %v10273_v9 = vld [vmem:[%s14058_s11 + $0x114] ss:$8 sps:$4 sm:$0xff]   ;;  %v10271_v10 = vld [vmem:[%s14058_s11 + $0x110] ss:$8 sps:$4 sm:$0xff]  }
 0x828   :  { %vm2506_vm11 = vcmp.ge.f32.partialorder %v2502_v12, 0.0  ;;  %vm2508_vm12 = vcmp.ge.f32.partialorder %v2504_v13, 0.0  ;;  %v2510_v20 = vmul.f32 0.2, %v2502_v12  ;;  %v2512_v22 = vmul.f32 0.2, %v2504_v13 }
 0x829   :  { %vm2507_vm13 = vcmp.ge.f32.partialorder %v2503_v17, 0.0  ;;  %vm2509_vm14 = vcmp.ge.f32.partialorder %v2505_v19, 0.0  ;;  %v2511_v27 = vmul.f32 0.2, %v2503_v17  ;;  %v2513_v29 = vmul.f32 0.2, %v2505_v19 }
 0x82a   :  { %v2514_v30 = vsel %vm2506_vm11, %v2502_v12, %v2510_v20  ;;  %v2516_v32 = vsel %vm2508_vm12, %v2504_v13, %v2512_v22  ;;  %v10276_v12 = vld [vmem:[%s14058_s11 + $0x124] ss:$8 sps:$4 sm:$0xff]  }
 0x82b   :  { %v2515_v25 = vsel %vm2507_vm13, %v2503_v17, %v2511_v27  ;;  %v2517_v33 = vsel %vm2509_vm14, %v2505_v19, %v2513_v29  ;;  %v2518_v37 = vpack.c.bf16 %v2516_v32, %v2514_v30  ;;  %v10274_v19 = vld [vmem:[%s14058_s11 + $0x120] ss:$8 sps:$4 sm:$0xff]   ;;  %v10279_v27 = vld [vmem:[%s14058_s11 + $0x134] ss:$8 sps:$4 sm:$0xff]   ;;  %v10277_v30 = vld [vmem:[%s14058_s11 + $0x130] ss:$8 sps:$4 sm:$0xff]  }
 0x82c   :  { %v2519_v35 = vpack.c.bf16 %v2517_v33, %v2515_v25  ;;  %v10282_v32 = vld [vmem:[%s14058_s11 + $0x144] ss:$8 sps:$4 sm:$0xff]  }
 0x82e   :  { %2525 = vmatprep.subr.bf16.mxu0 %v2519_v35 }
 0x82f   :  { %2526 = vmatpush1.bf16.msra.mxu0 %v2518_v37 }
 0x830   :  { %2573 = vmatprep.subr.bf16.mxu0 %v2519_v35 }
 0x832   :  { %8264 = vmatmul.mubr.msk.bf16.vlgmr.msra.gmra.mrb[24].mxu0 %vm2521_vm15, %v2520_v58  ;;  %v10285_v58 = vld [vmem:[%s14058_s11 + $0x154] ss:$8 sps:$4 sm:$0xff]  }
 0x833   :  { %2574 = vmatpush1.bf16.msra.mxu0 %v2518_v37  ;;  %2605 = vmatprep.mubr.bf16.mxu0 %v14081_v36 }
 0x834   :  { %2621 = vmatprep.subr.bf16.mxu0 %v2519_v35 }
 0x83a   :  { %8266 = vmatmul.mubr.msk.bf16.vlgmr.msra.gmra.mrb[28].mxu0 %vm2521_vm15, %v8265_v62 }
 0x83b   :  { %2622 = vmatpush1.bf16.msra.mxu0 %v2518_v37  ;;  %2653 = vmatprep.mubr.bf16.mxu0 %v14081_v36 }
 0x83c   :  { %2669 = vmatprep.subr.bf16.mxu0 %v2519_v35  ;;  %v10280_v35 = vld [vmem:[%s14058_s11 + $0x140] ss:$8 sps:$4 sm:$0xff]  }
 0x842   :  { %8268 = vmatmul.mubr.msk.bf16.vlgmr.msra.gmra.mrb[32].mxu0 %vm2521_vm15, %v8267_v63  ;;  %v10283_v63 = vld [vmem:[%s14058_s11 + $0x150] ss:$8 sps:$4 sm:$0xff]  }
 0x843   :  { %2670 = vmatpush1.bf16.msra.mxu0 %v2518_v37  ;;  %2701 = vmatprep.mubr.bf16.mxu0 %v14081_v36 }
 0x844   :  { %3480 = vmatprep.subr.bf16.mxu0 %v10222_v5  ;;  %v10288_v5 = vld [vmem:[%s14058_s11 + $0x164] ss:$8 sps:$4 sm:$0xff]  }
 0x84a   :  { %8270 = vmatmul.mubr.msk.bf16.vlgmr.msra.gmra.mrb[36].mxu0 %vm2521_vm15, %v8269_v7 }
 0x84b   :  { %3481 = vmatpush1.bf16.msra.mxu0 %v10220_v16 }
 0x84c   :  { %3482 = vmatprep.subr.bf16.mxu0 %v10225_v18  ;;  %v10286_v18 = vld [vmem:[%s14058_s11 + $0x160] ss:$8 sps:$4 sm:$0xff]  }
 0x84f   :  { %3483 = vmatpush1.bf16.msra.mxu0 %v10223_v31 }
 0x850   :  { %3484 = vmatprep.subr.bf16.mxu0 %v10228_v24  ;;  %v10291_v24 = vld [vmem:[%s14058_s11 + $0x174] ss:$8 sps:$4 sm:$0xff]  }
 0x853   :  { %3485 = vmatpush1.bf16.msra.mxu0 %v10226_v34 }
 0x854   :  { %3486 = vmatprep.subr.bf16.mxu0 %v10231_v38  ;;  %v10289_v38 = vld [vmem:[%s14058_s11 + $0x170] ss:$8 sps:$4 sm:$0xff]  }
 0x857   :  { %3487 = vmatpush1.bf16.msra.mxu0 %v10229_v40  ;;  %v10294_v40 = vld [vmem:[%s14058_s11 + $0x184] ss:$8 sps:$4 sm:$0xff]  }
 0x858   :  { %3488 = vmatprep.subr.bf16.mxu0 %v10234_v42  ;;  %v10292_v42 = vld [vmem:[%s14058_s11 + $0x180] ss:$8 sps:$4 sm:$0xff]  }
 0x85b   :  { %3489 = vmatpush1.bf16.msra.mxu0 %v10232_v43  ;;  %v10297_v43 = vld [vmem:[%s14058_s11 + $0x194] ss:$8 sps:$4 sm:$0xff]  }
 0x85c   :  { %3490 = vmatprep.subr.bf16.mxu0 %v10237_v44  ;;  %v10295_v44 = vld [vmem:[%s14058_s11 + $0x190] ss:$8 sps:$4 sm:$0xff]  }
 0x85f   :  { %3491 = vmatpush1.bf16.msra.mxu0 %v10235_v45  ;;  %v10300_v45 = vld [vmem:[%s14058_s11 + $0x1a4] ss:$8 sps:$4 sm:$0xff]  }
 0x860   :  { %3492 = vmatprep.subr.bf16.mxu0 %v10240_v46  ;;  %v10298_v46 = vld [vmem:[%s14058_s11 + $0x1a0] ss:$8 sps:$4 sm:$0xff]  }
 0x863   :  { %3493 = vmatpush1.bf16.msra.mxu0 %v10238_v47  ;;  %v10303_v47 = vld [vmem:[%s14058_s11 + $0x1b4] ss:$8 sps:$4 sm:$0xff]  }
 0x864   :  { %3494 = vmatprep.subr.bf16.mxu0 %v10243_v48  ;;  %v10301_v48 = vld [vmem:[%s14058_s11 + $0x1b0] ss:$8 sps:$4 sm:$0xff]  }
 0x867   :  { %3495 = vmatpush1.bf16.msra.mxu0 %v10241_v49  ;;  %v10306_v49 = vld [vmem:[%s14058_s11 + $0x1c4] ss:$8 sps:$4 sm:$0xff]  }
 0x868   :  { %3496 = vmatprep.subr.bf16.mxu0 %v10246_v50  ;;  %v10304_v50 = vld [vmem:[%s14058_s11 + $0x1c0] ss:$8 sps:$4 sm:$0xff]  }
 0x86b   :  { %3497 = vmatpush1.bf16.msra.mxu0 %v10244_v51  ;;  %v10309_v51 = vld [vmem:[%s14058_s11 + $0x1d4] ss:$8 sps:$4 sm:$0xff]  }
 0x86c   :  { %3498 = vmatprep.subr.bf16.mxu0 %v10249_v52  ;;  %v10307_v52 = vld [vmem:[%s14058_s11 + $0x1d0] ss:$8 sps:$4 sm:$0xff]  }
 0x86f   :  { %3499 = vmatpush1.bf16.msra.mxu0 %v10247_v53  ;;  %v10312_v53 = vld [vmem:[%s14058_s11 + $0x1e4] ss:$8 sps:$4 sm:$0xff]  }
 0x870   :  { %3500 = vmatprep.subr.bf16.mxu0 %v10252_v54  ;;  %v10310_v54 = vld [vmem:[%s14058_s11 + $0x1e0] ss:$8 sps:$4 sm:$0xff]  }
 0x873   :  { %3501 = vmatpush1.bf16.msra.mxu0 %v10250_v55  ;;  %v10315_v55 = vld [vmem:[%s14058_s11 + $0x1f4] ss:$8 sps:$4 sm:$0xff]  }
 0x874   :  { %3502 = vmatprep.subr.bf16.mxu0 %v10255_v11  ;;  %v10313_v11 = vld [vmem:[%s14058_s11 + $0x1f0] ss:$8 sps:$4 sm:$0xff]  }
 0x877   :  { %3503 = vmatpush1.bf16.msra.mxu0 %v10253_v14  ;;  %v10318_v14 = vld [vmem:[%s14058_s11 + $0x204] ss:$8 sps:$4 sm:$0xff]  }
 0x878   :  { %3504 = vmatprep.subr.bf16.mxu0 %v10258_v15 }
 0x87b   :  { %3505 = vmatpush1.bf16.msra.mxu0 %v10256_v23  ;;  %v10316_v23 = vld [vmem:[%s14058_s11 + $0x200] ss:$8 sps:$4 sm:$0xff]  }
 0x87c   :  { %3506 = vmatprep.subr.bf16.mxu0 %v10261_v26 }
 0x87f   :  { %3507 = vmatpush1.bf16.msra.mxu0 %v10259_v28  ;;  %v10321_v28 = vld [vmem:[%s14058_s11 + $0x214] ss:$8 sps:$4 sm:$0xff]  }
 0x880   :  { %3508 = vmatprep.subr.bf16.mxu0 %v10264_v56  ;;  %v10319_v56 = vld [vmem:[%s14058_s11 + $0x210] ss:$8 sps:$4 sm:$0xff]  }
 0x883   :  { %3509 = vmatpush1.bf16.msra.mxu0 %v10262_v57  ;;  %v10324_v57 = vld [vmem:[%s14058_s11 + $0x224] ss:$8 sps:$4 sm:$0xff]  }
 0x884   :  { %3510 = vmatprep.subr.bf16.mxu0 %v10267_v59  ;;  %v3662_v59 = vld [vmem:[%s14060_s14 + $0x80] sm:$0xff] }
 0x887   :  { %3511 = vmatpush1.bf16.msra.mxu0 %v10265_v60  ;;  %v3663_v60 = vld [vmem:[%s14060_s14 + $0x88] sm:$0xff] }
 0x888   :  { %3521 = vmatprep.subr.bf16.mxu0 %v10270_v61  ;;  %v3646_v61 = vld [vmem:[%s14060_s14] sm:$0xff] }
 0x905   :  { %v2559_v0 = vpop.f32.mrb[24].mxu0 }
 0x906   :  { %v2561_v1 = vpop.f32.mrb[25].mxu0  ;;  %v2566_v6 = vpack.c.bf16 %v2559_v0, %v2559_v0  ;;  %v12052_v0 = vpack.c.bf16 %v3663_v60, %v3662_v59  ;;  %v10369_v60 = vld [vmem:[%s14058_s11 + $0x314] ss:$8 sps:$4 sm:$0xff]  }
 0x907   :  { %v2567_v2 = vpack.c.bf16 %v2561_v1, %v2561_v1  ;;  %v2563_v3 = vpop.f32.mrb[26].mxu0  ;;  %v3647_v1 = vld [vmem:[%s14060_s14 + $0x8] sm:$0xff] }
 0x908   :  { %v2564_v8 = vpop.f32.mrb[27].mxu0  ;;  %v3665_v3 = vld [vmem:[%s14060_s14 + $0x98] sm:$0xff]  ;;  %9541 = vmatprep.subr.bf16.mxu1 %v12052_v0 }
 0x909   :  { %3512 = vmatprep.mubr.bf16.mxu0 %v2567_v2  ;;  %v3664_v2 = vld [vmem:[%s14060_s14 + $0x90] sm:$0xff] }
 0x90a   :  { %3513 = vmatmul.mubr.bf16.vlgmr.msra.gmra.mrb[40].mxu0 %v2566_v6  ;;  %v12065_v6 = vpack.c.bf16 %v3665_v3, %v3664_v2  ;;  %v3648_v8 = vld [vmem:[%s14060_s14 + $0x10] sm:$0xff]  ;;  %v10378_v3 = vld [vmem:[%s14058_s11 + $0x344] ss:$8 sps:$4 sm:$0xff]  }
 0x90b   :  { %3522 = vmatpush1.bf16.msra.mxu0 %v10268_v4  ;;  %v12063_v4 = vpack.c.bf16 %v3647_v1, %v3646_v61  ;;  %v10367_v61 = vld [vmem:[%s14058_s11 + $0x310] ss:$8 sps:$4 sm:$0xff]   ;;  %v10375_v1 = vld [vmem:[%s14058_s11 + $0x334] ss:$8 sps:$4 sm:$0xff]  }
 0x90c   :  { %3523 = vmatprep.subr.bf16.mxu0 %v10273_v9  ;;  %v3649_v9 = vld [vmem:[%s14060_s14 + $0x18] sm:$0xff] }
 0x90d   :  { %v11933_v13 = vpop.f32.mrb[28].mxu0  ;;  %9543 = vmatpush3.bf16.msra.mxu1 %v12063_v4  ;;  %v10373_v2 = vld [vmem:[%s14058_s11 + $0x330] ss:$8 sps:$4 sm:$0xff]  }
 0x90e   :  { %v2609_v17 = vpop.f32.mrb[29].mxu0  ;;  %v2614_v15 = vpack.c.bf16 %v11933_v13, %v11933_v13  ;;  %v10322_v13 = vld [vmem:[%s14058_s11 + $0x220] ss:$8 sps:$4 sm:$0xff]   ;;  %9545 = vmatprep.subr.bf16.mxu1 %v12065_v6 }
 0x90f   :  { %3524 = vmatpush1.bf16.msra.mxu0 %v10271_v10  ;;  %v2615_v20 = vpack.c.bf16 %v2609_v17, %v2609_v17  ;;  %v2611_v22 = vpop.f32.mrb[30].mxu0  ;;  %v3666_v10 = vld [vmem:[%s14060_s14 + $0xa0] sm:$0xff]  ;;  %v12084_v17 = vpack.c.bf16 %v3649_v9, %v3648_v8  ;;  %v10381_v9 = vld [vmem:[%s14058_s11 + $0x354] ss:$8 sps:$4 sm:$0xff]  }
 0x910   :  { %3525 = vmatprep.subr.bf16.mxu0 %v10276_v12  ;;  %v2612_v29 = vpop.f32.mrb[31].mxu0  ;;  %v3667_v12 = vld [vmem:[%s14060_s14 + $0xa8] sm:$0xff]  ;;  %v3650_v22 = vld [vmem:[%s14060_s14 + $0x20] sm:$0xff] }
 0x911   :  { %3553 = vmatprep.mubr.bf16.mxu0 %v2615_v20  ;;  %v12090_v20 = vpack.c.bf16 %v3667_v12, %v3666_v10  ;;  %v3668_v29 = vld [vmem:[%s14060_s14 + $0xb0] sm:$0xff]  ;;  %9547 = vmatpush3.bf16.msra.mxu1 %v12084_v17  ;;  %v10376_v8 = vld [vmem:[%s14058_s11 + $0x340] ss:$8 sps:$4 sm:$0xff]   ;;  %v10384_v12 = vld [vmem:[%s14058_s11 + $0x364] ss:$8 sps:$4 sm:$0xff]  }
 0x912   :  { %v10379_v10 = vld [vmem:[%s14058_s11 + $0x350] ss:$8 sps:$4 sm:$0xff]  }
 0x913   :  { %3526 = vmatpush1.bf16.msra.mxu0 %v10274_v19  ;;  %v10327_v19 = vld [vmem:[%s14058_s11 + $0x234] ss:$8 sps:$4 sm:$0xff]   ;;  %9549 = vmatprep.subr.bf16.mxu1 %v12090_v20 }
 0x914   :  { %3527 = vmatprep.subr.bf16.mxu0 %v10279_v27  ;;  %v3651_v27 = vld [vmem:[%s14060_s14 + $0x28] sm:$0xff] }
 0x915   :  { %v11947_v25 = vpop.f32.mrb[32].mxu0 }
 0x916   :  { %v11949_v33 = vpop.f32.mrb[33].mxu0 }
 0x917   :  { %3528 = vmatpush1.bf16.msra.mxu0 %v10277_v30  ;;  %v2659_v37 = vpop.f32.mrb[34].mxu0  ;;  %v2663_v26 = vpack.c.bf16 %v11949_v33, %v11949_v33  ;;  %v3669_v30 = vld [vmem:[%s14060_s14 + $0xb8] sm:$0xff]  ;;  %v12108_v33 = vpack.c.bf16 %v3651_v27, %v3650_v22  ;;  %v10390_v27 = vld [vmem:[%s14058_s11 + $0x384] ss:$8 sps:$4 sm:$0xff]  }
 0x918   :  { %3529 = vmatprep.subr.bf16.mxu0 %v10282_v32  ;;  %v2660_v62 = vpop.f32.mrb[35].mxu0  ;;  %v10325_v32 = vld [vmem:[%s14058_s11 + $0x230] ss:$8 sps:$4 sm:$0xff]   ;;  %v12114_v37 = vpack.c.bf16 %v3669_v30, %v3668_v29  ;;  %v10388_v29 = vld [vmem:[%s14058_s11 + $0x380] ss:$8 sps:$4 sm:$0xff]  }
 0x919   :  { %v3653_v62 = vld [vmem:[%s14060_s14 + $0x38] sm:$0xff]  ;;  %9551 = vmatpush3.bf16.msra.mxu1 %v12108_v33 }
 0x91a   :  { %9553 = vmatprep.subr.bf16.mxu1 %v12114_v37  ;;  %v10385_v22 = vld [vmem:[%s14058_s11 + $0x370] ss:$8 sps:$4 sm:$0xff]   ;;  %v10393_v30 = vld [vmem:[%s14058_s11 + $0x394] ss:$8 sps:$4 sm:$0xff]  }
 0x91b   :  { %3530 = vmatpush1.bf16.msra.mxu0 %v10280_v35  ;;  %v10330_v35 = vld [vmem:[%s14058_s11 + $0x244] ss:$8 sps:$4 sm:$0xff]  }
 0x91c   :  { %3531 = vmatprep.subr.bf16.mxu0 %v10285_v58  ;;  %v3652_v58 = vld [vmem:[%s14060_s14 + $0x30] sm:$0xff] }
 0x91d   :  { %v11963_v7 = vpop.f32.mrb[36].mxu0 }
 0x91e   :  { %v11965_v16 = vpop.f32.mrb[37].mxu0 }
 0x91f   :  { %3532 = vmatpush1.bf16.msra.mxu0 %v10283_v63  ;;  %v2707_v31 = vpop.f32.mrb[38].mxu0  ;;  %v3670_v63 = vld [vmem:[%s14060_s14 + $0xc0] sm:$0xff]  ;;  %v2711_v59 = vpack.c.bf16 %v11965_v16, %v11965_v16 }
 0x920   :  { %3533 = vmatprep.subr.bf16.mxu0 %v10288_v5  ;;  %v2708_v34 = vpop.f32.mrb[39].mxu0  ;;  %v3671_v5 = vld [vmem:[%s14060_s14 + $0xc8] sm:$0xff]  ;;  %v12132_v31 = vpack.c.bf16 %v3653_v62, %v3652_v58  ;;  %v10399_v62 = vld [vmem:[%s14058_s11 + $0x3b4] ss:$8 sps:$4 sm:$0xff]  }
 0x921   :  { %v12138_v34 = vpack.c.bf16 %v3671_v5, %v3670_v63  ;;  %v10370_v16 = vld [vmem:[%s14058_s11 + $0x320] ss:$8 sps:$4 sm:$0xff]   ;;  %v10397_v63 = vld [vmem:[%s14058_s11 + $0x3b0] ss:$8 sps:$4 sm:$0xff]   ;;  %v10402_v5 = vld [vmem:[%s14058_s11 + $0x3c4] ss:$8 sps:$4 sm:$0xff]  }
 0x922   :  { %9555 = vmatpush3.bf16.msra.mxu1 %v12132_v31  ;;  %v10394_v58 = vld [vmem:[%s14058_s11 + $0x3a0] ss:$8 sps:$4 sm:$0xff]  }
 0x923   :  { %3534 = vmatpush1.bf16.msra.mxu0 %v10286_v18  ;;  %v10328_v18 = vld [vmem:[%s14058_s11 + $0x240] ss:$8 sps:$4 sm:$0xff]   ;;  %9557 = vmatprep.subr.bf16.mxu1 %v12138_v34 }
 0x924   :  { %3535 = vmatprep.subr.bf16.mxu0 %v10291_v24  ;;  %v10333_v24 = vld [vmem:[%s14058_s11 + $0x254] ss:$8 sps:$4 sm:$0xff]  }
 0x927   :  { %3536 = vmatpush1.bf16.msra.mxu0 %v10289_v38  ;;  %v10331_v38 = vld [vmem:[%s14058_s11 + $0x250] ss:$8 sps:$4 sm:$0xff]  }
 0x928   :  { %3537 = vmatprep.subr.bf16.mxu0 %v10294_v40  ;;  %v10336_v40 = vld [vmem:[%s14058_s11 + $0x264] ss:$8 sps:$4 sm:$0xff]  }
 0x92b   :  { %3538 = vmatpush1.bf16.msra.mxu0 %v10292_v42  ;;  %v10334_v42 = vld [vmem:[%s14058_s11 + $0x260] ss:$8 sps:$4 sm:$0xff]  }
 0x92c   :  { %3539 = vmatprep.subr.bf16.mxu0 %v10297_v43  ;;  %v10339_v43 = vld [vmem:[%s14058_s11 + $0x274] ss:$8 sps:$4 sm:$0xff]  }
 0x92f   :  { %3540 = vmatpush1.bf16.msra.mxu0 %v10295_v44  ;;  %v10337_v44 = vld [vmem:[%s14058_s11 + $0x270] ss:$8 sps:$4 sm:$0xff]  }
 0x930   :  { %3541 = vmatprep.subr.bf16.mxu0 %v10300_v45  ;;  %v10342_v45 = vld [vmem:[%s14058_s11 + $0x284] ss:$8 sps:$4 sm:$0xff]  }
 0x933   :  { %3542 = vmatpush1.bf16.msra.mxu0 %v10298_v46  ;;  %v10340_v46 = vld [vmem:[%s14058_s11 + $0x280] ss:$8 sps:$4 sm:$0xff]  }
 0x934   :  { %3543 = vmatprep.subr.bf16.mxu0 %v10303_v47  ;;  %v10345_v47 = vld [vmem:[%s14058_s11 + $0x294] ss:$8 sps:$4 sm:$0xff]  }
 0x937   :  { %3544 = vmatpush1.bf16.msra.mxu0 %v10301_v48  ;;  %v10343_v48 = vld [vmem:[%s14058_s11 + $0x290] ss:$8 sps:$4 sm:$0xff]  }
 0x938   :  { %3545 = vmatprep.subr.bf16.mxu0 %v10306_v49  ;;  %v10348_v49 = vld [vmem:[%s14058_s11 + $0x2a4] ss:$8 sps:$4 sm:$0xff]  }
 0x93b   :  { %3546 = vmatpush1.bf16.msra.mxu0 %v10304_v50  ;;  %v10346_v50 = vld [vmem:[%s14058_s11 + $0x2a0] ss:$8 sps:$4 sm:$0xff]  }
 0x93c   :  { %3547 = vmatprep.subr.bf16.mxu0 %v10309_v51  ;;  %v10351_v51 = vld [vmem:[%s14058_s11 + $0x2b4] ss:$8 sps:$4 sm:$0xff]  }
 0x93f   :  { %3548 = vmatpush1.bf16.msra.mxu0 %v10307_v52  ;;  %v10349_v52 = vld [vmem:[%s14058_s11 + $0x2b0] ss:$8 sps:$4 sm:$0xff]  }
 0x940   :  { %3549 = vmatprep.subr.bf16.mxu0 %v10312_v53  ;;  %v10354_v53 = vld [vmem:[%s14058_s11 + $0x2c4] ss:$8 sps:$4 sm:$0xff]  }
 0x943   :  { %3550 = vmatpush1.bf16.msra.mxu0 %v10310_v54  ;;  %v10352_v54 = vld [vmem:[%s14058_s11 + $0x2c0] ss:$8 sps:$4 sm:$0xff]  }
 0x944   :  { %3551 = vmatprep.subr.bf16.mxu0 %v10315_v55  ;;  %v10357_v55 = vld [vmem:[%s14058_s11 + $0x2d4] ss:$8 sps:$4 sm:$0xff]  }
 0x947   :  { %3552 = vmatpush1.bf16.msra.mxu0 %v10313_v11  ;;  %v10355_v11 = vld [vmem:[%s14058_s11 + $0x2d0] ss:$8 sps:$4 sm:$0xff]  }
 0x948   :  { %3562 = vmatprep.subr.bf16.mxu0 %v10318_v14  ;;  %v10360_v14 = vld [vmem:[%s14058_s11 + $0x2e4] ss:$8 sps:$4 sm:$0xff]  }
 0x94a   :  { %3554 = vmatmul.mubr.bf16.vlgmr.msra.gmra.mrb[40].mxu0 %v2614_v15  ;;  %v10358_v15 = vld [vmem:[%s14058_s11 + $0x2e0] ss:$8 sps:$4 sm:$0xff]  }
 0x94b   :  { %3563 = vmatpush1.bf16.msra.mxu0 %v10316_v23  ;;  %3594 = vmatprep.mubr.bf16.mxu0 %v2663_v26  ;;  %v10363_v23 = vld [vmem:[%s14058_s11 + $0x2f4] ss:$8 sps:$4 sm:$0xff]   ;;  %v10361_v26 = vld [vmem:[%s14058_s11 + $0x2f0] ss:$8 sps:$4 sm:$0xff]  }
 0x94c   :  { %3564 = vmatprep.subr.bf16.mxu0 %v10321_v28  ;;  %v10366_v28 = vld [vmem:[%s14058_s11 + $0x304] ss:$8 sps:$4 sm:$0xff]  }
 0x94f   :  { %3565 = vmatpush1.bf16.msra.mxu0 %v10319_v56  ;;  %v2662_v56 = vpack.c.bf16 %v11947_v25, %v11947_v25  ;;  %v10372_v25 = vld [vmem:[%s14058_s11 + $0x324] ss:$8 sps:$4 sm:$0xff]  }
 0x950   :  { %3566 = vmatprep.subr.bf16.mxu0 %v10324_v57  ;;  %v10364_v57 = vld [vmem:[%s14058_s11 + $0x300] ss:$8 sps:$4 sm:$0xff]  }
 0x953   :  { %3567 = vmatpush1.bf16.msra.mxu0 %v10322_v13  ;;  %v10382_v13 = vld [vmem:[%s14058_s11 + $0x360] ss:$8 sps:$4 sm:$0xff]  }
 0x954   :  { %3568 = vmatprep.subr.bf16.mxu0 %v10327_v19  ;;  %v10387_v19 = vld [vmem:[%s14058_s11 + $0x374] ss:$8 sps:$4 sm:$0xff]  }
 0x957   :  { %3569 = vmatpush1.bf16.msra.mxu0 %v10325_v32  ;;  %v10391_v32 = vld [vmem:[%s14058_s11 + $0x390] ss:$8 sps:$4 sm:$0xff]  }
 0x958   :  { %3570 = vmatprep.subr.bf16.mxu0 %v10330_v35  ;;  %v10396_v35 = vld [vmem:[%s14058_s11 + $0x3a4] ss:$8 sps:$4 sm:$0xff]  }
 0x95b   :  { %3571 = vmatpush1.bf16.msra.mxu0 %v10328_v18  ;;  %v10400_v18 = vld [vmem:[%s14058_s11 + $0x3c0] ss:$8 sps:$4 sm:$0xff]  }
 0x95c   :  { %3572 = vmatprep.subr.bf16.mxu0 %v10333_v24  ;;  %v10405_v24 = vld [vmem:[%s14058_s11 + $0x3d4] ss:$8 sps:$4 sm:$0xff]  }
 0x95f   :  { %3573 = vmatpush1.bf16.msra.mxu0 %v10331_v38  ;;  %v10403_v38 = vld [vmem:[%s14058_s11 + $0x3d0] ss:$8 sps:$4 sm:$0xff]  }
 0x960   :  { %3574 = vmatprep.subr.bf16.mxu0 %v10336_v40  ;;  %v10408_v40 = vld [vmem:[%s14058_s11 + $0x3e4] ss:$8 sps:$4 sm:$0xff]  }
 0x963   :  { %3575 = vmatpush1.bf16.msra.mxu0 %v10334_v42  ;;  %v10406_v42 = vld [vmem:[%s14058_s11 + $0x3e0] ss:$8 sps:$4 sm:$0xff]  }
 0x964   :  { %3576 = vmatprep.subr.bf16.mxu0 %v10339_v43  ;;  %v10411_v43 = vld [vmem:[%s14058_s11 + $0x3f4] ss:$8 sps:$4 sm:$0xff]  }
 0x967   :  { %3577 = vmatpush1.bf16.msra.mxu0 %v10337_v44  ;;  %v10409_v44 = vld [vmem:[%s14058_s11 + $0x3f0] ss:$8 sps:$4 sm:$0xff]  }
 0x968   :  { %3578 = vmatprep.subr.bf16.mxu0 %v10342_v45  ;;  %v2710_v45 = vpack.c.bf16 %v11963_v7, %v11963_v7  ;;  %v3673_v7 = vld [vmem:[%s14060_s14 + $0xd8] sm:$0xff] }
 0x96b   :  { %3579 = vmatpush1.bf16.msra.mxu0 %v10340_v46  ;;  %v3654_v46 = vld [vmem:[%s14060_s14 + $0x40] sm:$0xff] }
 0x96c   :  { %3580 = vmatprep.subr.bf16.mxu0 %v10345_v47  ;;  %v3655_v47 = vld [vmem:[%s14060_s14 + $0x48] sm:$0xff] }
 0x96f   :  { %3581 = vmatpush1.bf16.msra.mxu0 %v10343_v48  ;;  %v12313_v48 = vpack.c.bf16 %v3655_v47, %v3654_v46  ;;  %v3686_v47 = vld [vmem:[%s14061_s15 + $0x40] sm:$0xff] }
 0x970   :  { %3582 = vmatprep.subr.bf16.mxu0 %v10348_v49  ;;  %v3672_v49 = vld [vmem:[%s14060_s14 + $0xd0] sm:$0xff] }
 0x971   :  { %9559 = vmatpush3.bf16.msra.mxu1 %v12313_v48 }
 0x973   :  { %3583 = vmatpush1.bf16.msra.mxu0 %v10346_v50  ;;  %v12322_v50 = vpack.c.bf16 %v3673_v7, %v3672_v49  ;;  %v3688_v49 = vld [vmem:[%s14061_s15 + $0x50] sm:$0xff] }
 0x974   :  { %3584 = vmatprep.subr.bf16.mxu0 %v10351_v51  ;;  %v3656_v51 = vld [vmem:[%s14060_s14 + $0x50] sm:$0xff]  ;;  %v9582_v7 = vpack.c.bf16 %v3688_v49, %v3686_v47 }
 0x975   :  { %9561 = vmatprep.subr.bf16.mxu1 %v12322_v50 }
 0x977   :  { %3585 = vmatpush1.bf16.msra.mxu0 %v10349_v52  ;;  %v3657_v52 = vld [vmem:[%s14060_s14 + $0x58] sm:$0xff] }
 0x978   :  { %3586 = vmatprep.subr.bf16.mxu0 %v10354_v53  ;;  %v12330_v53 = vpack.c.bf16 %v3657_v52, %v3656_v51  ;;  %v3691_v51 = vld [vmem:[%s14061_s15 + $0x68] sm:$0xff]  ;;  %v3693_v52 = vld [vmem:[%s14061_s15 + $0x78] sm:$0xff] }
 0x97a   :  { %9563 = vmatpush3.bf16.msra.mxu1 %v12330_v53 }
 0x97b   :  { %3587 = vmatpush1.bf16.msra.mxu0 %v10352_v54  ;;  %v3674_v54 = vld [vmem:[%s14060_s14 + $0xe0] sm:$0xff] }
 0x97c   :  { %3588 = vmatprep.subr.bf16.mxu0 %v10357_v55  ;;  %v3675_v55 = vld [vmem:[%s14060_s14 + $0xe8] sm:$0xff] }
 0x97f   :  { %3589 = vmatpush1.bf16.msra.mxu0 %v10355_v11  ;;  %v12340_v11 = vpack.c.bf16 %v3675_v55, %v3674_v54  ;;  %v9584_v54 = vpack.c.bf16 %v3693_v52, %v3691_v51  ;;  %v3690_v55 = vld [vmem:[%s14061_s15 + $0x60] sm:$0xff] }
 0x980   :  { %3590 = vmatprep.subr.bf16.mxu0 %v10360_v14  ;;  %v3658_v14 = vld [vmem:[%s14060_s14 + $0x60] sm:$0xff] }
 0x981   :  { %9565 = vmatprep.subr.bf16.mxu1 %v12340_v11 }
 0x983   :  { %3591 = vmatpush1.bf16.msra.mxu0 %v10358_v15  ;;  %v3659_v15 = vld [vmem:[%s14060_s14 + $0x68] sm:$0xff] }
 0x984   :  { %3592 = vmatprep.subr.bf16.mxu0 %v10363_v23  ;;  %v12348_v23 = vpack.c.bf16 %v3659_v15, %v3658_v14  ;;  %v3692_v14 = vld [vmem:[%s14061_s15 + $0x70] sm:$0xff] }
 0x985   :  { %v9586_v15 = vpack.c.bf16 %v3692_v14, %v3690_v55 }
 0x986   :  { %9567 = vmatpush3.bf16.msra.mxu1 %v12348_v23 }
 0x987   :  { %3593 = vmatpush1.bf16.msra.mxu0 %v10361_v26  ;;  %v3676_v26 = vld [vmem:[%s14060_s14 + $0xf0] sm:$0xff] }
 0x988   :  { %3603 = vmatprep.subr.bf16.mxu0 %v10366_v28  ;;  %v3677_v28 = vld [vmem:[%s14060_s14 + $0xf8] sm:$0xff] }
 0x98a   :  { %3595 = vmatmul.mubr.bf16.vlgmr.msra.gmra.mrb[40].mxu0 %v2662_v56  ;;  %v12358_v56 = vpack.c.bf16 %v3677_v28, %v3676_v26 }
 0x98b   :  { %3604 = vmatpush1.bf16.msra.mxu0 %v10364_v57  ;;  %3635 = vmatprep.mubr.bf16.mxu0 %v2711_v59  ;;  %v3660_v57 = vld [vmem:[%s14060_s14 + $0x70] sm:$0xff]  ;;  %v3661_v59 = vld [vmem:[%s14060_s14 + $0x78] sm:$0xff] }
 0x98c   :  { %3605 = vmatprep.subr.bf16.mxu0 %v10369_v60  ;;  %v12366_v60 = vpack.c.bf16 %v3661_v59, %v3660_v57  ;;  %9569 = vmatprep.subr.bf16.mxu1 %v12358_v56 }
 0x98e   :  { %9571 = vmatpush3.bf16.msra.mxu1 %v12366_v60 }
 0x98f   :  { %3606 = vmatpush1.bf16.msra.mxu0 %v10367_v61  ;;  %v3679_v61 = vld [vmem:[%s14061_s15 + $0x8] sm:$0xff] }
 0x990   :  { %3607 = vmatprep.subr.bf16.mxu0 %v10372_v25  ;;  %v3681_v25 = vld [vmem:[%s14061_s15 + $0x18] sm:$0xff] }
 0x993   :  { %3608 = vmatpush1.bf16.msra.mxu0 %v10370_v16  ;;  %v12376_v16 = vpack.c.bf16 %v3681_v25, %v3679_v61 }
 0x994   :  { %3609 = vmatprep.subr.bf16.mxu0 %v10375_v1 }
 0x995   :  { %9573 = vmatprep.subr.bf16.mxu1 %v12376_v16 }
 0x997   :  { %3610 = vmatpush1.bf16.msra.mxu0 %v10373_v2 }
 0x998   :  { %3611 = vmatprep.subr.bf16.mxu0 %v10378_v3 }
 0x99b   :  { %3612 = vmatpush1.bf16.msra.mxu0 %v10376_v8 }
 0x99c   :  { %3613 = vmatprep.subr.bf16.mxu0 %v10381_v9 }
 0x99f   :  { %3614 = vmatpush1.bf16.msra.mxu0 %v10379_v10 }
 0x9a0   :  { %3615 = vmatprep.subr.bf16.mxu0 %v10384_v12 }
 0x9a3   :  { %3616 = vmatpush1.bf16.msra.mxu0 %v10382_v13 }
 0x9a4   :  { %3617 = vmatprep.subr.bf16.mxu0 %v10387_v19 }
 0x9a7   :  { %3618 = vmatpush1.bf16.msra.mxu0 %v10385_v22 }
 0x9a8   :  { %3619 = vmatprep.subr.bf16.mxu0 %v10390_v27 }
 0x9ab   :  { %3620 = vmatpush1.bf16.msra.mxu0 %v10388_v29 }
 0x9ac   :  { %3621 = vmatprep.subr.bf16.mxu0 %v10393_v30 }
 0x9af   :  { %3622 = vmatpush1.bf16.msra.mxu0 %v10391_v32  ;;  %v3678_v32 = vld [vmem:[%s14061_s15] sm:$0xff] }
 0x9b0   :  { %3623 = vmatprep.subr.bf16.mxu0 %v10396_v35  ;;  %v3680_v35 = vld [vmem:[%s14061_s15 + $0x10] sm:$0xff] }
 0x9b3   :  { %3624 = vmatpush1.bf16.msra.mxu0 %v10394_v58 }
 0x9b4   :  { %3625 = vmatprep.subr.bf16.mxu0 %v10399_v62  ;;  %v3683_v62 = vld [vmem:[%s14061_s15 + $0x28] sm:$0xff] }
 0x9b7   :  { %3626 = vmatpush1.bf16.msra.mxu0 %v10397_v63  ;;  %v3685_v63 = vld [vmem:[%s14061_s15 + $0x38] sm:$0xff] }
 0x9b8   :  { %3627 = vmatprep.subr.bf16.mxu0 %v10402_v5 }
 0x9bb   :  { %3628 = vmatpush1.bf16.msra.mxu0 %v10400_v18  ;;  %v12399_v18 = vpack.c.bf16 %v3680_v35, %v3678_v32  ;;  %v10444_v32 = vld [vmem:[%s14064_s17 + $0xe0] ss:$12 sps:$4 sm:$0xff]  }
 0x9bc   :  { %3629 = vmatprep.subr.bf16.mxu0 %v10405_v24  ;;  %v10445_v35 = vld [vmem:[%s14064_s17 + $0x20] ss:$12 sps:$4 sm:$0xff]  }
 0x9bf   :  { %3630 = vmatpush1.bf16.msra.mxu0 %v10403_v38  ;;  %v12401_v38 = vpack.c.bf16 %v3685_v63, %v3683_v62  ;;  %v10450_v62 = vld [vmem:[%s14064_s17 + $0x38] ss:$12 sps:$4 sm:$0xff]   ;;  %v10454_v63 = vld [vmem:[%s14064_s17 + $0x110] ss:$12 sps:$4 sm:$0xff]  }
 0x9c0   :  { %3631 = vmatprep.subr.bf16.mxu0 %v10408_v40  ;;  %v3682_v40 = vld [vmem:[%s14061_s15 + $0x20] sm:$0xff] }
 0x9c3   :  { %3632 = vmatpush1.bf16.msra.mxu0 %v10406_v42  ;;  %v3684_v42 = vld [vmem:[%s14061_s15 + $0x30] sm:$0xff] }
 0x9c4   :  { %3633 = vmatprep.subr.bf16.mxu0 %v10411_v43  ;;  %v3687_v43 = vld [vmem:[%s14061_s15 + $0x48] sm:$0xff] }
 0x9c7   :  { %3634 = vmatpush1.bf16.msra.mxu0 %v10409_v44  ;;  %v3689_v44 = vld [vmem:[%s14061_s15 + $0x58] sm:$0xff] }
 0x9c8   :  { %v9580_v46 = vpack.c.bf16 %v3689_v44, %v3687_v43  ;;  %v10470_v43 = vld [vmem:[%s14064_s17 + $0x98] ss:$12 sps:$4 sm:$0xff]  }
 0x9ca   :  { %3636 = vmatmul.mubr.bf16.vlgmr.msra.gmra.mrb[40].mxu0 %v2710_v45  ;;  %v12416_v45 = vpack.c.bf16 %v3684_v42, %v3682_v40  ;;  %v10465_v40 = vld [vmem:[%s14064_s17 + $0x80] ss:$12 sps:$4 sm:$0xff]   ;;  %v10469_v42 = vld [vmem:[%s14064_s17 + $0x158] ss:$12 sps:$4 sm:$0xff]  }
 0xa9d   :  { %v12379_v1 = vpop.f32.mrb[40].mxu0 }
 0xa9e   :  { %v3694_v2 = vrot.slane %v12379_v1, 4  ;;  %v12382_v3 = vpop.f32.mrb[41].mxu0 }
 0xa9f   :  { %v3700_v8 = vrot.slane %v12382_v3, 4  ;;  %v3641_v9 = vpop.f32.mrb[42].mxu0 }
 0xaa0   :  { %v3695_v10 = vadd.f32 %v3694_v2, %v12379_v1  ;;  %v3642_v12 = vpop.f32.mrb[43].mxu0 }
 0xaa1   :  { %v3701_v13 = vadd.f32 %v3700_v8, %v12382_v3  ;;  %v3644_v12 = vld [vmem:[%s14062_s12] sm:$0x1] }
 0xaa2   :  { %v3696_v19 = vrot.slane %v3695_v10, 2 }
 0xaa3   :  { %v3702_v22 = vrot.slane %v3701_v13, 2 }
 0xaa4   :  { %v3697_v27 = vadd.f32 %v3696_v19, %v3695_v10  ;;  %v8400_v19 = vld [vmem:[%s14063_s13] ss:$0 sm:$0xff] }
 0xaa5   :  { %v3703_v29 = vadd.f32 %v3702_v22, %v3701_v13 }
 0xaa6   :  { %v3698_v30 = vrot.slane %v3697_v27, 1 }
 0xaa7   :  { %v3704_v58 = vrot.slane %v3703_v29, 1 }
 0xaa8   :  { %v3699_v24 = vadd.f32 %v3698_v30, %v3697_v27  ;;  %v10440_v30 = vld [vmem:[%s14064_s17 + $0x8] ss:$12 sps:$4 sm:$0xff]  }
 0xaa9   :  { %v3705_v5 = vadd.f32 %v3704_v58, %v3703_v29  ;;  %v10439_v29 = vld [vmem:[%s14064_s17 + $0xc8] ss:$12 sps:$4 sm:$0xff]   ;;  %v10449_v58 = vld [vmem:[%s14064_s17 + $0xf8] ss:$12 sps:$4 sm:$0xff]  }
 0xaaa   :  { %8882 = vmatprep.subr.bf16.mxu0 %v10439_v29  ;;  %v10456_v29 = vld [vmem:[%s14064_s17 + $0x120] ss:$12 sps:$4 sm:$0xff]  }
 0xaab   :  { %3770 = vmatprep.mubr.f32.mxu1 %v3705_v5  ;;  %8883 = vmatpush3.bf16.msra.mxu0 %v10440_v30  ;;  %v10455_v5 = vld [vmem:[%s14064_s17 + $0x50] ss:$12 sps:$4 sm:$0xff]  }
 0xaac   :  { %3771 = vmatmul.mubr.f32.vlgmr.msra.gmra.mrb[28].mxu1 %v3699_v24  ;;  %8884 = vmatprep.subr.bf16.mxu0 %v10444_v32  ;;  %v10460_v24 = vld [vmem:[%s14064_s17 + $0x68] ss:$12 sps:$4 sm:$0xff]   ;;  %v10461_v32 = vld [vmem:[%s14064_s17 + $0x138] ss:$12 sps:$4 sm:$0xff]  }
 0xaad   :  { %9575 = vmatpush1.bf16.msra.mxu1 %v12399_v18  ;;  %3844 = vmatprep.mubr.f32.mxu1 %v10771_v21  ;;  %v10463_v30 = vld [vmem:[%s14064_s17 + $0x13c] ss:$12 sps:$4 sm:$0xff]  }
 0xaae   :  { %9577 = vmatprep.subr.bf16.mxu1 %v12401_v38 }
 0xaaf   :  { %8885 = vmatpush3.bf16.msra.mxu0 %v10445_v35  ;;  %v10468_v35 = vld [vmem:[%s14064_s17 + $0x154] ss:$12 sps:$4 sm:$0xff]  }
 0xab0   :  { %8886 = vmatprep.subr.bf16.mxu0 %v10449_v58  ;;  %v10466_v58 = vld [vmem:[%s14064_s17 + $0x150] ss:$12 sps:$4 sm:$0xff]  }
 0xab1   :  { %9579 = vmatpush1.bf16.msra.mxu1 %v12416_v45 }
 0xab2   :  { %9581 = vmatprep.subr.bf16.mxu1 %v9580_v46 }
 0xab3   :  { %8887 = vmatpush3.bf16.msra.mxu0 %v10450_v62  ;;  %v10473_v62 = vld [vmem:[%s14064_s17 + $0x16c] ss:$12 sps:$4 sm:$0xff]  }
 0xab4   :  { %8888 = vmatprep.subr.bf16.mxu0 %v10454_v63  ;;  %v10474_v63 = vld [vmem:[%s14064_s17 + $0x170] ss:$12 sps:$4 sm:$0xff]  }
 0xab5   :  { %9583 = vmatpush1.bf16.msra.mxu1 %v9582_v7 }
 0xab6   :  { %9585 = vmatprep.subr.bf16.mxu1 %v9584_v54 }
 0xab7   :  { %8889 = vmatpush3.bf16.msra.mxu0 %v10455_v5  ;;  %v10471_v5 = vld [vmem:[%s14064_s17 + $0x168] ss:$12 sps:$4 sm:$0xff]  }
 0xab9   :  { %9587 = vmatpush1.bf16.msra.mxu1 %v9586_v15 }
 0xaba   :  { %9589 = vmatprep.subr.bf16.mxu1 %v12052_v0 }
 0xb7f   :  { %v8844_v26 = vpop.f32.mrb[28].mxu1 }
 0xb80   :  { %v8845_v28 = vpop.f32.mrb[29].mxu1 }
 0xb81   :  { %v8846_v57 = vadd.f32 %v8845_v28, %v8844_v26 }
 0xb83   :  { %v3776_v59 = vmul.f32 0.03125, %v8846_v57 }
 0xb85   :  { %8399 = vmatmul.mubr.msk.f32.vlgmr.msra.gmra.mrb[30].mxu1 %vm127_vm0, %v3776_v59 }
 0xb86   :  { %9591 = vmatpush3.bf16.msra.mxu1 %v12063_v4 }
 0xb87   :  { %9593 = vmatprep.subr.bf16.mxu1 %v12065_v6 }
 0xb8a   :  { %9595 = vmatpush3.bf16.msra.mxu1 %v12084_v17 }
 0xb8b   :  { %9597 = vmatprep.subr.bf16.mxu1 %v12090_v20 }
 0xb8e   :  { %9599 = vmatpush3.bf16.msra.mxu1 %v12108_v33 }
 0xb8f   :  { %9601 = vmatprep.subr.bf16.mxu1 %v12114_v37 }
 0xb92   :  { %9603 = vmatpush3.bf16.msra.mxu1 %v12132_v31 }
 0xb93   :  { %9605 = vmatprep.subr.bf16.mxu1 %v12138_v34 }
 0xb96   :  { %9607 = vmatpush3.bf16.msra.mxu1 %v12313_v48 }
 0xb97   :  { %9609 = vmatprep.subr.bf16.mxu1 %v12322_v50 }
 0xb9a   :  { %9611 = vmatpush3.bf16.msra.mxu1 %v12330_v53 }
 0xb9b   :  { %9613 = vmatprep.subr.bf16.mxu1 %v12340_v11 }
 0xb9e   :  { %9615 = vmatpush3.bf16.msra.mxu1 %v12348_v23 }
 0xb9f   :  { %9617 = vmatprep.subr.bf16.mxu1 %v12358_v56 }
 0xba2   :  { %9619 = vmatpush3.bf16.msra.mxu1 %v12366_v60 }
 0xba3   :  { %9621 = vmatprep.subr.bf16.mxu1 %v12376_v16 }
 0xc58   :  { %v3846_v0 = vpop.f32.mrb[30].mxu1 }
 0xc59   :  { %v3854_v4 = vrot.slane %v3846_v0, %v11147_v39  ;;  %v3848_v6 = vpop.f32.mrb[31].mxu1 }
 0xc5a   :  { %v3858_v17 = vrot.slane %v3848_v6, %v11147_v39  ;;  %v8404_v6 = vld [vmem:[%s14065_s16 + $0x4] sm:$0x7] }
 0xc5b   :  { %v12460_v20 = vsub.f32 %v12379_v1, %v3854_v4  ;;  %v4058_v4 = vld [vmem:[%s14065_s16] sm:$0x7] }
 0xc5c   :  { %v12463_v33 = vsub.f32 %v12382_v3, %v3858_v17  ;;  %v8407_v17 = vld [vmem:[%s14065_s16 + $0x8] sm:$0x7] }
 0xc5d   :  { %v3861_v37 = vmul.f32 %v12460_v20, %v12460_v20 }
 0xc5e   :  { %v3862_v31 = vmul.f32 %v12463_v33, %v12463_v33 }
 0xc5f   :  { %v3863_v34 = vrot.slane %v3861_v37, 4 }
 0xc60   :  { %v3869_v48 = vrot.slane %v3862_v31, 4 }
 0xc61   :  { %v3864_v50 = vadd.f32 %v3863_v34, %v3861_v37  ;;  %v10412_v37 = vld [vmem:[%s14064_s17] ss:$12 sps:$4 sm:$0xff]   ;;  %v10415_v34 = vld [vmem:[%s14064_s17 + $0x18] ss:$12 sps:$4 sm:$0xff]  }
 0xc62   :  { %v3870_v53 = vadd.f32 %v3869_v48, %v3862_v31  ;;  %v10417_v31 = vld [vmem:[%s14064_s17 + $0x1c] ss:$12 sps:$4 sm:$0xff]   ;;  %v10420_v48 = vld [vmem:[%s14064_s17 + $0x34] ss:$12 sps:$4 sm:$0xff]  }
 0xc63   :  { %v3865_v11 = vrot.slane %v3864_v50, 2 }
 0xc64   :  { %v3871_v23 = vrot.slane %v3870_v53, 2 }
 0xc65   :  { %v3866_v56 = vadd.f32 %v3865_v11, %v3864_v50  ;;  %v10418_v50 = vld [vmem:[%s14064_s17 + $0x30] ss:$12 sps:$4 sm:$0xff]   ;;  %v10421_v11 = vld [vmem:[%s14064_s17 + $0x48] ss:$12 sps:$4 sm:$0xff]  }
 0xc66   :  { %v3872_v60 = vadd.f32 %v3871_v23, %v3870_v53  ;;  %v10423_v53 = vld [vmem:[%s14064_s17 + $0x4c] ss:$12 sps:$4 sm:$0xff]   ;;  %v10426_v23 = vld [vmem:[%s14064_s17 + $0x64] ss:$12 sps:$4 sm:$0xff]  }
 0xc67   :  { %v3867_v61 = vrot.slane %v3866_v56, 1 }
 0xc68   :  { %v3873_v25 = vrot.slane %v3872_v60, 1 }
 0xc69   :  { %v3868_v1 = vadd.f32 %v3867_v61, %v3866_v56  ;;  %v10424_v56 = vld [vmem:[%s14064_s17 + $0x60] ss:$12 sps:$4 sm:$0xff]   ;;  %v10427_v61 = vld [vmem:[%s14064_s17 + $0x78] ss:$12 sps:$4 sm:$0xff]  }
 0xc6a   :  { %v3874_v16 = vadd.f32 %v3873_v25, %v3872_v60  ;;  %v10429_v60 = vld [vmem:[%s14064_s17 + $0x7c] ss:$12 sps:$4 sm:$0xff]   ;;  %v10432_v25 = vld [vmem:[%s14064_s17 + $0x94] ss:$12 sps:$4 sm:$0xff]  }
 0xc6c   :  { %3939 = vmatprep.mubr.f32.mxu1 %v3874_v16  ;;  %v10430_v16 = vld [vmem:[%s14064_s17 + $0x90] ss:$12 sps:$4 sm:$0xff]  }
 0xc6d   :  { %3940 = vmatmul.mubr.f32.vlgmr.msra.gmra.mrb[32].mxu1 %v3868_v1  ;;  %v10435_v1 = vld [vmem:[%s14064_s17 + $0xac] ss:$12 sps:$4 sm:$0xff]  }
 0xc6e   :  { %9623 = vmatpush1.bf16.msra.mxu1 %v12399_v18  ;;  %4023 = vmatprep.mubr.f32.mxu1 %v10771_v21  ;;  %v10459_v18 = vld [vmem:[%s14064_s17 + $0x128] ss:$12 sps:$4 sm:$0xff]  }
 0xc6f   :  { %9625 = vmatprep.subr.bf16.mxu1 %v12401_v38  ;;  %8890 = vmatprep.subr.bf16.mxu0 %v10459_v18  ;;  %v10464_v38 = vld [vmem:[%s14064_s17 + $0x140] ss:$12 sps:$4 sm:$0xff]   ;;  %v10475_v18 = vld [vmem:[%s14064_s17 + $0xb0] ss:$12 sps:$4 sm:$0xff]  }
 0xc70   :  { %8891 = vmatpush3.bf16.msra.mxu0 %v10460_v24  ;;  %v10478_v24 = vld [vmem:[%s14064_s17 + $0x184] ss:$12 sps:$4 sm:$0xff]  }
 0xc71   :  { %8892 = vmatprep.subr.bf16.mxu0 %v10464_v38  ;;  %v10479_v38 = vld [vmem:[%s14064_s17 + $0x248] ss:$12 sps:$4 sm:$0xff]  }
 0xc72   :  { %9627 = vmatpush1.bf16.msra.mxu1 %v12416_v45 }
 0xc73   :  { %9629 = vmatprep.subr.bf16.mxu1 %v9580_v46 }
 0xc74   :  { %8893 = vmatpush3.bf16.msra.mxu0 %v10465_v40 }
 0xc75   :  { %8894 = vmatprep.subr.bf16.mxu0 %v10469_v42 }
 0xc76   :  { %9631 = vmatpush1.bf16.msra.mxu1 %v9582_v7 }
 0xc77   :  { %9633 = vmatprep.subr.bf16.mxu1 %v9584_v54 }
 0xc78   :  { %8895 = vmatpush3.bf16.msra.mxu0 %v10470_v43 }
 0xc79   :  { %8896 = vmatprep.subr.bf16.mxu0 %v10474_v63  ;;  %v10524_v63 = vld [vmem:[%s14064_s17 + $0x3e0] ss:$12 sps:$4 sm:$0xff]  }
 0xc7a   :  { %9635 = vmatpush1.bf16.msra.mxu1 %v9586_v15 }
 0xc7c   :  { %8897 = vmatpush3.bf16.msra.mxu0 %v10475_v18  ;;  %v10521_v18 = vld [vmem:[%s14064_s17 + $0x258] ss:$12 sps:$4 sm:$0xff]  }
 0xc7d   :  { %8904 = vmatprep.subr.bf16.mxu0 %v10479_v38  ;;  %v10528_v38 = vld [vmem:[%s14064_s17 + $0x274] ss:$12 sps:$4 sm:$0xff]  }
 0xd40   :  { %v8879_v2 = vpop.f32.mrb[32].mxu1 }
 0xd41   :  { %v8880_v3 = vpop.f32.mrb[33].mxu1 }
 0xd42   :  { %v8881_v8 = vadd.f32 %v8880_v3, %v8879_v2  ;;  %v10433_v2 = vld [vmem:[%s14064_s17 + $0xa8] ss:$12 sps:$4 sm:$0xff]   ;;  %v10438_v3 = vld [vmem:[%s14064_s17 + $0xc4] ss:$12 sps:$4 sm:$0xff]  }
 0xd44   :  { %v3945_v9 = vmul.f32 0.03125, %v8881_v8  ;;  %v10436_v8 = vld [vmem:[%s14064_s17 + $0xc0] ss:$12 sps:$4 sm:$0xff]  }
 0xd46   :  { %v3946_v10 = vadd.f32 1e-05, %v3945_v9  ;;  %v10443_v9 = vld [vmem:[%s14064_s17 + $0xdc] ss:$12 sps:$4 sm:$0xff]  }
 0xd48   :  { %10766 = vrsqrt.f32 %v3946_v10  ;;  %v10441_v10 = vld [vmem:[%s14064_s17 + $0xd8] ss:$12 sps:$4 sm:$0xff]  }
 0xd52   :  { %v10767_v13 = vpop.eup %10766 }
 0xd53   :  { %v3948_v22 = vmul.f32 %v10767_v13, %v3644_v12  ;;  %v10448_v12 = vld [vmem:[%s14064_s17 + $0xf4] ss:$12 sps:$4 sm:$0xff]   ;;  %v10446_v13 = vld [vmem:[%s14064_s17 + $0xf0] ss:$12 sps:$4 sm:$0xff]  }
 0xd55   :  { %v3955_v27 = vsel %vm2406_vm10, %v3948_v22, %v8400_v19  ;;  %v10453_v19 = vld [vmem:[%s14064_s17 + $0x10c] ss:$12 sps:$4 sm:$0xff]   ;;  %v10451_v22 = vld [vmem:[%s14064_s17 + $0x108] ss:$12 sps:$4 sm:$0xff]  }
 0xd56   :  { %8401 = vmatmul.mubr.msk.f32.vlgmr.msra.gmra.mrb[34].mxu1 %vm127_vm0, %v3955_v27  ;;  %v10458_v27 = vld [vmem:[%s14064_s17 + $0x124] ss:$12 sps:$4 sm:$0xff]  }
 0xd57   :  { %4102 = vmatprep.mubr.bf16.mxu1 %v14081_v36 }
 0xe29   :  { %v4025_v44 = vpop.f32.mrb[34].mxu1 }
 0xe2a   :  { %v4033_v45 = vrot.slane %v4025_v44, %v11147_v39  ;;  %v4027_v46 = vpop.f32.mrb[35].mxu1  ;;  %v4043_v7 = vrot.slane %v4025_v44, %v11152_v41 }
 0xe2b   :  { %v4037_v47 = vrot.slane %v4027_v46, %v11147_v39  ;;  %v4047_v52 = vrot.slane %v4027_v46, %v11152_v41  ;;  %v10480_v46 = vld [vmem:[%s14064_s17 + $0x188] ss:$12 sps:$4 sm:$0xff]  }
 0xe2c   :  { %v4038_v49 = vmul.f32 %v4033_v45, %v12460_v20  ;;  %v10414_v20 = vld [vmem:[%s14064_s17 + $0x4] ss:$12 sps:$4 sm:$0xff]   ;;  %v10476_v45 = vld [vmem:[%s14064_s17 + $0x180] ss:$12 sps:$4 sm:$0xff]  }
 0xe2d   :  { %v4039_v51 = vmul.f32 %v4037_v47, %v12463_v33  ;;  %v8410_v33 = vld [vmem:[%s14065_s16 + $0xc] sm:$0x7] }
 0xe2e   :  { %v4048_v54 = vadd.f32 %v4043_v7, %v4038_v49  ;;  %v10483_v7 = vld [vmem:[%s14064_s17 + $0x19c] ss:$12 sps:$4 sm:$0xff]  }
 0xe2f   :  { %v4049_v55 = vadd.f32 %v4047_v52, %v4039_v51  ;;  %v10484_v51 = vld [vmem:[%s14064_s17 + $0x260] ss:$12 sps:$4 sm:$0xff]   ;;  %v10481_v52 = vld [vmem:[%s14064_s17 + $0x198] ss:$12 sps:$4 sm:$0xff]  }
 0xe30   :  { %v4052_v14 = vmul.f32 0.2, %v4048_v54  ;;  %vm4050_vm0 = vcmp.ge.f32.partialorder %v4048_v54, 0.0 }
 0xe31   :  { %vm4051_vm1 = vcmp.ge.f32.partialorder %v4049_v55, 0.0  ;;  %v4053_v15 = vmul.f32 0.2, %v4049_v55 }
 0xe32   :  { %v4054_v26 = vsel %vm4050_vm0, %v4048_v54, %v4052_v14  ;;  %v10485_v54 = vld [vmem:[%s14064_s17 + $0x1a0] ss:$12 sps:$4 sm:$0xff]   ;;  %v10489_v14 = vld [vmem:[%s14064_s17 + $0x278] ss:$12 sps:$4 sm:$0xff]  }
 0xe33   :  { %v4055_v28 = vsel %vm4051_vm1, %v4049_v55, %v4053_v15  ;;  %v4056_v57 = vpack.c.bf16 %v4054_v26, %v4054_v26  ;;  %v10488_v55 = vld [vmem:[%s14064_s17 + $0x1b4] ss:$12 sps:$4 sm:$0xff]  }
 0xe34   :  { %v4057_v59 = vpack.c.bf16 %v4055_v28, %v4055_v28  ;;  %v10486_v28 = vld [vmem:[%s14064_s17 + $0x1b0] ss:$12 sps:$4 sm:$0xff]  }
 0xe35   :  { %v4065_v0 = vsel %vm4063_vm2, %v4056_v57, 0  ;;  %v10490_v57 = vld [vmem:[%s14064_s17 + $0x1b8] ss:$12 sps:$4 sm:$0xff]  }
 0xe36   :  { %8402 = vmatprep.subr.msk.bf16.mxu1 %vm4063_vm2, %v4057_v59 }
 0xe37   :  { %4071 = vmatpush1.bf16.msra.mxu1 %v4065_v0 }
 0xe38   :  { %8405 = vmatprep.subr.msk.bf16.mxu1 %vm4063_vm2, %v4057_v59 }
 0xe3a   :  { %8403 = vmatmul.mubr.msk.bf16.vlgmr.msra.gmra.mrb[36].mxu1 %vm4059_vm3, %v4058_v4  ;;  %v10493_v4 = vld [vmem:[%s14064_s17 + $0x1cc] ss:$12 sps:$4 sm:$0xff]  }
 0xe3b   :  { %4119 = vmatpush1.bf16.msra.mxu1 %v4065_v0  ;;  %4150 = vmatprep.mubr.bf16.mxu1 %v14081_v36 }
 0xe3c   :  { %8408 = vmatprep.subr.msk.bf16.mxu1 %vm4063_vm2, %v4057_v59 }
 0xe42   :  { %8406 = vmatmul.mubr.msk.bf16.vlgmr.msra.gmra.mrb[40].mxu1 %vm4059_vm3, %v8404_v6  ;;  %v10494_v6 = vld [vmem:[%s14064_s17 + $0x290] ss:$12 sps:$4 sm:$0xff]  }
 0xe43   :  { %4167 = vmatpush1.bf16.msra.mxu1 %v4065_v0  ;;  %4198 = vmatprep.mubr.bf16.mxu1 %v14081_v36 }
 0xe44   :  { %8411 = vmatprep.subr.msk.bf16.mxu1 %vm4063_vm2, %v4057_v59 }
 0xe4a   :  { %8409 = vmatmul.mubr.msk.bf16.vlgmr.msra.gmra.mrb[44].mxu1 %vm4059_vm3, %v8407_v17 }
 0xe4b   :  { %4215 = vmatpush1.bf16.msra.mxu1 %v4065_v0  ;;  %4246 = vmatprep.mubr.bf16.mxu1 %v14081_v36 }
 0xe4c   :  { %5537 = vmatprep.subr.bf16.mxu1 %v10414_v20  ;;  %v10491_v20 = vld [vmem:[%s14064_s17 + $0x1c8] ss:$12 sps:$4 sm:$0xff]  }
 0xe52   :  { %8412 = vmatmul.mubr.msk.bf16.vlgmr.msra.gmra.mrb[48].mxu1 %vm4059_vm3, %v8410_v33  ;;  %v10495_v33 = vld [vmem:[%s14064_s17 + $0x1d0] ss:$12 sps:$4 sm:$0xff]  }
 0xe53   :  { %5538 = vmatpush1.bf16.msra.mxu1 %v10412_v37  ;;  %v10498_v37 = vld [vmem:[%s14064_s17 + $0x1e4] ss:$12 sps:$4 sm:$0xff]  }
 0xe54   :  { %5539 = vmatprep.subr.bf16.mxu1 %v10417_v31  ;;  %v10499_v31 = vld [vmem:[%s14064_s17 + $0x2a8] ss:$12 sps:$4 sm:$0xff]  }
 0xe57   :  { %5540 = vmatpush1.bf16.msra.mxu1 %v10415_v34 }
 0xe58   :  { %5541 = vmatprep.subr.bf16.mxu1 %v10420_v48 }
 0xe5b   :  { %5542 = vmatpush1.bf16.msra.mxu1 %v10418_v50  ;;  %v10496_v50 = vld [vmem:[%s14064_s17 + $0x1e0] ss:$12 sps:$4 sm:$0xff]  }
 0xe5c   :  { %5543 = vmatprep.subr.bf16.mxu1 %v10423_v53  ;;  %v10500_v53 = vld [vmem:[%s14064_s17 + $0x1e8] ss:$12 sps:$4 sm:$0xff]  }
 0xe5f   :  { %5544 = vmatpush1.bf16.msra.mxu1 %v10421_v11 }
 0xe60   :  { %5545 = vmatprep.subr.bf16.mxu1 %v10426_v23  ;;  %v10503_v23 = vld [vmem:[%s14064_s17 + $0x1fc] ss:$12 sps:$4 sm:$0xff]  }
 0xe63   :  { %5546 = vmatpush1.bf16.msra.mxu1 %v10424_v56  ;;  %v10504_v56 = vld [vmem:[%s14064_s17 + $0x2c0] ss:$12 sps:$4 sm:$0xff]  }
 0xe64   :  { %5547 = vmatprep.subr.bf16.mxu1 %v10429_v60 }
 0xe67   :  { %5548 = vmatpush1.bf16.msra.mxu1 %v10427_v61  ;;  %v10501_v61 = vld [vmem:[%s14064_s17 + $0x1f8] ss:$12 sps:$4 sm:$0xff]  }
 0xe68   :  { %5549 = vmatprep.subr.bf16.mxu1 %v10432_v25  ;;  %v10505_v25 = vld [vmem:[%s14064_s17 + $0x200] ss:$12 sps:$4 sm:$0xff]  }
 0xe6b   :  { %5550 = vmatpush1.bf16.msra.mxu1 %v10430_v16  ;;  %v10508_v16 = vld [vmem:[%s14064_s17 + $0x214] ss:$12 sps:$4 sm:$0xff]  }
 0xe6c   :  { %5551 = vmatprep.subr.bf16.mxu1 %v10435_v1  ;;  %v10509_v1 = vld [vmem:[%s14064_s17 + $0x2d8] ss:$12 sps:$4 sm:$0xff]  }
 0xe6f   :  { %5552 = vmatpush1.bf16.msra.mxu1 %v10433_v2 }
 0xe70   :  { %5553 = vmatprep.subr.bf16.mxu1 %v10438_v3 }
 0xe73   :  { %5554 = vmatpush1.bf16.msra.mxu1 %v10436_v8  ;;  %v10506_v8 = vld [vmem:[%s14064_s17 + $0x210] ss:$12 sps:$4 sm:$0xff]  }
 0xe74   :  { %5555 = vmatprep.subr.bf16.mxu1 %v10443_v9  ;;  %v10510_v9 = vld [vmem:[%s14064_s17 + $0x218] ss:$12 sps:$4 sm:$0xff]  }
 0xe77   :  { %5556 = vmatpush1.bf16.msra.mxu1 %v10441_v10 }
 0xe78   :  { %5557 = vmatprep.subr.bf16.mxu1 %v10448_v12  ;;  %v10513_v12 = vld [vmem:[%s14064_s17 + $0x22c] ss:$12 sps:$4 sm:$0xff]  }
 0xe7b   :  { %5558 = vmatpush1.bf16.msra.mxu1 %v10446_v13  ;;  %v10514_v13 = vld [vmem:[%s14064_s17 + $0x2f0] ss:$12 sps:$4 sm:$0xff]  }
 0xe7c   :  { %5559 = vmatprep.subr.bf16.mxu1 %v10453_v19 }
 0xe7f   :  { %5560 = vmatpush1.bf16.msra.mxu1 %v10451_v22  ;;  %v10511_v22 = vld [vmem:[%s14064_s17 + $0x228] ss:$12 sps:$4 sm:$0xff]  }
 0xe80   :  { %5561 = vmatprep.subr.bf16.mxu1 %v10458_v27  ;;  %v10515_v27 = vld [vmem:[%s14064_s17 + $0x230] ss:$12 sps:$4 sm:$0xff]  }
 0xe83   :  { %5562 = vmatpush1.bf16.msra.mxu1 %v10456_v29  ;;  %v10518_v29 = vld [vmem:[%s14064_s17 + $0x244] ss:$12 sps:$4 sm:$0xff]  }
 0xe84   :  { %5563 = vmatprep.subr.bf16.mxu1 %v10463_v30  ;;  %v10519_v30 = vld [vmem:[%s14064_s17 + $0x3c8] ss:$12 sps:$4 sm:$0xff]  }
 0xe87   :  { %5564 = vmatpush1.bf16.msra.mxu1 %v10461_v32 }
 0xe88   :  { %5565 = vmatprep.subr.bf16.mxu1 %v10468_v35  ;;  %v10516_v35 = vld [vmem:[%s14064_s17 + $0x240] ss:$12 sps:$4 sm:$0xff]  }
 0xe8b   :  { %5566 = vmatpush1.bf16.msra.mxu1 %v10466_v58  ;;  %v10520_v58 = vld [vmem:[%s14064_s17 + $0x308] ss:$12 sps:$4 sm:$0xff]  }
 0xe8c   :  { %5567 = vmatprep.subr.bf16.mxu1 %v10473_v62  ;;  %v10523_v62 = vld [vmem:[%s14064_s17 + $0x25c] ss:$12 sps:$4 sm:$0xff]  }
 0xe8f   :  { %5568 = vmatpush1.bf16.msra.mxu1 %v10471_v5 }
 0xe90   :  { %5578 = vmatprep.subr.bf16.mxu1 %v10478_v24  ;;  %v10525_v24 = vld [vmem:[%s14064_s17 + $0x320] ss:$12 sps:$4 sm:$0xff]  }
 0xf0d   :  { %v4104_v40 = vpop.f32.mrb[36].mxu1 }
 0xf0e   :  { %v4106_v42 = vpop.f32.mrb[37].mxu1  ;;  %v4111_v47 = vpack.c.bf16 %v4104_v40, %v4104_v40  ;;  %v10529_v40 = vld [vmem:[%s14064_s17 + $0x3f8] ss:$12 sps:$4 sm:$0xff]  }
 0xf0f   :  { %v4112_v43 = vpack.c.bf16 %v4106_v42, %v4106_v42  ;;  %v4108_v44 = vpop.f32.mrb[38].mxu1  ;;  %v10526_v42 = vld [vmem:[%s14064_s17 + $0x270] ss:$12 sps:$4 sm:$0xff]  }
 0xf10   :  { %v4109_v49 = vpop.f32.mrb[39].mxu1  ;;  %v10533_v44 = vld [vmem:[%s14064_s17 + $0x28c] ss:$12 sps:$4 sm:$0xff]  }
 0xf11   :  { %5569 = vmatprep.mubr.bf16.mxu1 %v4112_v43  ;;  %5733 = vmatprep.mubr.bf16.mxu0 %v4112_v43  ;;  %v10530_v43 = vld [vmem:[%s14064_s17 + $0x338] ss:$12 sps:$4 sm:$0xff]  }
 0xf12   :  { %5570 = vmatmul.mubr.bf16.vlgmr.msra.gmra.mrb[52].mxu1 %v4111_v47  ;;  %5734 = vmatmul.mubr.bf16.vlgmr.msra.gmra.mrb[44].mxu0 %v4111_v47  ;;  %v10535_v47 = vld [vmem:[%s14064_s17 + $0x350] ss:$12 sps:$4 sm:$0xff]  }
 0xf13   :  { %5579 = vmatpush1.bf16.msra.mxu1 %v10476_v45  ;;  %8905 = vmatpush3.bf16.msra.mxu0 %v10480_v46  ;;  %v10534_v45 = vld [vmem:[%s14064_s17 + $0x410] ss:$12 sps:$4 sm:$0xff]   ;;  %v10531_v46 = vld [vmem:[%s14064_s17 + $0x288] ss:$12 sps:$4 sm:$0xff]  }
 0xf14   :  { %5580 = vmatprep.subr.bf16.mxu1 %v10483_v7  ;;  %8906 = vmatprep.subr.bf16.mxu0 %v10484_v51  ;;  %v10538_v49 = vld [vmem:[%s14064_s17 + $0x2a4] ss:$12 sps:$4 sm:$0xff]   ;;  %v10539_v7 = vld [vmem:[%s14064_s17 + $0x428] ss:$12 sps:$4 sm:$0xff]   ;;  %v10536_v51 = vld [vmem:[%s14064_s17 + $0x2a0] ss:$12 sps:$4 sm:$0xff]  }
 0xf15   :  { %v4152_v15 = vpop.f32.mrb[40].mxu1 }
 0xf16   :  { %v4154_v26 = vpop.f32.mrb[41].mxu1  ;;  %v12764_v32 = vpack.c.bf16 %v4152_v15, %v4152_v15  ;;  %v10545_v15 = vld [vmem:[%s14064_s17 + $0x380] ss:$12 sps:$4 sm:$0xff]  }
 0xf17   :  { %5581 = vmatpush1.bf16.msra.mxu1 %v10481_v52  ;;  %8907 = vmatpush3.bf16.msra.mxu0 %v10485_v54  ;;  %v4160_v59 = vpack.c.bf16 %v4154_v26, %v4154_v26  ;;  %v4156_v0 = vpop.f32.mrb[42].mxu1  ;;  %v10540_v52 = vld [vmem:[%s14064_s17 + $0x368] ss:$12 sps:$4 sm:$0xff]  }
 0xf18   :  { %5582 = vmatprep.subr.bf16.mxu1 %v10488_v55  ;;  %8908 = vmatprep.subr.bf16.mxu0 %v10489_v14  ;;  %v4157_v17 = vpop.f32.mrb[43].mxu1  ;;  %v10543_v54 = vld [vmem:[%s14064_s17 + $0x2bc] ss:$12 sps:$4 sm:$0xff]   ;;  %v10544_v55 = vld [vmem:[%s14064_s17 + $0x440] ss:$12 sps:$4 sm:$0xff]  }
 0xf19   :  { %5773 = vmatprep.mubr.bf16.mxu0 %v4160_v59  ;;  %5610 = vmatprep.mubr.bf16.mxu1 %v4160_v59  ;;  %v10541_v14 = vld [vmem:[%s14064_s17 + $0x2b8] ss:$12 sps:$4 sm:$0xff]   ;;  %v10548_v26 = vld [vmem:[%s14064_s17 + $0x2d4] ss:$12 sps:$4 sm:$0xff]   ;;  %v10555_v17 = vld [vmem:[%s14064_s17 + $0x3b0] ss:$12 sps:$4 sm:$0xff]  }
 0xf1a   :  { %v10550_v59 = vld [vmem:[%s14064_s17 + $0x398] ss:$12 sps:$4 sm:$0xff]  }
 0xf1b   :  { %5583 = vmatpush1.bf16.msra.mxu1 %v10486_v28  ;;  %8909 = vmatpush3.bf16.msra.mxu0 %v10490_v57  ;;  %v10549_v28 = vld [vmem:[%s14064_s17 + $0x458] ss:$12 sps:$4 sm:$0xff]   ;;  %v10546_v57 = vld [vmem:[%s14064_s17 + $0x2d0] ss:$12 sps:$4 sm:$0xff]  }
 0xf1c   :  { %5584 = vmatprep.subr.bf16.mxu1 %v10493_v4  ;;  %8910 = vmatprep.subr.bf16.mxu0 %v10494_v6  ;;  %v10553_v0 = vld [vmem:[%s14064_s17 + $0x2ec] ss:$12 sps:$4 sm:$0xff]   ;;  %v10554_v4 = vld [vmem:[%s14064_s17 + $0x470] ss:$12 sps:$4 sm:$0xff]   ;;  %v10551_v6 = vld [vmem:[%s14064_s17 + $0x2e8] ss:$12 sps:$4 sm:$0xff]  }
 0xf1d   :  { %v12710_v34 = vpop.f32.mrb[44].mxu1 }
 0xf1e   :  { %v4202_v48 = vpop.f32.mrb[45].mxu1 }
 0xf1f   :  { %5585 = vmatpush1.bf16.msra.mxu1 %v10491_v20  ;;  %8911 = vmatpush3.bf16.msra.mxu0 %v10495_v33  ;;  %v4204_v11 = vpop.f32.mrb[46].mxu1  ;;  %v12778_v5 = vpack.c.bf16 %v4202_v48, %v4202_v48  ;;  %v10558_v20 = vld [vmem:[%s14064_s17 + $0x304] ss:$12 sps:$4 sm:$0xff]   ;;  %v10559_v33 = vld [vmem:[%s14064_s17 + $0x548] ss:$12 sps:$4 sm:$0xff]  }
 0xf20   :  { %5586 = vmatprep.subr.bf16.mxu1 %v10498_v37  ;;  %8912 = vmatprep.subr.bf16.mxu0 %v10499_v31  ;;  %v4205_v60 = vpop.f32.mrb[47].mxu1  ;;  %v12868_v37 = vpack.c.bf16 %v12710_v34, %v12710_v34  ;;  %v10556_v31 = vld [vmem:[%s14064_s17 + $0x300] ss:$12 sps:$4 sm:$0xff]   ;;  %v10560_v48 = vld [vmem:[%s14064_s17 + $0x488] ss:$12 sps:$4 sm:$0xff]  }
 0xf21   :  { %v10564_v34 = vld [vmem:[%s14064_s17 + $0x560] ss:$12 sps:$4 sm:$0xff]   ;;  %v10561_v11 = vld [vmem:[%s14064_s17 + $0x318] ss:$12 sps:$4 sm:$0xff]  }
 0xf22   :  { %v10569_v60 = vld [vmem:[%s14064_s17 + $0x578] ss:$12 sps:$4 sm:$0xff]  }
 0xf23   :  { %5587 = vmatpush1.bf16.msra.mxu1 %v10496_v50  ;;  %8913 = vmatpush3.bf16.msra.mxu0 %v10500_v53  ;;  %v10563_v50 = vld [vmem:[%s14064_s17 + $0x31c] ss:$12 sps:$4 sm:$0xff]  }
 0xf24   :  { %5588 = vmatprep.subr.bf16.mxu1 %v10503_v23  ;;  %8914 = vmatprep.subr.bf16.mxu0 %v10504_v56  ;;  %v10565_v23 = vld [vmem:[%s14064_s17 + $0x4a0] ss:$12 sps:$4 sm:$0xff]  }
 0xf25   :  { %v12736_v2 = vpop.f32.mrb[48].mxu1  ;;  %v10568_v56 = vld [vmem:[%s14064_s17 + $0x334] ss:$12 sps:$4 sm:$0xff]  }
 0xf26   :  { %v12738_v3 = vpop.f32.mrb[49].mxu1 }
 0xf27   :  { %5589 = vmatpush1.bf16.msra.mxu1 %v10501_v61  ;;  %8915 = vmatpush3.bf16.msra.mxu0 %v10505_v25  ;;  %v4252_v10 = vpop.f32.mrb[50].mxu1  ;;  %v12884_v53 = vpack.c.bf16 %v12738_v3, %v12738_v3  ;;  %v10566_v61 = vld [vmem:[%s14064_s17 + $0x330] ss:$12 sps:$4 sm:$0xff]   ;;  %v10570_v25 = vld [vmem:[%s14064_s17 + $0x4b8] ss:$12 sps:$4 sm:$0xff]  }
 0xf28   :  { %5590 = vmatprep.subr.bf16.mxu1 %v10508_v16  ;;  %8916 = vmatprep.subr.bf16.mxu0 %v10509_v1  ;;  %v4253_v19 = vpop.f32.mrb[51].mxu1  ;;  %v10573_v16 = vld [vmem:[%s14064_s17 + $0x34c] ss:$12 sps:$4 sm:$0xff]   ;;  %v10574_v1 = vld [vmem:[%s14064_s17 + $0x590] ss:$12 sps:$4 sm:$0xff]  }
 0xf29   :  { %v10571_v3 = vld [vmem:[%s14064_s17 + $0x348] ss:$12 sps:$4 sm:$0xff]  }
 0xf2a   :  { %v10579_v10 = vld [vmem:[%s14064_s17 + $0x5a8] ss:$12 sps:$4 sm:$0xff]  }
 0xf2b   :  { %5591 = vmatpush1.bf16.msra.mxu1 %v10506_v8  ;;  %8917 = vmatpush3.bf16.msra.mxu0 %v10510_v9  ;;  %v10575_v8 = vld [vmem:[%s14064_s17 + $0x4d0] ss:$12 sps:$4 sm:$0xff]  }
 0xf2c   :  { %5592 = vmatprep.subr.bf16.mxu1 %v10513_v12  ;;  %8918 = vmatprep.subr.bf16.mxu0 %v10514_v13  ;;  %v10578_v9 = vld [vmem:[%s14064_s17 + $0x364] ss:$12 sps:$4 sm:$0xff]   ;;  %v10576_v12 = vld [vmem:[%s14064_s17 + $0x360] ss:$12 sps:$4 sm:$0xff]   ;;  %v10580_v13 = vld [vmem:[%s14064_s17 + $0x4e8] ss:$12 sps:$4 sm:$0xff]  }
 0xf2d   :  { %v10583_v19 = vld [vmem:[%s14064_s17 + $0x37c] ss:$12 sps:$4 sm:$0xff]  }
 0xf2f   :  { %5593 = vmatpush1.bf16.msra.mxu1 %v10511_v22  ;;  %8919 = vmatpush3.bf16.msra.mxu0 %v10515_v27  ;;  %v10584_v22 = vld [vmem:[%s14064_s17 + $0x5c0] ss:$12 sps:$4 sm:$0xff]   ;;  %v10581_v27 = vld [vmem:[%s14064_s17 + $0x378] ss:$12 sps:$4 sm:$0xff]  }
 0xf30   :  { %5594 = vmatprep.subr.bf16.mxu1 %v10518_v29  ;;  %8926 = vmatprep.subr.bf16.mxu0 %v10519_v30  ;;  %v10585_v29 = vld [vmem:[%s14064_s17 + $0x500] ss:$12 sps:$4 sm:$0xff]  }
 0xf31   :  { %v10588_v30 = vld [vmem:[%s14064_s17 + $0x394] ss:$12 sps:$4 sm:$0xff]  }
 0xf32   :  { %5774 = vmatmul.mubr.bf16.vlgmr.msra.gmra.mrb[48].mxu0 %v12764_v32 }
 0xf33   :  { %5595 = vmatpush1.bf16.msra.mxu1 %v10516_v35  ;;  %8927 = vmatpush3.bf16.msra.mxu0 %v10520_v58  ;;  %v10586_v35 = vld [vmem:[%s14064_s17 + $0x390] ss:$12 sps:$4 sm:$0xff]   ;;  %v10590_v58 = vld [vmem:[%s14064_s17 + $0x518] ss:$12 sps:$4 sm:$0xff]  }
 0xf34   :  { %5596 = vmatprep.subr.bf16.mxu1 %v10523_v62  ;;  %8928 = vmatprep.subr.bf16.mxu0 %v10524_v63  ;;  %v10593_v62 = vld [vmem:[%s14064_s17 + $0x3ac] ss:$12 sps:$4 sm:$0xff]   ;;  %v10594_v63 = vld [vmem:[%s14064_s17 + $0x5f0] ss:$12 sps:$4 sm:$0xff]  }
 0xf35   :  { %5813 = vmatprep.mubr.bf16.mxu0 %v12778_v5 }
 0xf37   :  { %5597 = vmatpush1.bf16.msra.mxu1 %v10521_v18  ;;  %8929 = vmatpush3.bf16.msra.mxu0 %v10525_v24  ;;  %v10595_v18 = vld [vmem:[%s14064_s17 + $0x530] ss:$12 sps:$4 sm:$0xff]  }
 0xf38   :  { %5598 = vmatprep.subr.bf16.mxu1 %v10528_v38  ;;  %8930 = vmatprep.subr.bf16.mxu0 %v10529_v40  ;;  %v10598_v24 = vld [vmem:[%s14064_s17 + $0x3c4] ss:$12 sps:$4 sm:$0xff]   ;;  %v12973_v38 = vpack.c.bf16 %v12736_v2, %v12736_v2  ;;  %v10596_v40 = vld [vmem:[%s14064_s17 + $0x3c0] ss:$12 sps:$4 sm:$0xff]  }
 0xf39   :  { %v10604_v2 = vld [vmem:[%s14064_s17 + $0x3f4] ss:$12 sps:$4 sm:$0xff]  }
 0xf3b   :  { %5599 = vmatpush1.bf16.msra.mxu1 %v10526_v42  ;;  %8931 = vmatpush3.bf16.msra.mxu0 %v10530_v43  ;;  %v10601_v42 = vld [vmem:[%s14064_s17 + $0x3dc] ss:$12 sps:$4 sm:$0xff]   ;;  %v10599_v43 = vld [vmem:[%s14064_s17 + $0x3d8] ss:$12 sps:$4 sm:$0xff]  }
 0xf3c   :  { %5600 = vmatprep.subr.bf16.mxu1 %v10533_v44  ;;  %8932 = vmatprep.subr.bf16.mxu0 %v10534_v45  ;;  %v10602_v44 = vld [vmem:[%s14064_s17 + $0x3f0] ss:$12 sps:$4 sm:$0xff]   ;;  %v10607_v45 = vld [vmem:[%s14064_s17 + $0x40c] ss:$12 sps:$4 sm:$0xff]  }
 0xf3f   :  { %5601 = vmatpush1.bf16.msra.mxu1 %v10531_v46  ;;  %8933 = vmatpush3.bf16.msra.mxu0 %v10535_v47  ;;  %v10605_v46 = vld [vmem:[%s14064_s17 + $0x408] ss:$12 sps:$4 sm:$0xff]   ;;  %v10610_v47 = vld [vmem:[%s14064_s17 + $0x424] ss:$12 sps:$4 sm:$0xff]  }
 0xf40   :  { %5602 = vmatprep.subr.bf16.mxu1 %v10538_v49  ;;  %8934 = vmatprep.subr.bf16.mxu0 %v10539_v7  ;;  %v10608_v49 = vld [vmem:[%s14064_s17 + $0x420] ss:$12 sps:$4 sm:$0xff]   ;;  %v10613_v7 = vld [vmem:[%s14064_s17 + $0x43c] ss:$12 sps:$4 sm:$0xff]  }
 0xf43   :  { %5603 = vmatpush1.bf16.msra.mxu1 %v10536_v51  ;;  %8935 = vmatpush3.bf16.msra.mxu0 %v10540_v52  ;;  %v10611_v51 = vld [vmem:[%s14064_s17 + $0x438] ss:$12 sps:$4 sm:$0xff]   ;;  %v10616_v52 = vld [vmem:[%s14064_s17 + $0x454] ss:$12 sps:$4 sm:$0xff]  }
 0xf44   :  { %5604 = vmatprep.subr.bf16.mxu1 %v10543_v54  ;;  %8936 = vmatprep.subr.bf16.mxu0 %v10544_v55  ;;  %v10614_v54 = vld [vmem:[%s14064_s17 + $0x450] ss:$12 sps:$4 sm:$0xff]   ;;  %v10619_v55 = vld [vmem:[%s14064_s17 + $0x46c] ss:$12 sps:$4 sm:$0xff]  }
 0xf47   :  { %5605 = vmatpush1.bf16.msra.mxu1 %v10541_v14  ;;  %8937 = vmatpush3.bf16.msra.mxu0 %v10545_v15  ;;  %v10617_v14 = vld [vmem:[%s14064_s17 + $0x468] ss:$12 sps:$4 sm:$0xff]   ;;  %v10622_v15 = vld [vmem:[%s14064_s17 + $0x484] ss:$12 sps:$4 sm:$0xff]  }
 0xf48   :  { %5606 = vmatprep.subr.bf16.mxu1 %v10548_v26  ;;  %8938 = vmatprep.subr.bf16.mxu0 %v10549_v28  ;;  %v10620_v26 = vld [vmem:[%s14064_s17 + $0x480] ss:$12 sps:$4 sm:$0xff]   ;;  %v10625_v28 = vld [vmem:[%s14064_s17 + $0x49c] ss:$12 sps:$4 sm:$0xff]  }
 0xf4b   :  { %5607 = vmatpush1.bf16.msra.mxu1 %v10546_v57  ;;  %8939 = vmatpush3.bf16.msra.mxu0 %v10550_v59  ;;  %v10623_v57 = vld [vmem:[%s14064_s17 + $0x498] ss:$12 sps:$4 sm:$0xff]   ;;  %v10628_v59 = vld [vmem:[%s14064_s17 + $0x4b4] ss:$12 sps:$4 sm:$0xff]  }
 0xf4c   :  { %5608 = vmatprep.subr.bf16.mxu1 %v10553_v0  ;;  %8940 = vmatprep.subr.bf16.mxu0 %v10554_v4  ;;  %v10626_v0 = vld [vmem:[%s14064_s17 + $0x4b0] ss:$12 sps:$4 sm:$0xff]   ;;  %v10631_v4 = vld [vmem:[%s14064_s17 + $0x4cc] ss:$12 sps:$4 sm:$0xff]  }
 0xf4f   :  { %5609 = vmatpush1.bf16.msra.mxu1 %v10551_v6  ;;  %8941 = vmatpush3.bf16.msra.mxu0 %v10555_v17  ;;  %v10629_v6 = vld [vmem:[%s14064_s17 + $0x4c8] ss:$12 sps:$4 sm:$0xff]   ;;  %v10634_v17 = vld [vmem:[%s14064_s17 + $0x4e4] ss:$12 sps:$4 sm:$0xff]  }
 0xf50   :  { %5619 = vmatprep.subr.bf16.mxu1 %v10558_v20  ;;  %8948 = vmatprep.subr.bf16.mxu0 %v10559_v33  ;;  %v10632_v20 = vld [vmem:[%s14064_s17 + $0x4e0] ss:$12 sps:$4 sm:$0xff]   ;;  %v10637_v33 = vld [vmem:[%s14064_s17 + $0x4fc] ss:$12 sps:$4 sm:$0xff]  }
 0xf52   :  { %5611 = vmatmul.mubr.bf16.vlgmr.msra.gmra.mrb[52].mxu1 %v12764_v32  ;;  %5814 = vmatmul.mubr.bf16.vlgmr.msra.gmra.mrb[52].mxu0 %v12868_v37  ;;  %v10589_v32 = vld [vmem:[%s14064_s17 + $0x5d8] ss:$12 sps:$4 sm:$0xff]  }
 0xf53   :  { %5620 = vmatpush1.bf16.msra.mxu1 %v10556_v31  ;;  %8949 = vmatpush3.bf16.msra.mxu0 %v10560_v48  ;;  %v10640_v31 = vld [vmem:[%s14064_s17 + $0x514] ss:$12 sps:$4 sm:$0xff]   ;;  %v10638_v48 = vld [vmem:[%s14064_s17 + $0x510] ss:$12 sps:$4 sm:$0xff]  }
 0xf54   :  { %5621 = vmatprep.subr.bf16.mxu1 %v10563_v50  ;;  %8950 = vmatprep.subr.bf16.mxu0 %v10564_v34  ;;  %v10643_v50 = vld [vmem:[%s14064_s17 + $0x52c] ss:$12 sps:$4 sm:$0xff]   ;;  %v10641_v34 = vld [vmem:[%s14064_s17 + $0x528] ss:$12 sps:$4 sm:$0xff]  }
 0xf55   :  { %5853 = vmatprep.mubr.bf16.mxu0 %v12884_v53  ;;  %5651 = vmatprep.mubr.bf16.mxu1 %v12778_v5  ;;  %v10591_v5 = vld [vmem:[%s14064_s17 + $0x3a8] ss:$12 sps:$4 sm:$0xff]  }
 0xf57   :  { %5622 = vmatpush1.bf16.msra.mxu1 %v10561_v11  ;;  %8951 = vmatpush3.bf16.msra.mxu0 %v10565_v23  ;;  %v10644_v11 = vld [vmem:[%s14064_s17 + $0x540] ss:$12 sps:$4 sm:$0xff]   ;;  %v10649_v23 = vld [vmem:[%s14064_s17 + $0x55c] ss:$12 sps:$4 sm:$0xff]  }
 0xf58   :  { %5623 = vmatprep.subr.bf16.mxu1 %v10568_v56  ;;  %8952 = vmatprep.subr.bf16.mxu0 %v10569_v60  ;;  %v10647_v56 = vld [vmem:[%s14064_s17 + $0x558] ss:$12 sps:$4 sm:$0xff]   ;;  %v10652_v60 = vld [vmem:[%s14064_s17 + $0x574] ss:$12 sps:$4 sm:$0xff]  }
 0xf5b   :  { %5624 = vmatpush1.bf16.msra.mxu1 %v10566_v61  ;;  %8953 = vmatpush3.bf16.msra.mxu0 %v10570_v25  ;;  %v10650_v61 = vld [vmem:[%s14064_s17 + $0x570] ss:$12 sps:$4 sm:$0xff]   ;;  %v10655_v25 = vld [vmem:[%s14064_s17 + $0x58c] ss:$12 sps:$4 sm:$0xff]  }
 0xf5c   :  { %5625 = vmatprep.subr.bf16.mxu1 %v10573_v16  ;;  %8954 = vmatprep.subr.bf16.mxu0 %v10574_v1  ;;  %v10653_v16 = vld [vmem:[%s14064_s17 + $0x588] ss:$12 sps:$4 sm:$0xff]   ;;  %v10658_v1 = vld [vmem:[%s14064_s17 + $0x5a4] ss:$12 sps:$4 sm:$0xff]  }
 0xf5f   :  { %5626 = vmatpush1.bf16.msra.mxu1 %v10571_v3  ;;  %8955 = vmatpush3.bf16.msra.mxu0 %v10575_v8  ;;  %v10656_v3 = vld [vmem:[%s14064_s17 + $0x5a0] ss:$12 sps:$4 sm:$0xff]   ;;  %v10661_v8 = vld [vmem:[%s14064_s17 + $0x5bc] ss:$12 sps:$4 sm:$0xff]  }
 0xf60   :  { %5627 = vmatprep.subr.bf16.mxu1 %v10578_v9  ;;  %8956 = vmatprep.subr.bf16.mxu0 %v10579_v10  ;;  %v10659_v9 = vld [vmem:[%s14064_s17 + $0x5b8] ss:$12 sps:$4 sm:$0xff]   ;;  %v10664_v10 = vld [vmem:[%s14064_s17 + $0x5d4] ss:$12 sps:$4 sm:$0xff]  }
 0xf63   :  { %5628 = vmatpush1.bf16.msra.mxu1 %v10576_v12  ;;  %8957 = vmatpush3.bf16.msra.mxu0 %v10580_v13  ;;  %v10662_v12 = vld [vmem:[%s14064_s17 + $0x5d0] ss:$12 sps:$4 sm:$0xff]   ;;  %v10667_v13 = vld [vmem:[%s14064_s17 + $0x5ec] ss:$12 sps:$4 sm:$0xff]  }
 0xf64   :  { %5629 = vmatprep.subr.bf16.mxu1 %v10583_v19  ;;  %8958 = vmatprep.subr.bf16.mxu0 %v10584_v22  ;;  %v10665_v19 = vld [vmem:[%s14064_s17 + $0x5e8] ss:$12 sps:$4 sm:$0xff]   ;;  %v5879_v22 = vld [vmem:[%s14066_s20 + $0x80] sm:$0xff] }
 0xf67   :  { %5630 = vmatpush1.bf16.msra.mxu1 %v10581_v27  ;;  %8959 = vmatpush3.bf16.msra.mxu0 %v10585_v29  ;;  %v5880_v27 = vld [vmem:[%s14066_s20 + $0x88] sm:$0xff]  ;;  %v5863_v29 = vld [vmem:[%s14066_s20] sm:$0xff] }
 0xf68   :  { %5631 = vmatprep.subr.bf16.mxu1 %v10588_v30  ;;  %8960 = vmatprep.subr.bf16.mxu0 %v10589_v32  ;;  %v13130_v30 = vpack.c.bf16 %v5880_v27, %v5879_v22  ;;  %v5864_v32 = vld [vmem:[%s14066_s20 + $0x8] sm:$0xff]  ;;  %v5894_v22 = vld [vmem:[%s14066_s20 + $0xf8] sm:$0xff] }
 0xf6b   :  { %5632 = vmatpush1.bf16.msra.mxu1 %v10586_v35  ;;  %8961 = vmatpush3.bf16.msra.mxu0 %v10590_v58  ;;  %v5881_v35 = vld [vmem:[%s14066_s20 + $0x90] sm:$0xff]  ;;  %v5882_v58 = vld [vmem:[%s14066_s20 + $0x98] sm:$0xff] }
 0xf6c   :  { %5633 = vmatprep.subr.bf16.mxu1 %v10593_v62  ;;  %8962 = vmatprep.subr.bf16.mxu0 %v10594_v63  ;;  %v13141_v62 = vpack.c.bf16 %v5864_v32, %v5863_v29  ;;  %v13143_v63 = vpack.c.bf16 %v5882_v58, %v5881_v35  ;;  %v5877_v29 = vld [vmem:[%s14066_s20 + $0x70] sm:$0xff]  ;;  %v5878_v32 = vld [vmem:[%s14066_s20 + $0x78] sm:$0xff]  ;;  %v10772_v58 = vmov 0.0|0.0  }
 0xf6d   :  { %v13261_v35 = vpack.c.bf16 %v5878_v32, %v5877_v29  ;;  %v5905_v32 = vld [vmem:[%s14066_s20 + $0x150] sm:$0xff] }
 0xf6f   :  { %5634 = vmatpush1.bf16.msra.mxu1 %v10591_v5  ;;  %8963 = vmatpush3.bf16.msra.mxu0 %v10595_v18  ;;  %v5865_v5 = vld [vmem:[%s14066_s20 + $0x10] sm:$0xff]  ;;  %v5866_v18 = vld [vmem:[%s14066_s20 + $0x18] sm:$0xff] }
 0xf70   :  { %5635 = vmatprep.subr.bf16.mxu1 %v10598_v24  ;;  %v5883_v24 = vld [vmem:[%s14066_s20 + $0xa0] sm:$0xff]  ;;  %9637 = vmatprep.subr.bf16.mxu0 %v13130_v30 }
 0xf72   :  { %5854 = vmatmul.mubr.bf16.vlgmr.msra.gmra.mrb[56].mxu0 %v12973_v38 }
 0xf73   :  { %5636 = vmatpush1.bf16.msra.mxu1 %v10596_v40  ;;  %9639 = vmatpush3.bf16.msra.mxu0 %v13141_v62  ;;  %v13159_v40 = vpack.c.bf16 %v5866_v18, %v5865_v5 }
 0xf74   :  { %5637 = vmatprep.subr.bf16.mxu1 %v10601_v42  ;;  %9641 = vmatprep.subr.bf16.mxu0 %v13143_v63 }
 0xf77   :  { %5638 = vmatpush1.bf16.msra.mxu1 %v10599_v43  ;;  %v5867_v43 = vld [vmem:[%s14066_s20 + $0x20] sm:$0xff]  ;;  %9643 = vmatpush3.bf16.msra.mxu0 %v13159_v40 }
 0xf78   :  { %5639 = vmatprep.subr.bf16.mxu1 %v10604_v2  ;;  %v5868_v2 = vld [vmem:[%s14066_s20 + $0x28] sm:$0xff] }
 0xf7b   :  { %5640 = vmatpush1.bf16.msra.mxu1 %v10602_v44  ;;  %v5885_v44 = vld [vmem:[%s14066_s20 + $0xb0] sm:$0xff] }
 0xf7c   :  { %5641 = vmatprep.subr.bf16.mxu1 %v10607_v45  ;;  %v5886_v45 = vld [vmem:[%s14066_s20 + $0xb8] sm:$0xff] }
 0xf7f   :  { %5642 = vmatpush1.bf16.msra.mxu1 %v10605_v46  ;;  %v13177_v46 = vpack.c.bf16 %v5868_v2, %v5867_v43 }
 0xf80   :  { %5643 = vmatprep.subr.bf16.mxu1 %v10610_v47  ;;  %v13180_v47 = vpack.c.bf16 %v5886_v45, %v5885_v44 }
 0xf83   :  { %5644 = vmatpush1.bf16.msra.mxu1 %v10608_v49  ;;  %v5869_v49 = vld [vmem:[%s14066_s20 + $0x30] sm:$0xff] }
 0xf84   :  { %5645 = vmatprep.subr.bf16.mxu1 %v10613_v7  ;;  %v5870_v7 = vld [vmem:[%s14066_s20 + $0x38] sm:$0xff] }
 0xf87   :  { %5646 = vmatpush1.bf16.msra.mxu1 %v10611_v51  ;;  %v5887_v51 = vld [vmem:[%s14066_s20 + $0xc0] sm:$0xff] }
 0xf88   :  { %5647 = vmatprep.subr.bf16.mxu1 %v10616_v52  ;;  %v5888_v52 = vld [vmem:[%s14066_s20 + $0xc8] sm:$0xff] }
 0xf8b   :  { %5648 = vmatpush1.bf16.msra.mxu1 %v10614_v54  ;;  %v13195_v54 = vpack.c.bf16 %v5870_v7, %v5869_v49 }
 0xf8c   :  { %5649 = vmatprep.subr.bf16.mxu1 %v10619_v55  ;;  %v13198_v55 = vpack.c.bf16 %v5888_v52, %v5887_v51 }
 0xf8f   :  { %5650 = vmatpush1.bf16.msra.mxu1 %v10617_v14 }
 0xf90   :  { %5660 = vmatprep.subr.bf16.mxu1 %v10622_v15 }
 0xf92   :  { %5652 = vmatmul.mubr.bf16.vlgmr.msra.gmra.mrb[52].mxu1 %v12868_v37  ;;  %v10635_v37 = vld [vmem:[%s14064_s17 + $0x4f8] ss:$12 sps:$4 sm:$0xff]  }
 0xf93   :  { %5661 = vmatpush1.bf16.msra.mxu1 %v10620_v26  ;;  %5692 = vmatprep.mubr.bf16.mxu1 %v12884_v53  ;;  %v10646_v53 = vld [vmem:[%s14064_s17 + $0x544] ss:$12 sps:$4 sm:$0xff]  }
 0xf94   :  { %5662 = vmatprep.subr.bf16.mxu1 %v10625_v28 }
 0xf97   :  { %5663 = vmatpush1.bf16.msra.mxu1 %v10623_v57 }
 0xf98   :  { %5664 = vmatprep.subr.bf16.mxu1 %v10628_v59 }
 0xf9b   :  { %5665 = vmatpush1.bf16.msra.mxu1 %v10626_v0 }
 0xf9c   :  { %5666 = vmatprep.subr.bf16.mxu1 %v10631_v4 }
 0xf9f   :  { %5667 = vmatpush1.bf16.msra.mxu1 %v10629_v6 }
 0xfa0   :  { %5668 = vmatprep.subr.bf16.mxu1 %v10634_v17 }
 0xfa3   :  { %5669 = vmatpush1.bf16.msra.mxu1 %v10632_v20 }
 0xfa4   :  { %5670 = vmatprep.subr.bf16.mxu1 %v10637_v33  ;;  %v5871_v33 = vld [vmem:[%s14066_s20 + $0x40] sm:$0xff] }
 0xfa7   :  { %5671 = vmatpush1.bf16.msra.mxu1 %v10635_v37  ;;  %v5872_v37 = vld [vmem:[%s14066_s20 + $0x48] sm:$0xff] }
 0xfa8   :  { %5672 = vmatprep.subr.bf16.mxu1 %v10640_v31  ;;  %v13208_v31 = vpack.c.bf16 %v5872_v37, %v5871_v33 }
 0xfab   :  { %5673 = vmatpush1.bf16.msra.mxu1 %v10638_v48 }
 0xfac   :  { %5674 = vmatprep.subr.bf16.mxu1 %v10643_v50  ;;  %v5889_v50 = vld [vmem:[%s14066_s20 + $0xd0] sm:$0xff] }
 0xfaf   :  { %5675 = vmatpush1.bf16.msra.mxu1 %v10641_v34  ;;  %v5890_v34 = vld [vmem:[%s14066_s20 + $0xd8] sm:$0xff] }
 0xfb0   :  { %5676 = vmatprep.subr.bf16.mxu1 %v10646_v53 }
 0xfb3   :  { %5677 = vmatpush1.bf16.msra.mxu1 %v10644_v11  ;;  %v13217_v11 = vpack.c.bf16 %v5890_v34, %v5889_v50  ;;  %v5897_v34 = vld [vmem:[%s14066_s20 + $0x110] sm:$0xff] }
 0xfb4   :  { %5678 = vmatprep.subr.bf16.mxu1 %v10649_v23  ;;  %v5873_v23 = vld [vmem:[%s14066_s20 + $0x50] sm:$0xff] }
 0xfb7   :  { %5679 = vmatpush1.bf16.msra.mxu1 %v10647_v56  ;;  %v5874_v56 = vld [vmem:[%s14066_s20 + $0x58] sm:$0xff] }
 0xfb8   :  { %5680 = vmatprep.subr.bf16.mxu1 %v10652_v60 }
 0xfbb   :  { %5681 = vmatpush1.bf16.msra.mxu1 %v10650_v61 }
 0xfbc   :  { %5682 = vmatprep.subr.bf16.mxu1 %v10655_v25  ;;  %v13225_v25 = vpack.c.bf16 %v5874_v56, %v5873_v23  ;;  %v5899_v56 = vld [vmem:[%s14066_s20 + $0x120] sm:$0xff] }
 0xfbf   :  { %5683 = vmatpush1.bf16.msra.mxu1 %v10653_v16 }
 0xfc0   :  { %5684 = vmatprep.subr.bf16.mxu1 %v10658_v1 }
 0xfc3   :  { %5685 = vmatpush1.bf16.msra.mxu1 %v10656_v3  ;;  %v5891_v3 = vld [vmem:[%s14066_s20 + $0xe0] sm:$0xff] }
 0xfc4   :  { %5686 = vmatprep.subr.bf16.mxu1 %v10661_v8  ;;  %v5892_v8 = vld [vmem:[%s14066_s20 + $0xe8] sm:$0xff] }
 0xfc7   :  { %5687 = vmatpush1.bf16.msra.mxu1 %v10659_v9  ;;  %v13235_v9 = vpack.c.bf16 %v5892_v8, %v5891_v3 }
 0xfc8   :  { %5688 = vmatprep.subr.bf16.mxu1 %v10664_v10  ;;  %v5875_v10 = vld [vmem:[%s14066_s20 + $0x60] sm:$0xff] }
 0xfcb   :  { %5689 = vmatpush1.bf16.msra.mxu1 %v10662_v12  ;;  %v5876_v12 = vld [vmem:[%s14066_s20 + $0x68] sm:$0xff] }
 0xfcc   :  { %5690 = vmatprep.subr.bf16.mxu1 %v10667_v13  ;;  %v13243_v13 = vpack.c.bf16 %v5876_v12, %v5875_v10  ;;  %v5903_v12 = vld [vmem:[%s14066_s20 + $0x140] sm:$0xff] }
 0xfcf   :  { %5691 = vmatpush1.bf16.msra.mxu1 %v10665_v19  ;;  %v5893_v19 = vld [vmem:[%s14066_s20 + $0xf0] sm:$0xff] }
 0xfd0   :  { %v13253_v27 = vpack.c.bf16 %v5894_v22, %v5893_v19  ;;  %v5904_v19 = vld [vmem:[%s14066_s20 + $0x148] sm:$0xff] }
 0xfd1   :  { %v13325_v22 = vpack.c.bf16 %v5904_v19, %v5903_v12  ;;  %v5927_v12 = vld [vmem:[%s14067_s21 + $0x80] sm:$0xff] }
 0xfd2   :  { %5693 = vmatmul.mubr.bf16.vlgmr.msra.gmra.mrb[52].mxu1 %v12973_v38  ;;  %v5884_v38 = vld [vmem:[%s14066_s20 + $0xa8] sm:$0xff]  ;;  %v5923_v19 = vld [vmem:[%s14067_s21 + $0x60] sm:$0xff] }
 0xfd3   :  { %6186 = vmatprep.mubr.f32.mxu1 %v10771_v21  ;;  %v13162_v42 = vpack.c.bf16 %v5884_v38, %v5883_v24 }
 0xfd5   :  { %9645 = vmatprep.subr.bf16.mxu0 %v13162_v42 }
 0xfd6   :  { %9647 = vmatpush3.bf16.msra.mxu0 %v13177_v46 }
 0xfd7   :  { %9649 = vmatprep.subr.bf16.mxu0 %v13180_v47 }
 0xfda   :  { %9651 = vmatpush3.bf16.msra.mxu0 %v13195_v54 }
 0xfdb   :  { %9653 = vmatprep.subr.bf16.mxu0 %v13198_v55 }
 0xfde   :  { %9655 = vmatpush3.bf16.msra.mxu0 %v13208_v31 }
 0xfdf   :  { %9657 = vmatprep.subr.bf16.mxu0 %v13217_v11 }
 0xfe2   :  { %9659 = vmatpush3.bf16.msra.mxu0 %v13225_v25 }
 0xfe3   :  { %9661 = vmatprep.subr.bf16.mxu0 %v13235_v9 }
 0xfe5   :  { %v8898_v14 = vpop.f32.mrb[44].mxu0 }
 0xfe6   :  { %v8899_v15 = vpop.f32.mrb[45].mxu0  ;;  %9663 = vmatpush3.bf16.msra.mxu0 %v13243_v13 }
 0xfe7   :  { %v8900_v26 = vadd.f32 %v8899_v15, %v8898_v14  ;;  %v8901_v28 = vpop.f32.mrb[46].mxu0  ;;  %9665 = vmatprep.subr.bf16.mxu0 %v13253_v27 }
 0xfe8   :  { %v8902_v57 = vpop.f32.mrb[47].mxu0 }
 0xfea   :  { %9667 = vmatpush3.bf16.msra.mxu0 %v13261_v35 }
 0xfeb   :  { %9668 = vmatprep.subr.bf16.mxu0 %v10772_v58 }
0x1005   :  { %v8920_v59 = vpop.f32.mrb[48].mxu0 }
0x1006   :  { %v8921_v0 = vpop.f32.mrb[49].mxu0 }
0x1007   :  { %v8922_v4 = vadd.f32 %v8921_v0, %v8920_v59  ;;  %v8923_v6 = vpop.f32.mrb[50].mxu0 }
0x1008   :  { %v8924_v17 = vpop.f32.mrb[51].mxu0 }
0x1009   :  { %v5776_v20 = vadd.f32 %v8922_v4, %v8900_v26  ;;  %v5895_v17 = vld [vmem:[%s14066_s20 + $0x100] sm:$0xff] }
0x1025   :  { %v8942_v48 = vpop.f32.mrb[52].mxu0 }
0x1026   :  { %v8943_v53 = vpop.f32.mrb[53].mxu0 }
0x1027   :  { %v8944_v60 = vadd.f32 %v8943_v53, %v8942_v48  ;;  %v8945_v61 = vpop.f32.mrb[54].mxu0  ;;  %v5898_v53 = vld [vmem:[%s14066_s20 + $0x118] sm:$0xff] }
0x1028   :  { %v8946_v16 = vpop.f32.mrb[55].mxu0  ;;  %v13291_v23 = vpack.c.bf16 %v5898_v53, %v5897_v34  ;;  %v5917_v34 = vld [vmem:[%s14067_s21 + $0x30] sm:$0xff] }
0x1029   :  { %v5816_v1 = vadd.f32 %v8944_v60, %v5776_v20  ;;  %v5896_v20 = vld [vmem:[%s14066_s20 + $0x108] sm:$0xff]  ;;  %v5901_v16 = vld [vmem:[%s14066_s20 + $0x130] sm:$0xff] }
0x102a   :  { %v13282_v48 = vpack.c.bf16 %v5896_v20, %v5895_v17  ;;  %v5900_v60 = vld [vmem:[%s14066_s20 + $0x128] sm:$0xff] }
0x102b   :  { %v13303_v61 = vpack.c.bf16 %v5900_v60, %v5899_v56  ;;  %v5916_v17 = vld [vmem:[%s14067_s21 + $0x28] sm:$0xff]  ;;  %v5919_v60 = vld [vmem:[%s14067_s21 + $0x40] sm:$0xff] }
0x102c   :  { %v5920_v56 = vld [vmem:[%s14067_s21 + $0x48] sm:$0xff] }
0x1045   :  { %v8964_v5 = vpop.f32.mrb[56].mxu0 }
0x1046   :  { %v8965_v18 = vpop.f32.mrb[57].mxu0 }
0x1047   :  { %v8966_v24 = vadd.f32 %v8965_v18, %v8964_v5  ;;  %v8967_v38 = vpop.f32.mrb[58].mxu0  ;;  %v5906_v5 = vld [vmem:[%s14066_s20 + $0x158] sm:$0xff] }
0x1048   :  { %v8968_v43 = vpop.f32.mrb[59].mxu0  ;;  %v13335_v18 = vpack.c.bf16 %v5906_v5, %v5905_v32  ;;  %v5907_v38 = vld [vmem:[%s14066_s20 + $0x160] sm:$0xff]  ;;  %v5926_v32 = vld [vmem:[%s14067_s21 + $0x78] sm:$0xff]  ;;  %v5925_v5 = vld [vmem:[%s14067_s21 + $0x70] sm:$0xff] }
0x1049   :  { %v13266_v2 = vadd.f32 %v8966_v24, %v5816_v1  ;;  %v5902_v1 = vld [vmem:[%s14066_s20 + $0x138] sm:$0xff]  ;;  %v5908_v43 = vld [vmem:[%s14066_s20 + $0x168] sm:$0xff] }
0x104a   :  { %v13315_v8 = vpack.c.bf16 %v5902_v1, %v5901_v16  ;;  %v5922_v16 = vld [vmem:[%s14067_s21 + $0x58] sm:$0xff]  ;;  %v13409_v1 = vpack.c.bf16 %v5920_v56, %v5917_v34  ;;  %v5937_v56 = vld [vmem:[%s14067_s21 + $0xd0] sm:$0xff] }
0x104b   :  { %v5974_v3 = vsel %vm5959_vm4, %v13266_v2, 0.0  ;;  %v5938_v34 = vld [vmem:[%s14067_s21 + $0xd8] sm:$0xff] }
0x104c   :  { %v5975_v10 = vrot.slane %v5974_v3, 4 }
0x104e   :  { %v5976_v29 = vadd.f32 %v5975_v10, %v5974_v3  ;;  %v13411_v3 = vpack.c.bf16 %v5922_v16, %v5919_v60  ;;  %v5924_v10 = vld [vmem:[%s14067_s21 + $0x68] sm:$0xff]  ;;  %v5942_v16 = vld [vmem:[%s14067_s21 + $0xf8] sm:$0xff] }
0x104f   :  { %v5940_v60 = vld [vmem:[%s14067_s21 + $0xe8] sm:$0xff] }
0x1050   :  { %v5977_v24 = vrot.slane %v5976_v29, 2 }
0x10a5   :  { %v13268_v44 = vpop.f32.mrb[52].mxu1 }
0x10a6   :  { %v5960_v45 = vsel %vm5959_vm4, %v13268_v44, 0.0  ;;  %v13272_v49 = vpop.f32.mrb[53].mxu1 }
0x10a7   :  { %v5961_v7 = vrot.slane %v5960_v45, 4  ;;  %v5967_v51 = vsel %vm5959_vm4, %v13272_v49, 0.0  ;;  %v5698_v52 = vpop.f32.mrb[54].mxu1 }
0x10a8   :  { %v5968_v14 = vrot.slane %v5967_v51, 4  ;;  %v5699_v15 = vpop.f32.mrb[55].mxu1  ;;  %v5910_v52 = vld [vmem:[%s14066_s20 + $0x178] sm:$0xff] }
0x10a9   :  { %v5962_v26 = vadd.f32 %v5961_v7, %v5960_v45  ;;  %v13345_v45 = vpack.c.bf16 %v5908_v43, %v5907_v38  ;;  %v5978_v7 = vadd.f32 %v5977_v24, %v5976_v29  ;;  %v13424_v29 = vpack.c.bf16 %v5927_v12, %v5924_v10  ;;  %v5928_v24 = vld [vmem:[%s14067_s21 + $0x88] sm:$0xff]  ;;  %v5930_v38 = vld [vmem:[%s14067_s21 + $0x98] sm:$0xff]  ;;  %v5933_v43 = vld [vmem:[%s14067_s21 + $0xb0] sm:$0xff] }
0x10aa   :  { %v5969_v28 = vadd.f32 %v5968_v14, %v5967_v51  ;;  %v5909_v51 = vld [vmem:[%s14066_s20 + $0x170] sm:$0xff] }
0x10ab   :  { %v5963_v57 = vrot.slane %v5962_v26, 2  ;;  %v13355_v14 = vpack.c.bf16 %v5910_v52, %v5909_v51  ;;  %v5979_v15 = vrot.slane %v5978_v7, 1  ;;  %v13445_v51 = vpack.c.bf16 %v5928_v24, %v5925_v5  ;;  %v5929_v52 = vld [vmem:[%s14067_s21 + $0x90] sm:$0xff]  ;;  %v5944_v24 = vld [vmem:[%s14067_s21 + $0x108] sm:$0xff] }
0x10ac   :  { %v5970_v59 = vrot.slane %v5969_v28, 2  ;;  %v5945_v10 = vld [vmem:[%s14067_s21 + $0x110] sm:$0xff] }
0x10ad   :  { %v5964_v0 = vadd.f32 %v5963_v57, %v5962_v26  ;;  %v5980_v26 = vadd.f32 %v5979_v15, %v5978_v7  ;;  %v5915_v57 = vld [vmem:[%s14067_s21 + $0x20] sm:$0xff]  ;;  %v13443_v7 = vpack.c.bf16 %v5926_v32, %v5923_v19  ;;  %v13452_v15 = vpack.c.bf16 %v5933_v43, %v5930_v38  ;;  %v5941_v32 = vld [vmem:[%s14067_s21 + $0xf0] sm:$0xff]  ;;  %v5946_v43 = vld [vmem:[%s14067_s21 + $0x118] sm:$0xff] }
0x10ae   :  { %v5971_v4 = vadd.f32 %v5970_v59, %v5969_v28  ;;  %v5912_v28 = vld [vmem:[%s14067_s21 + $0x8] sm:$0xff]  ;;  %v5911_v59 = vld [vmem:[%s14067_s21] sm:$0xff]  ;;  %v13501_v19 = vpack.c.bf16 %v5940_v60, %v5937_v56  ;;  %v13508_v5 = vpack.c.bf16 %v5945_v10, %v5942_v16  ;;  %v5954_v10 = vld [vmem:[%s14067_s21 + $0x158] sm:$0xff] }
0x10af   :  { %v5965_v6 = vrot.slane %v5964_v0, 1  ;;  %v5943_v38 = vld [vmem:[%s14067_s21 + $0x100] sm:$0xff]  ;;  %v5952_v56 = vld [vmem:[%s14067_s21 + $0x148] sm:$0xff] }
0x10b0   :  { %v5972_v33 = vrot.slane %v5971_v4, 1 }
0x10b1   :  { %v5966_v50 = vadd.f32 %v5965_v6, %v5964_v0  ;;  %v13371_v0 = vpack.c.bf16 %v5915_v57, %v5912_v28  ;;  %v5913_v6 = vld [vmem:[%s14067_s21 + $0x10] sm:$0xff]  ;;  %v5931_v28 = vld [vmem:[%s14067_s21 + $0xa0] sm:$0xff]  ;;  %v5934_v57 = vld [vmem:[%s14067_s21 + $0xb8] sm:$0xff] }
0x10b2   :  { %v5973_v37 = vadd.f32 %v5972_v33, %v5971_v4  ;;  %v5914_v4 = vld [vmem:[%s14067_s21 + $0x18] sm:$0xff]  ;;  %v13384_v33 = vpack.c.bf16 %v5916_v17, %v5913_v6  ;;  %v13473_v17 = vpack.c.bf16 %v5934_v57, %v5931_v28  ;;  %v13527_v28 = vpack.c.bf16 %v5944_v24, %v5941_v32  ;;  %v5957_v32 = vld [vmem:[%s14067_s21 + $0x170] sm:$0xff] }
0x10b3   :  { %v13382_v20 = vpack.c.bf16 %v5914_v4, %v5911_v59  ;;  %9693 = vmatprep.subr.bf16.mxu1 %v13371_v0  ;;  %v5936_v59 = vld [vmem:[%s14067_s21 + $0xc8] sm:$0xff]  ;;  %v5939_v4 = vld [vmem:[%s14067_s21 + $0xe0] sm:$0xff]  ;;  %v13529_v57 = vpack.c.bf16 %v5946_v43, %v5943_v38  ;;  %v13563_v24 = vpack.c.bf16 %v5957_v32, %v5954_v10  ;;  %v5953_v38 = vld [vmem:[%s14067_s21 + $0x150] sm:$0xff] }
0x10b4   :  { %6045 = vmatprep.mubr.f32.mxu0 %v5973_v37  ;;  %v5918_v37 = vld [vmem:[%s14067_s21 + $0x38] sm:$0xff]  ;;  %v5956_v43 = vld [vmem:[%s14067_s21 + $0x168] sm:$0xff] }
0x10b5   :  { %6046 = vmatmul.mubr.f32.vlgmr.msra.gmra.mrb[60].mxu0 %v5966_v50  ;;  %v5921_v50 = vld [vmem:[%s14067_s21 + $0x50] sm:$0xff]  ;;  %9695 = vmatpush1.bf16.msra.mxu1 %v13382_v20 }
0x10b6   :  { %9670 = vmatpush3.bf16.msra.mxu0 %v13282_v48  ;;  %9328 = vmatprep.mubr.msk.f32.mxu0 %vm10773_vm5, %v10771_v21  ;;  %v13396_v53 = vpack.c.bf16 %v5921_v50, %v5918_v37  ;;  %v5935_v37 = vld [vmem:[%s14067_s21 + $0xc0] sm:$0xff]  ;;  %v13480_v50 = vpack.c.bf16 %v5939_v4, %v5936_v59 }
0x10b7   :  { %9671 = vmatprep.subr.bf16.mxu0 %v10772_v58  ;;  %v13499_v12 = vpack.c.bf16 %v5938_v34, %v5935_v37  ;;  %v5947_v59 = vld [vmem:[%s14067_s21 + $0x120] sm:$0xff]  ;;  %v5950_v37 = vld [vmem:[%s14067_s21 + $0x138] sm:$0xff]  ;;  %v5949_v34 = vld [vmem:[%s14067_s21 + $0x130] sm:$0xff] }
0x10b8   :  { %9697 = vmatprep.subr.bf16.mxu1 %v13396_v53  ;;  %v13549_v60 = vpack.c.bf16 %v5950_v37, %v5947_v59  ;;  %v13551_v16 = vpack.c.bf16 %v5952_v56, %v5949_v34  ;;  %v5958_v59 = vld [vmem:[%s14067_s21 + $0x178] sm:$0xff] }
0x10b9   :  { %9699 = vmatpush1.bf16.msra.mxu1 %v13409_v1 }
0x10ba   :  { %9673 = vmatpush3.bf16.msra.mxu0 %v13291_v23  ;;  %9701 = vmatprep.subr.bf16.mxu1 %v13424_v29 }
0x10bb   :  { %9674 = vmatprep.subr.bf16.mxu0 %v10772_v58 }
0x10bd   :  { %9703 = vmatpush1.bf16.msra.mxu1 %v13443_v7 }
0x10be   :  { %9676 = vmatpush3.bf16.msra.mxu0 %v13303_v61  ;;  %9705 = vmatprep.subr.bf16.mxu1 %v13452_v15 }
0x10bf   :  { %9677 = vmatprep.subr.bf16.mxu0 %v10772_v58 }
0x10c2   :  { %9679 = vmatpush3.bf16.msra.mxu0 %v13315_v8 }
0x10c3   :  { %9680 = vmatprep.subr.bf16.mxu0 %v10772_v58 }
0x10c6   :  { %9682 = vmatpush3.bf16.msra.mxu0 %v13325_v22 }
0x10c7   :  { %9683 = vmatprep.subr.bf16.mxu0 %v10772_v58 }
0x10ca   :  { %9685 = vmatpush3.bf16.msra.mxu0 %v13335_v18 }
0x10cb   :  { %9686 = vmatprep.subr.bf16.mxu0 %v10772_v58 }
0x10ce   :  { %9688 = vmatpush3.bf16.msra.mxu0 %v13345_v45 }
0x10cf   :  { %9689 = vmatprep.subr.bf16.mxu0 %v10772_v58 }
0x10d2   :  { %9691 = vmatpush3.bf16.msra.mxu0 %v13355_v14 }
0x10d3   :  { %9724 = vmatprep.subr.bf16.mxu0 %v10772_v58 }
0x10d5   :  { %9329 = vmatmul.mubr.f32.vlgmr.msra.gmra.mrb[62].mxu0 %v5980_v26  ;;  %v5932_v26 = vld [vmem:[%s14067_s21 + $0xa8] sm:$0xff] }
0x10d6   :  { %9363 = vmatprep.mubr.msk.f32.mxu0 %vm10773_vm5, %v10771_v21  ;;  %9726 = vmatpush3.bf16.msra.mxu0 %v13384_v33  ;;  %v13471_v6 = vpack.c.bf16 %v5932_v26, %v5929_v52  ;;  %v5948_v52 = vld [vmem:[%s14067_s21 + $0x128] sm:$0xff]  ;;  %v5951_v26 = vld [vmem:[%s14067_s21 + $0x140] sm:$0xff] }
0x10d7   :  { %9727 = vmatprep.subr.bf16.mxu0 %v10772_v58  ;;  %v13536_v4 = vpack.c.bf16 %v5951_v26, %v5948_v52  ;;  %v5955_v52 = vld [vmem:[%s14067_s21 + $0x160] sm:$0xff]  ;;  %v13575_v26 = vpack.c.bf16 %v5956_v43, %v5953_v38 }
0x10d8   :  { %9707 = vmatpush1.bf16.msra.mxu1 %v13471_v6  ;;  %v13581_v37 = vpack.c.bf16 %v5958_v59, %v5955_v52 }
0x10d9   :  { %9709 = vmatprep.subr.bf16.mxu1 %v13480_v50 }
0x10da   :  { %9729 = vmatpush3.bf16.msra.mxu0 %v13411_v3 }
0x10db   :  { %9730 = vmatprep.subr.bf16.mxu0 %v10772_v58 }
0x10dc   :  { %9711 = vmatpush1.bf16.msra.mxu1 %v13499_v12 }
0x10dd   :  { %9713 = vmatprep.subr.bf16.mxu1 %v13508_v5 }
0x10de   :  { %9732 = vmatpush3.bf16.msra.mxu0 %v13445_v51 }
0x10df   :  { %9733 = vmatprep.subr.bf16.mxu0 %v10772_v58 }
0x10e0   :  { %9715 = vmatpush1.bf16.msra.mxu1 %v13527_v28 }
0x10e1   :  { %9717 = vmatprep.subr.bf16.mxu1 %v13536_v4 }
0x10e2   :  { %9735 = vmatpush3.bf16.msra.mxu0 %v13473_v17 }
0x10e3   :  { %9736 = vmatprep.subr.bf16.mxu0 %v10772_v58 }
0x10e4   :  { %9719 = vmatpush1.bf16.msra.mxu1 %v13549_v60 }
0x10e5   :  { %9721 = vmatprep.subr.bf16.mxu1 %v13563_v24 }
0x10e6   :  { %9738 = vmatpush3.bf16.msra.mxu0 %v13501_v19 }
0x10e7   :  { %9739 = vmatprep.subr.bf16.mxu0 %v10772_v58 }
0x10e8   :  { %9723 = vmatpush1.bf16.msra.mxu1 %v13575_v26 }
0x10e9   :  { %9749 = vmatprep.subr.bf16.mxu1 %v13130_v30 }
0x10ea   :  { %9741 = vmatpush3.bf16.msra.mxu0 %v13529_v57 }
0x10eb   :  { %9742 = vmatprep.subr.bf16.mxu0 %v10772_v58 }
0x10ee   :  { %9744 = vmatpush3.bf16.msra.mxu0 %v13551_v16 }
0x10ef   :  { %9745 = vmatprep.subr.bf16.mxu0 %v10772_v58 }
0x10f2   :  { %9747 = vmatpush3.bf16.msra.mxu0 %v13581_v37 }
0x10f3   :  { %9780 = vmatprep.subr.bf16.mxu0 %v10772_v58 }
0x1188   :  { %v9002_v34 = vpop.f32.mrb[60].mxu0 }
0x1189   :  { %v9003_v56 = vpop.f32.mrb[61].mxu0 }
0x118a   :  { %v9004_v10 = vadd.f32 %v9003_v56, %v9002_v34 }
0x11a8   :  { %v6117_v32 = vpop.f32.mrb[62].mxu0 }
0x11a9   :  { %v6118_v38 = vadd.f32 %v9004_v10, %v6117_v32  ;;  %v9330_v43 = vpop.f32.mrb[63].mxu0 }
0x11ab   :  { %v6121_v36 = vmul.f32 0.055555556, %v6118_v38 }
0x11ad   :  { %6187 = vmatmul.mubr.f32.vlgmr.msra.gmra.mrb[56].mxu1 %v6121_v36  ;;  %9364 = vmatmul.mubr.f32.vlgmr.msra.gmra.mrb[64].mxu0 %v6121_v36 }
0x11ae   :  { %9782 = vmatpush3.bf16.msra.mxu0 %v13282_v48  ;;  %9751 = vmatpush3.bf16.msra.mxu1 %v13141_v62 }
0x11af   :  { %9783 = vmatprep.subr.bf16.mxu0 %v10772_v58  ;;  %9753 = vmatprep.subr.bf16.mxu1 %v13143_v63 }
0x11b0   :  { %9398 = vmatprep.mubr.msk.f32.mxu0 %vm10773_vm5, %v10771_v21 }
0x11b2   :  { %9785 = vmatpush3.bf16.msra.mxu0 %v13291_v23  ;;  %9755 = vmatpush3.bf16.msra.mxu1 %v13159_v40 }
0x11b3   :  { %9786 = vmatprep.subr.bf16.mxu0 %v10772_v58  ;;  %9757 = vmatprep.subr.bf16.mxu1 %v13162_v42 }
0x11b6   :  { %9788 = vmatpush3.bf16.msra.mxu0 %v13303_v61  ;;  %9759 = vmatpush3.bf16.msra.mxu1 %v13177_v46 }
0x11b7   :  { %9789 = vmatprep.subr.bf16.mxu0 %v10772_v58  ;;  %9761 = vmatprep.subr.bf16.mxu1 %v13180_v47 }
0x11ba   :  { %9791 = vmatpush3.bf16.msra.mxu0 %v13315_v8  ;;  %9763 = vmatpush3.bf16.msra.mxu1 %v13195_v54 }
0x11bb   :  { %9792 = vmatprep.subr.bf16.mxu0 %v10772_v58  ;;  %9765 = vmatprep.subr.bf16.mxu1 %v13198_v55 }
0x11be   :  { %9794 = vmatpush3.bf16.msra.mxu0 %v13325_v22  ;;  %9767 = vmatpush3.bf16.msra.mxu1 %v13208_v31 }
0x11bf   :  { %9795 = vmatprep.subr.bf16.mxu0 %v10772_v58  ;;  %9769 = vmatprep.subr.bf16.mxu1 %v13217_v11 }
0x11c2   :  { %9797 = vmatpush3.bf16.msra.mxu0 %v13335_v18  ;;  %9771 = vmatpush3.bf16.msra.mxu1 %v13225_v25 }
0x11c3   :  { %9798 = vmatprep.subr.bf16.mxu0 %v10772_v58  ;;  %9773 = vmatprep.subr.bf16.mxu1 %v13235_v9 }
0x11c6   :  { %9800 = vmatpush3.bf16.msra.mxu0 %v13345_v45  ;;  %9775 = vmatpush3.bf16.msra.mxu1 %v13243_v13 }
0x11c7   :  { %9801 = vmatprep.subr.bf16.mxu0 %v10772_v58  ;;  %9777 = vmatprep.subr.bf16.mxu1 %v13253_v27 }
0x11ca   :  { %9803 = vmatpush3.bf16.msra.mxu0 %v13355_v14  ;;  %9779 = vmatpush3.bf16.msra.mxu1 %v13261_v35 }
0x11cb   :  { %9805 = vmatprep.subr.bf16.mxu1 %v13371_v0  ;;  %9836 = vmatprep.subr.bf16.mxu0 %v10772_v58 }
0x1280   :  { %v6188_v36 = vpop.f32.mrb[56].mxu1  ;;  %v6259_v30 = vpop.f32.mrb[64].mxu0 }
0x1281   :  { %v6266_v62 = vrot.slane %v6188_v36, %v11147_v39  ;;  %v6274_v63 = vrot.slane %v6259_v30, %v11147_v39  ;;  %v6190_v40 = vpop.f32.mrb[57].mxu1  ;;  %v9365_v42 = vpop.f32.mrb[65].mxu0 }
0x1282   :  { %v6270_v46 = vrot.slane %v6190_v40, %v11147_v39 }
0x1283   :  { %v13625_v47 = vsub.f32 %v13268_v44, %v6266_v62  ;;  %v13628_v54 = vsub.f32 %v13266_v2, %v6274_v63 }
0x1284   :  { %v13631_v55 = vsub.f32 %v13272_v49, %v6270_v46 }
0x1285   :  { %v6278_v31 = vmul.f32 %v13625_v47, %v13625_v47  ;;  %v6280_v11 = vmul.f32 %v13628_v54, %v13628_v54 }
0x1286   :  { %v6279_v25 = vmul.f32 %v13631_v55, %v13631_v55 }
0x1287   :  { %v6281_v9 = vsel %vm5959_vm4, %v6278_v31, 0.0  ;;  %v6295_v13 = vsel %vm5959_vm4, %v6280_v11, 0.0 }
0x1288   :  { %v6282_v27 = vrot.slane %v6281_v9, 4  ;;  %v6296_v35 = vrot.slane %v6295_v13, 4  ;;  %v6288_v2 = vsel %vm5959_vm4, %v6279_v25, 0.0  ;;  %v8609_v25 = vld [vmem:[%s14071_s22 + $0x2] sm:$0x3] }
0x1289   :  { %v6289_v44 = vrot.slane %v6288_v2, 4 }
0x128a   :  { %v6283_v49 = vadd.f32 %v6282_v27, %v6281_v9  ;;  %v6297_v48 = vadd.f32 %v6296_v35, %v6295_v13  ;;  %v8613_v13 = vld [vmem:[%s14071_s22 + $0x4] sm:$0x3]  ;;  %v8617_v35 = vld [vmem:[%s14071_s22 + $0x6] sm:$0x3] }
0x128b   :  { %v6290_v23 = vadd.f32 %v6289_v44, %v6288_v2  ;;  %v10668_v27 = vld [vmem:[%s14070_s23 + $0x40] sm:$0xff]   ;;  %v10670_v44 = vld [vmem:[%s14070_s23 + $0x48] sm:$0xff]  }
0x128c   :  { %v6284_v61 = vrot.slane %v6283_v49, 2  ;;  %v6298_v8 = vrot.slane %v6297_v48, 2  ;;  %v10669_v2 = vld [vmem:[%s14070_s23] sm:$0xff]  }
0x128d   :  { %v6291_v22 = vrot.slane %v6290_v23, 2 }
0x128e   :  { %v6299_v18 = vadd.f32 %v6298_v8, %v6297_v48  ;;  %v6285_v45 = vadd.f32 %v6284_v61, %v6283_v49  ;;  %v10671_v49 = vld [vmem:[%s14070_s23 + $0x8] sm:$0xff]   ;;  %v10674_v48 = vld [vmem:[%s14070_s23 + $0x50] sm:$0xff]   ;;  %v10678_v8 = vld [vmem:[%s14070_s23 + $0x58] sm:$0xff]  }
0x128f   :  { %v6292_v14 = vadd.f32 %v6291_v22, %v6290_v23  ;;  %v10672_v23 = vld [vmem:[%s14070_s23 + $0xc0] sm:$0xff]   ;;  %v10675_v61 = vld [vmem:[%s14070_s23 + $0x10] sm:$0xff]   ;;  %v10679_v22 = vld [vmem:[%s14070_s23 + $0x18] sm:$0xff]  }
0x1290   :  { %v6300_v0 = vrot.slane %v6299_v18, 1  ;;  %v6286_v52 = vrot.slane %v6285_v45, 1 }
0x1291   :  { %v6293_v59 = vrot.slane %v6292_v14, 1 }
0x1292   :  { %v6301_v34 = vadd.f32 %v6300_v0, %v6299_v18  ;;  %v6287_v10 = vadd.f32 %v6286_v52, %v6285_v45  ;;  %v10682_v18 = vld [vmem:[%s14070_s23 + $0x60] sm:$0xff]   ;;  %v10686_v0 = vld [vmem:[%s14070_s23 + $0x68] sm:$0xff]  }
0x1293   :  { %v6294_v56 = vadd.f32 %v6293_v59, %v6292_v14  ;;  %v10673_v45 = vld [vmem:[%s14070_s23 + $0x80] sm:$0xff]   ;;  %v10676_v14 = vld [vmem:[%s14070_s23 + $0xc8] sm:$0xff]   ;;  %v10680_v59 = vld [vmem:[%s14070_s23 + $0xd0] sm:$0xff]  }
0x1294   :  { %9399 = vmatmul.mubr.f32.vlgmr.msra.gmra.mrb[66].mxu0 %v6301_v34  ;;  %v10677_v52 = vld [vmem:[%s14070_s23 + $0x88] sm:$0xff]  }
0x1295   :  { %6366 = vmatprep.mubr.f32.mxu1 %v6294_v56  ;;  %9838 = vmatpush3.bf16.msra.mxu0 %v13384_v33  ;;  %v10687_v34 = vld [vmem:[%s14070_s23 + $0x28] sm:$0xff]   ;;  %v10690_v56 = vld [vmem:[%s14070_s23 + $0x70] sm:$0xff]  }
0x1296   :  { %6367 = vmatmul.mubr.f32.vlgmr.msra.gmra.mrb[58].mxu1 %v6287_v10  ;;  %9839 = vmatprep.subr.bf16.mxu0 %v10772_v58  ;;  %v10681_v10 = vld [vmem:[%s14070_s23 + $0x90] sm:$0xff]  }
0x1297   :  { %9807 = vmatpush1.bf16.msra.mxu1 %v13382_v20  ;;  %6517 = vmatprep.mubr.f32.mxu1 %v10771_v21 }
0x1298   :  { %9809 = vmatprep.subr.bf16.mxu1 %v13396_v53  ;;  %9433 = vmatprep.mubr.msk.f32.mxu0 %vm10773_vm5, %v10771_v21 }
0x1299   :  { %9841 = vmatpush3.bf16.msra.mxu0 %v13411_v3 }
0x129a   :  { %9842 = vmatprep.subr.bf16.mxu0 %v10772_v58 }
0x129b   :  { %9811 = vmatpush1.bf16.msra.mxu1 %v13409_v1 }
0x129c   :  { %9813 = vmatprep.subr.bf16.mxu1 %v13424_v29 }
0x129d   :  { %9844 = vmatpush3.bf16.msra.mxu0 %v13445_v51 }
0x129e   :  { %9845 = vmatprep.subr.bf16.mxu0 %v10772_v58 }
0x129f   :  { %9815 = vmatpush1.bf16.msra.mxu1 %v13443_v7 }
0x12a0   :  { %9817 = vmatprep.subr.bf16.mxu1 %v13452_v15 }
0x12a1   :  { %9847 = vmatpush3.bf16.msra.mxu0 %v13473_v17 }
0x12a2   :  { %9848 = vmatprep.subr.bf16.mxu0 %v10772_v58 }
0x12a3   :  { %9819 = vmatpush1.bf16.msra.mxu1 %v13471_v6  ;;  %v8605_v6 = vld [vmem:[%s14069_s19] ss:$0 sm:$0xff] }
0x12a4   :  { %9821 = vmatprep.subr.bf16.mxu1 %v13480_v50 }
0x12a5   :  { %9850 = vmatpush3.bf16.msra.mxu0 %v13501_v19 }
0x12a6   :  { %9851 = vmatprep.subr.bf16.mxu0 %v10772_v58 }
0x12a7   :  { %9823 = vmatpush1.bf16.msra.mxu1 %v13499_v12  ;;  %v14103_v12 = vmov 0  }
0x12a8   :  { %9825 = vmatprep.subr.bf16.mxu1 %v13508_v5 }
0x12a9   :  { %9853 = vmatpush3.bf16.msra.mxu0 %v13529_v57 }
0x12aa   :  { %9854 = vmatprep.subr.bf16.mxu0 %v10772_v58 }
0x12ab   :  { %9827 = vmatpush1.bf16.msra.mxu1 %v13527_v28 }
0x12ac   :  { %9829 = vmatprep.subr.bf16.mxu1 %v13536_v4 }
0x12ad   :  { %9856 = vmatpush3.bf16.msra.mxu0 %v13551_v16 }
0x12ae   :  { %9857 = vmatprep.subr.bf16.mxu0 %v10772_v58  ;;  %v5861_v58 = vld [vmem:[%s14068_s18] sm:$0x1] }
0x12af   :  { %9831 = vmatpush1.bf16.msra.mxu1 %v13549_v60 }
0x12b0   :  { %9833 = vmatprep.subr.bf16.mxu1 %v13563_v24 }
0x12b1   :  { %9859 = vmatpush3.bf16.msra.mxu0 %v13581_v37 }
0x12b3   :  { %9835 = vmatpush1.bf16.msra.mxu1 %v13575_v26 }
0x1367   :  { %v6438_v20 = vpop.f32.mrb[66].mxu0 }
0x1368   :  { %v9400_v33 = vpop.f32.mrb[67].mxu0 }
0x1369   :  { %v9071_v53 = vpop.f32.mrb[58].mxu1  ;;  %v10691_v33 = vld [vmem:[%s14070_s23 + $0x30] sm:$0xff]  }
0x136a   :  { %v9072_v1 = vpop.f32.mrb[59].mxu1 }
0x136b   :  { %v9073_v3 = vadd.f32 %v9072_v1, %v9071_v53  ;;  %v10685_v53 = vld [vmem:[%s14070_s23 + $0x98] sm:$0xff]   ;;  %v10688_v1 = vld [vmem:[%s14070_s23 + $0xe0] sm:$0xff]  }
0x136d   :  { %v6439_v29 = vadd.f32 %v9073_v3, %v6438_v20  ;;  %v10684_v20 = vld [vmem:[%s14070_s23 + $0xd8] sm:$0xff]   ;;  %v10689_v3 = vld [vmem:[%s14070_s23 + $0xa0] sm:$0xff]  }
0x136f   :  { %v6442_v7 = vmul.f32 0.055555556, %v6439_v29  ;;  %v10692_v29 = vld [vmem:[%s14070_s23 + $0xe8] sm:$0xff]  }
0x1371   :  { %v6443_v51 = vadd.f32 1e-05, %v6442_v7  ;;  %v10693_v7 = vld [vmem:[%s14070_s23 + $0xa8] sm:$0xff]  }
0x1373   :  { %10768 = vrsqrt.f32 %v6443_v51  ;;  %v10694_v51 = vld [vmem:[%s14070_s23 + $0x78] sm:$0xff]  }
0x137d   :  { %v10769_v15 = vpop.eup %10768 }
0x137e   :  { %v6445_v17 = vmul.f32 %v10769_v15, %v5861_v58  ;;  %v10695_v58 = vld [vmem:[%s14070_s23 + $0x38] sm:$0xff]   ;;  %v10696_v15 = vld [vmem:[%s14070_s23 + $0xf0] sm:$0xff]  }
0x1380   :  { %v6452_v50 = vsel %vm2406_vm10, %v6445_v17, %v8605_v6  ;;  %vm6637_vm10 = vcmask 48128   ;;  %v10697_v6 = vld [vmem:[%s14070_s23 + $0xb0] sm:$0xff]   ;;  %v10698_v17 = vld [vmem:[%s14070_s23 + $0x140] sm:$0xff]  }
0x1381   :  { %6518 = vmatmul.mubr.f32.vlgmr.msra.gmra.mrb[60].mxu1 %v6452_v50  ;;  %9434 = vmatmul.mubr.f32.vlgmr.msra.gmra.mrb[68].mxu0 %v6452_v50  ;;  %v10700_v50 = vld [vmem:[%s14070_s23 + $0xf8] sm:$0xff]  }
0x1382   :  { %6683 = vmatprep.mubr.bf16.mxu1 %v14103_v12  ;;  %6772 = vmatprep.mubr.bf16.mxu0 %v14103_v12 }
0x1454   :  { %v6519_v19 = vpop.f32.mrb[60].mxu1  ;;  %v6590_v5 = vpop.f32.mrb[68].mxu0 }
0x1455   :  { %v6597_v28 = vrot.slane %v6519_v19, %v11147_v39  ;;  %v6605_v57 = vrot.slane %v6590_v5, %v11147_v39  ;;  %v6521_v4 = vpop.f32.mrb[61].mxu1  ;;  %v9435_v60 = vpop.f32.mrb[69].mxu0  ;;  %v6612_v26 = vrot.slane %v6519_v19, %v11152_v41  ;;  %v6620_v32 = vrot.slane %v6590_v5, %v11152_v41  ;;  %v10704_v19 = vld [vmem:[%s14070_s23 + $0x1c0] sm:$0xff]  }
0x1456   :  { %v6601_v16 = vrot.slane %v6521_v4, %v11147_v39  ;;  %v6616_v43 = vrot.slane %v6521_v4, %v11152_v41 }
0x1457   :  { %v6606_v24 = vmul.f32 %v6597_v28, %v13625_v47  ;;  %v6608_v37 = vmul.f32 %v6605_v57, %v13628_v54 }
0x1458   :  { %v6607_v38 = vmul.f32 %v6601_v16, %v13631_v55  ;;  %v6636_v55 = vld [vmem:[%s14071_s22] sm:$0x3] }
0x1459   :  { %v6621_v36 = vadd.f32 %v6612_v26, %v6606_v24  ;;  %v6623_v30 = vadd.f32 %v6620_v32, %v6608_v37  ;;  %v10699_v26 = vld [vmem:[%s14070_s23 + $0x100] sm:$0xff]  }
0x145a   :  { %v6622_v62 = vadd.f32 %v6616_v43, %v6607_v38 }
0x145b   :  { %v6627_v63 = vmul.f32 0.2, %v6621_v36  ;;  %v6629_v40 = vmul.f32 0.2, %v6623_v30  ;;  %vm6624_vm6 = vcmp.ge.f32.partialorder %v6621_v36, 0.0  ;;  %vm6626_vm7 = vcmp.ge.f32.partialorder %v6623_v30, 0.0 }
0x145c   :  { %vm6625_vm8 = vcmp.ge.f32.partialorder %v6622_v62, 0.0  ;;  %v6628_v39 = vmul.f32 0.2, %v6622_v62 }
0x145d   :  { %v6630_v42 = vsel %vm6624_vm6, %v6621_v36, %v6627_v63  ;;  %v6632_v54 = vsel %vm6626_vm7, %v6623_v30, %v6629_v40  ;;  %v10702_v36 = vld [vmem:[%s14070_s23 + $0x148] sm:$0xff]   ;;  %v10705_v40 = vld [vmem:[%s14070_s23 + $0x180] sm:$0xff]  }
0x145e   :  { %v6631_v46 = vsel %vm6625_vm8, %v6622_v62, %v6628_v39  ;;  %v6633_v47 = vpack.c.bf16 %v6630_v42, %v6630_v42  ;;  %v6635_v41 = vpack.c.bf16 %v6632_v54, %v6632_v54  ;;  %v10703_v30 = vld [vmem:[%s14070_s23 + $0x108] sm:$0xff]   ;;  %v10706_v62 = vld [vmem:[%s14070_s23 + $0x150] sm:$0xff]  }
0x145f   :  { %v6634_v31 = vpack.c.bf16 %v6631_v46, %v6631_v46 }
0x1460   :  { %v6643_v11 = vsel %vm6641_vm9, %v6633_v47, 0  ;;  %v6649_v9 = vsel %vm6641_vm9, %v6635_v41, 0  ;;  %v10708_v47 = vld [vmem:[%s14070_s23 + $0x1c8] sm:$0xff]  }
0x1461   :  { %8606 = vmatprep.subr.msk.bf16.mxu1 %vm6641_vm9, %v6634_v31  ;;  %8610 = vmatprep.subr.msk.bf16.mxu0 %vm6641_vm9, %v6634_v31 }
0x1462   :  { %6652 = vmatpush1.bf16.msra.mxu1 %v6643_v11  ;;  %6741 = vmatpush1.bf16.msra.mxu0 %v6643_v11 }
0x1463   :  { %8614 = vmatprep.subr.msk.bf16.mxu0 %vm6641_vm9, %v6634_v31  ;;  %9436 = vmatprep.subr.bf16.mxu1 %v10771_v21 }
0x1465   :  { %8607 = vmatmul.mubr.msk.bf16.vlgmr.msra.gmra.mrb[64].mxu1 %vm6637_vm10, %v6636_v55  ;;  %8611 = vmatmul.mubr.msk.bf16.vlgmr.msra.gmra.mrb[72].mxu0 %vm6637_vm10, %v8609_v25 }
0x1466   :  { %9437 = vmatpush3.bf16.msra.mxu1 %v6649_v9  ;;  %6830 = vmatpush1.bf16.msra.mxu0 %v6643_v11 }
0x1467   :  { %8618 = vmatprep.subr.msk.bf16.mxu0 %vm6641_vm9, %v6634_v31  ;;  %9438 = vmatprep.mubr.msk.bf16.mxu1 %vm10773_vm5, %v10771_v21 }
0x1468   :  { %9442 = vmatprep.subr.bf16.mxu1 %v10771_v21  ;;  %6861 = vmatprep.mubr.bf16.mxu0 %v14103_v12 }
0x146d   :  { %9439 = vmatmul.mubr.msk.bf16.vlgmr.msra.gmra.mrb[68].mxu1 %vm6637_vm10, %v6636_v55  ;;  %8615 = vmatmul.mubr.msk.bf16.vlgmr.msra.gmra.mrb[76].mxu0 %vm6637_vm10, %v8613_v13 }
0x146e   :  { %9443 = vmatpush3.bf16.msra.mxu1 %v6649_v9  ;;  %6919 = vmatpush1.bf16.msra.mxu0 %v6643_v11  ;;  %v10707_v11 = vld [vmem:[%s14070_s23 + $0x110] sm:$0xff]  }
0x146f   :  { %9444 = vmatprep.mubr.msk.bf16.mxu1 %vm10773_vm5, %v10771_v21  ;;  %9448 = vmatprep.subr.bf16.mxu1 %v10771_v21 }
0x1470   :  { %6950 = vmatprep.mubr.bf16.mxu0 %v14103_v12  ;;  %9116 = vmatprep.subr.bf16.mxu0 %v10668_v27  ;;  %v10701_v12 = vld [vmem:[%s14070_s23 + $0xb8] sm:$0xff]   ;;  %v10709_v27 = vld [vmem:[%s14070_s23 + $0x188] sm:$0xff]  }
0x1475   :  { %9445 = vmatmul.mubr.msk.bf16.vlgmr.msra.gmra.mrb[72].mxu1 %vm6637_vm10, %v8609_v25  ;;  %8619 = vmatmul.mubr.msk.bf16.vlgmr.msra.gmra.mrb[80].mxu0 %vm6637_vm10, %v8617_v35 }
0x1476   :  { %9449 = vmatpush3.bf16.msra.mxu1 %v6649_v9  ;;  %9450 = vmatprep.mubr.msk.bf16.mxu1 %vm10773_vm5, %v10771_v21 }
0x1477   :  { %9454 = vmatprep.subr.bf16.mxu1 %v10771_v21  ;;  %9117 = vmatpush3.bf16.msra.mxu0 %v10669_v2  ;;  %v10711_v2 = vld [vmem:[%s14070_s23 + $0x118] sm:$0xff]  }
0x1478   :  { %9118 = vmatprep.subr.bf16.mxu0 %v10670_v44  ;;  %v10714_v44 = vld [vmem:[%s14070_s23 + $0x160] sm:$0xff]  }
0x147b   :  { %9119 = vmatpush3.bf16.msra.mxu0 %v10671_v49  ;;  %v10713_v49 = vld [vmem:[%s14070_s23 + $0x190] sm:$0xff]  }
0x147c   :  { %9120 = vmatprep.subr.bf16.mxu0 %v10674_v48 }
0x147d   :  { %9451 = vmatmul.mubr.msk.bf16.vlgmr.msra.gmra.mrb[76].mxu1 %vm6637_vm10, %v8613_v13 }
0x147e   :  { %9455 = vmatpush3.bf16.msra.mxu1 %v6649_v9  ;;  %9456 = vmatprep.mubr.msk.bf16.mxu1 %vm10773_vm5, %v10771_v21  ;;  %v10683_v21 = vld [vmem:[%s14070_s23 + $0x20] sm:$0xff]   ;;  %v10710_v9 = vld [vmem:[%s14070_s23 + $0x158] sm:$0xff]  }
0x147f   :  { %9138 = vmatprep.subr.bf16.mxu1 %v10672_v23  ;;  %9121 = vmatpush3.bf16.msra.mxu0 %v10675_v61  ;;  %v10716_v61 = vld [vmem:[%s14070_s23 + $0x1d8] sm:$0xff]  }
0x1480   :  { %9122 = vmatprep.subr.bf16.mxu0 %v10678_v8 }
0x1483   :  { %9123 = vmatpush3.bf16.msra.mxu0 %v10679_v22 }
0x1484   :  { %9124 = vmatprep.subr.bf16.mxu0 %v10682_v18 }
0x1485   :  { %9457 = vmatmul.mubr.msk.bf16.vlgmr.msra.gmra.mrb[80].mxu1 %vm6637_vm10, %v8617_v35  ;;  %v10712_v35 = vld [vmem:[%s14070_s23 + $0x1d0] sm:$0xff]  }
0x1486   :  { %9139 = vmatpush3.bf16.msra.mxu1 %v10673_v45  ;;  %v10715_v45 = vld [vmem:[%s14070_s23 + $0x120] sm:$0xff]  }
0x1487   :  { %9140 = vmatprep.subr.bf16.mxu1 %v10676_v14  ;;  %9125 = vmatpush3.bf16.msra.mxu0 %v10683_v21 }
0x1488   :  { %9126 = vmatprep.subr.bf16.mxu0 %v10686_v0  ;;  %v10718_v0 = vld [vmem:[%s14070_s23 + $0x168] sm:$0xff]  }
0x148a   :  { %9141 = vmatpush3.bf16.msra.mxu1 %v10677_v52 }
0x148b   :  { %9142 = vmatprep.subr.bf16.mxu1 %v10680_v59  ;;  %9127 = vmatpush3.bf16.msra.mxu0 %v10687_v34  ;;  %v10717_v34 = vld [vmem:[%s14070_s23 + $0x198] sm:$0xff]  }
0x148c   :  { %9128 = vmatprep.subr.bf16.mxu0 %v10690_v56  ;;  %v10720_v56 = vld [vmem:[%s14070_s23 + $0x1e0] sm:$0xff]  }
0x148e   :  { %9143 = vmatpush3.bf16.msra.mxu1 %v10681_v10  ;;  %v10719_v10 = vld [vmem:[%s14070_s23 + $0x128] sm:$0xff]  }
0x148f   :  { %9144 = vmatprep.subr.bf16.mxu1 %v10684_v20  ;;  %9129 = vmatpush3.bf16.msra.mxu0 %v10691_v33  ;;  %v10722_v20 = vld [vmem:[%s14070_s23 + $0x170] sm:$0xff]   ;;  %v10721_v33 = vld [vmem:[%s14070_s23 + $0x1a0] sm:$0xff]  }
0x1490   :  { %9130 = vmatprep.subr.bf16.mxu0 %v10694_v51  ;;  %v10726_v51 = vld [vmem:[%s14070_s23 + $0x178] sm:$0xff]  }
0x1492   :  { %9145 = vmatpush3.bf16.msra.mxu1 %v10685_v53 }
0x1493   :  { %9146 = vmatprep.subr.bf16.mxu1 %v10688_v1  ;;  %9131 = vmatpush3.bf16.msra.mxu0 %v10695_v58  ;;  %v10724_v1 = vld [vmem:[%s14070_s23 + $0x1e8] sm:$0xff]  }
0x1494   :  { %9160 = vmatprep.subr.bf16.mxu0 %v10698_v17  ;;  %v10727_v17 = vld [vmem:[%s14070_s23 + $0x138] sm:$0xff]  }
0x1496   :  { %9147 = vmatpush3.bf16.msra.mxu1 %v10689_v3 }
0x1497   :  { %9148 = vmatprep.subr.bf16.mxu1 %v10692_v29  ;;  %v10723_v29 = vld [vmem:[%s14070_s23 + $0x130] sm:$0xff]  }
0x149a   :  { %9149 = vmatpush3.bf16.msra.mxu1 %v10693_v7 }
0x149b   :  { %9150 = vmatprep.subr.bf16.mxu1 %v10696_v15  ;;  %v10725_v15 = vld [vmem:[%s14070_s23 + $0x1a8] sm:$0xff]  }
0x149e   :  { %9151 = vmatpush3.bf16.msra.mxu1 %v10697_v6  ;;  %v10728_v6 = vld [vmem:[%s14070_s23 + $0x1f0] sm:$0xff]  }
0x149f   :  { %9152 = vmatprep.subr.bf16.mxu1 %v10700_v50  ;;  %v10730_v50 = vld [vmem:[%s14070_s23 + $0x240] sm:$0xff]  }
0x14a2   :  { %9153 = vmatpush3.bf16.msra.mxu1 %v10701_v12  ;;  %v10729_v12 = vld [vmem:[%s14070_s23 + $0x1b0] sm:$0xff]  }
0x14a3   :  { %9182 = vmatprep.subr.bf16.mxu1 %v10704_v19 }
0x1538   :  { %v6685_v5 = vpop.f32.mrb[64].mxu1  ;;  %v6774_v28 = vpop.f32.mrb[72].mxu0 }
0x1539   :  { %v6687_v57 = vpop.f32.mrb[65].mxu1  ;;  %v6821_v4 = vpack.c.bf16 %v6774_v28, %v6774_v28  ;;  %v13835_v60 = vpop.f32.mrb[73].mxu0  ;;  %v6732_v32 = vpack.c.bf16 %v6685_v5, %v6685_v5  ;;  %v10732_v5 = vld [vmem:[%s14070_s23 + $0x1f8] sm:$0xff]  }
0x153a   :  { %v6733_v16 = vpack.c.bf16 %v6687_v57, %v6687_v57  ;;  %v6689_v24 = vpop.f32.mrb[66].mxu1  ;;  %v6778_v37 = vpop.f32.mrb[74].mxu0  ;;  %v10731_v57 = vld [vmem:[%s14070_s23 + $0x200] sm:$0xff]  }
0x153b   :  { %v6690_v38 = vpop.f32.mrb[67].mxu1  ;;  %v6779_v43 = vpop.f32.mrb[75].mxu0  ;;  %7849 = vmatprep.mubr.bf16.mxu1 %v6821_v4  ;;  %v6822_v24 = vpack.c.bf16 %v13835_v60, %v13835_v60  ;;  %v10735_v60 = vld [vmem:[%s14070_s23 + $0x208] sm:$0xff]  }
0x153c   :  { %7809 = vmatprep.mubr.bf16.mxu0 %v6733_v16  ;;  %v10736_v38 = vld [vmem:[%s14070_s23 + $0x2c0] sm:$0xff]  }
0x153d   :  { %7810 = vmatmul.mubr.bf16.vlgmr.msra.gmra.mrb[84].mxu0 %v6732_v32  ;;  %v10733_v32 = vld [vmem:[%s14070_s23 + $0x1b8] sm:$0xff]  }
0x153e   :  { %9161 = vmatpush3.bf16.msra.mxu0 %v10699_v26  ;;  %v10734_v26 = vld [vmem:[%s14070_s23 + $0x248] sm:$0xff]  }
0x153f   :  { %9162 = vmatprep.subr.bf16.mxu0 %v10702_v36  ;;  %v10738_v36 = vld [vmem:[%s14070_s23 + $0x250] sm:$0xff]  }
0x1540   :  { %v6726_v63 = vpop.f32.mrb[68].mxu1  ;;  %v13852_v39 = vpop.f32.mrb[76].mxu0 }
0x1541   :  { %v6734_v42 = vpack.c.bf16 %v6726_v63, %v6726_v63  ;;  %v9440_v46 = vpop.f32.mrb[69].mxu1  ;;  %v6865_v54 = vpop.f32.mrb[77].mxu0  ;;  %v6910_v43 = vpack.c.bf16 %v13852_v39, %v13852_v39  ;;  %v10740_v63 = vld [vmem:[%s14070_s23 + $0x2c8] sm:$0xff]   ;;  %v10742_v39 = vld [vmem:[%s14070_s23 + $0x258] sm:$0xff]  }
0x1542   :  { %9163 = vmatpush3.bf16.msra.mxu0 %v10703_v30  ;;  %v6729_v31 = vpop.f32.mrb[70].mxu1  ;;  %v6911_v41 = vpack.c.bf16 %v6865_v54, %v6865_v54  ;;  %v6867_v55 = vpop.f32.mrb[78].mxu0  ;;  %v10737_v30 = vld [vmem:[%s14070_s23 + $0x280] sm:$0xff]   ;;  %v10744_v46 = vld [vmem:[%s14070_s23 + $0x2d0] sm:$0xff]  }
0x1543   :  { %v9441_v25 = vpop.f32.mrb[71].mxu1  ;;  %7850 = vmatmul.mubr.bf16.vlgmr.msra.gmra.mrb[84].mxu1 %v6734_v42  ;;  %9164 = vmatprep.subr.bf16.mxu0 %v10706_v62  ;;  %v6868_v13 = vpop.f32.mrb[79].mxu0  ;;  %v10741_v42 = vld [vmem:[%s14070_s23 + $0x288] sm:$0xff]   ;;  %v10746_v54 = vld [vmem:[%s14070_s23 + $0x260] sm:$0xff]   ;;  %v10745_v31 = vld [vmem:[%s14070_s23 + $0x290] sm:$0xff]  }
0x1544   :  { %9183 = vmatpush3.bf16.msra.mxu1 %v10705_v40  ;;  %7929 = vmatprep.mubr.bf16.mxu1 %v6911_v41  ;;  %v10739_v40 = vld [vmem:[%s14070_s23 + $0x210] sm:$0xff]   ;;  %v10747_v41 = vld [vmem:[%s14070_s23 + $0x220] sm:$0xff]   ;;  %v10750_v55 = vld [vmem:[%s14070_s23 + $0x268] sm:$0xff]  }
0x1545   :  { %9184 = vmatprep.subr.bf16.mxu1 %v10708_v47  ;;  %v10743_v47 = vld [vmem:[%s14070_s23 + $0x218] sm:$0xff]   ;;  %v10751_v13 = vld [vmem:[%s14070_s23 + $0x228] sm:$0xff]  }
0x1546   :  { %9165 = vmatpush3.bf16.msra.mxu0 %v10707_v11  ;;  %v10748_v11 = vld [vmem:[%s14070_s23 + $0x2d8] sm:$0xff]  }
0x1547   :  { %9166 = vmatprep.subr.bf16.mxu0 %v10710_v9  ;;  %v10749_v25 = vld [vmem:[%s14070_s23 + $0x298] sm:$0xff]   ;;  %v10752_v9 = vld [vmem:[%s14070_s23 + $0x2e0] sm:$0xff]  }
0x1548   :  { %9185 = vmatpush3.bf16.msra.mxu1 %v10709_v27  ;;  %v6815_v48 = vpop.f32.mrb[72].mxu1  ;;  %v13878_v23 = vpop.f32.mrb[80].mxu0  ;;  %v10754_v27 = vld [vmem:[%s14070_s23 + $0x270] sm:$0xff]  }
0x1549   :  { %9186 = vmatprep.subr.bf16.mxu1 %v10712_v35  ;;  %v6823_v8 = vpack.c.bf16 %v6815_v48, %v6815_v48  ;;  %v9446_v22 = vpop.f32.mrb[73].mxu1  ;;  %v13883_v18 = vpop.f32.mrb[81].mxu0  ;;  %v6999_v4 = vpack.c.bf16 %v13878_v23, %v13878_v23  ;;  %v10753_v35 = vld [vmem:[%s14070_s23 + $0x2a0] sm:$0xff]   ;;  %v10757_v48 = vld [vmem:[%s14070_s23 + $0x2a8] sm:$0xff]   ;;  %v10760_v23 = vld [vmem:[%s14070_s23 + $0x2f0] sm:$0xff]  }
0x154a   :  { %9167 = vmatpush3.bf16.msra.mxu0 %v10711_v2  ;;  %v6818_v14 = vpop.f32.mrb[74].mxu1  ;;  %v6956_v21 = vpop.f32.mrb[82].mxu0  ;;  %v10756_v2 = vld [vmem:[%s14070_s23 + $0x2e8] sm:$0xff]   ;;  %v10762_v22 = vld [vmem:[%s14070_s23 + $0x2f8] sm:$0xff]  }
0x154b   :  { %9168 = vmatprep.subr.bf16.mxu0 %v10714_v44  ;;  %7889 = vmatprep.mubr.bf16.mxu0 %v6823_v8  ;;  %v9447_v52 = vpop.f32.mrb[75].mxu1  ;;  %v6957_v59 = vpop.f32.mrb[83].mxu0  ;;  %v10755_v44 = vld [vmem:[%s14070_s23 + $0x230] sm:$0xff]   ;;  %v10763_v14 = vld [vmem:[%s14070_s23 + $0x2b8] sm:$0xff]   ;;  %v7000_v21 = vpack.c.bf16 %v13883_v18, %v13883_v18 }
0x154c   :  { %9187 = vmatpush3.bf16.msra.mxu1 %v10713_v49  ;;  %v10758_v49 = vld [vmem:[%s14070_s23 + $0x278] sm:$0xff]   ;;  %v10761_v8 = vld [vmem:[%s14070_s23 + $0x2b0] sm:$0xff]  }
0x154d   :  { %9188 = vmatprep.subr.bf16.mxu1 %v10716_v61  ;;  %v10759_v61 = vld [vmem:[%s14070_s23 + $0x238] sm:$0xff]  }
0x154e   :  { %9169 = vmatpush3.bf16.msra.mxu0 %v10715_v45 }
0x154f   :  { %9170 = vmatprep.subr.bf16.mxu0 %v10718_v0 }
0x1550   :  { %9189 = vmatpush3.bf16.msra.mxu1 %v10717_v34  ;;  %v13906_v53 = vpop.f32.mrb[76].mxu1 }
0x1551   :  { %9190 = vmatprep.subr.bf16.mxu1 %v10720_v56  ;;  %v9452_v3 = vpop.f32.mrb[77].mxu1  ;;  %v6912_v45 = vpack.c.bf16 %v13906_v53, %v13906_v53 }
0x1552   :  { %9171 = vmatpush3.bf16.msra.mxu0 %v10719_v10  ;;  %v6907_v7 = vpop.f32.mrb[78].mxu1  ;;  %v8621_v10 = vld [vmem:[%s14072_s24] ss:$0 sm:$0xff] }
0x1553   :  { %9172 = vmatprep.subr.bf16.mxu0 %v10722_v20  ;;  %v9453_v58 = vpop.f32.mrb[79].mxu1 }
0x1554   :  { %9191 = vmatpush3.bf16.msra.mxu1 %v10721_v33 }
0x1555   :  { %9192 = vmatprep.subr.bf16.mxu1 %v10724_v1 }
0x1556   :  { %9173 = vmatpush3.bf16.msra.mxu0 %v10723_v29 }
0x1557   :  { %9174 = vmatprep.subr.bf16.mxu0 %v10726_v51 }
0x1558   :  { %9193 = vmatpush3.bf16.msra.mxu1 %v10725_v15  ;;  %v6993_v19 = vpop.f32.mrb[80].mxu1 }
0x1559   :  { %9194 = vmatprep.subr.bf16.mxu1 %v10728_v6  ;;  %v9458_v28 = vpop.f32.mrb[81].mxu1  ;;  %v7001_v62 = vpack.c.bf16 %v6993_v19, %v6993_v19 }
0x155a   :  { %9175 = vmatpush3.bf16.msra.mxu0 %v10727_v17  ;;  %v6996_v16 = vpop.f32.mrb[82].mxu1 }
0x155b   :  { %9204 = vmatprep.subr.bf16.mxu0 %v10730_v50  ;;  %v9459_v37 = vpop.f32.mrb[83].mxu1 }
0x155c   :  { %9195 = vmatpush3.bf16.msra.mxu1 %v10729_v12 }
0x155d   :  { %7890 = vmatmul.mubr.bf16.vlgmr.msra.gmra.mrb[88].mxu0 %v6822_v24  ;;  %9196 = vmatprep.subr.bf16.mxu1 %v10732_v5 }
0x155e   :  { %9205 = vmatpush3.bf16.msra.mxu0 %v10731_v57  ;;  %7969 = vmatprep.mubr.bf16.mxu0 %v6999_v4 }
0x155f   :  { %9206 = vmatprep.subr.bf16.mxu0 %v10734_v26 }
0x1560   :  { %9197 = vmatpush3.bf16.msra.mxu1 %v10733_v32 }
0x1561   :  { %9226 = vmatprep.subr.bf16.mxu1 %v10736_v38 }
0x1562   :  { %9207 = vmatpush3.bf16.msra.mxu0 %v10735_v60 }
0x1563   :  { %7930 = vmatmul.mubr.bf16.vlgmr.msra.gmra.mrb[88].mxu1 %v6910_v43  ;;  %9208 = vmatprep.subr.bf16.mxu0 %v10738_v36 }
0x1564   :  { %9227 = vmatpush3.bf16.msra.mxu1 %v10737_v30  ;;  %8009 = vmatprep.mubr.bf16.mxu1 %v7001_v62 }
0x1565   :  { %9228 = vmatprep.subr.bf16.mxu1 %v10740_v63 }
0x1566   :  { %9209 = vmatpush3.bf16.msra.mxu0 %v10739_v40 }
0x1567   :  { %9210 = vmatprep.subr.bf16.mxu0 %v10742_v39 }
0x1568   :  { %9229 = vmatpush3.bf16.msra.mxu1 %v10741_v42 }
0x1569   :  { %9230 = vmatprep.subr.bf16.mxu1 %v10744_v46 }
0x156a   :  { %9211 = vmatpush3.bf16.msra.mxu0 %v10743_v47 }
0x156b   :  { %9212 = vmatprep.subr.bf16.mxu0 %v10746_v54 }
0x156c   :  { %9231 = vmatpush3.bf16.msra.mxu1 %v10745_v31 }
0x156d   :  { %9232 = vmatprep.subr.bf16.mxu1 %v10748_v11 }
0x156e   :  { %9213 = vmatpush3.bf16.msra.mxu0 %v10747_v41 }
0x156f   :  { %9214 = vmatprep.subr.bf16.mxu0 %v10750_v55 }
0x1570   :  { %9233 = vmatpush3.bf16.msra.mxu1 %v10749_v25 }
0x1571   :  { %9234 = vmatprep.subr.bf16.mxu1 %v10752_v9 }
0x1572   :  { %9215 = vmatpush3.bf16.msra.mxu0 %v10751_v13 }
0x1573   :  { %9216 = vmatprep.subr.bf16.mxu0 %v10754_v27 }
0x1574   :  { %9235 = vmatpush3.bf16.msra.mxu1 %v10753_v35 }
0x1575   :  { %9236 = vmatprep.subr.bf16.mxu1 %v10756_v2 }
0x1576   :  { %9217 = vmatpush3.bf16.msra.mxu0 %v10755_v44 }
0x1577   :  { %9218 = vmatprep.subr.bf16.mxu0 %v10758_v49 }
0x1578   :  { %9237 = vmatpush3.bf16.msra.mxu1 %v10757_v48 }
0x1579   :  { %9238 = vmatprep.subr.bf16.mxu1 %v10760_v23 }
0x157a   :  { %9219 = vmatpush3.bf16.msra.mxu0 %v10759_v61 }
0x157c   :  { %9239 = vmatpush3.bf16.msra.mxu1 %v10761_v8 }
0x157d   :  { %7970 = vmatmul.mubr.bf16.vlgmr.msra.gmra.mrb[92].mxu0 %v6912_v45  ;;  %9240 = vmatprep.subr.bf16.mxu1 %v10762_v22 }
0x1580   :  { %9241 = vmatpush3.bf16.msra.mxu1 %v10763_v14 }
0x1583   :  { %8010 = vmatmul.mubr.bf16.vlgmr.msra.gmra.mrb[92].mxu1 %v7000_v21 }
0x1610   :  { %v9132_v0 = vpop.f32.mrb[84].mxu0 }
0x1611   :  { %v9133_v52 = vpop.f32.mrb[85].mxu0 }
0x1612   :  { %v9134_v59 = vadd.f32 %v9133_v52, %v9132_v0  ;;  %v9135_v34 = vpop.f32.mrb[86].mxu0 }
0x1613   :  { %v9136_v56 = vpop.f32.mrb[87].mxu0 }
0x1614   :  { %v7812_v53 = vadd.f32 %v9134_v59, %v8621_v10 }
0x1616   :  { %v9154_v20 = vpop.f32.mrb[84].mxu1 }
0x1617   :  { %v9155_v33 = vpop.f32.mrb[85].mxu1 }
0x1618   :  { %v9156_v1 = vadd.f32 %v9155_v33, %v9154_v20  ;;  %v9157_v3 = vpop.f32.mrb[86].mxu1 }
0x1619   :  { %v9158_v29 = vpop.f32.mrb[87].mxu1 }
0x161a   :  { %v7852_v7 = vadd.f32 %v9156_v1, %v7812_v53 }
0x1630   :  { %v9176_v51 = vpop.f32.mrb[88].mxu0 }
0x1631   :  { %v9177_v58 = vpop.f32.mrb[89].mxu0 }
0x1632   :  { %v9178_v18 = vadd.f32 %v9177_v58, %v9176_v51  ;;  %v9179_v15 = vpop.f32.mrb[90].mxu0 }
0x1633   :  { %v9180_v6 = vpop.f32.mrb[91].mxu0 }
0x1634   :  { %v7892_v17 = vadd.f32 %v9178_v18, %v7852_v7 }
0x1636   :  { %v9198_v50 = vpop.f32.mrb[88].mxu1 }
0x1637   :  { %v9199_v12 = vpop.f32.mrb[89].mxu1 }
0x1638   :  { %v9200_v19 = vadd.f32 %v9199_v12, %v9198_v50  ;;  %v9201_v5 = vpop.f32.mrb[90].mxu1 }
0x1639   :  { %v9202_v28 = vpop.f32.mrb[91].mxu1 }
0x163a   :  { %v7932_v57 = vadd.f32 %v9200_v19, %v7892_v17 }
0x1650   :  { %v9220_v4 = vpop.f32.mrb[92].mxu0 }
0x1651   :  { %v9221_v16 = vpop.f32.mrb[93].mxu0 }
0x1652   :  { %v9222_v24 = vadd.f32 %v9221_v16, %v9220_v4  ;;  %v9223_v26 = vpop.f32.mrb[94].mxu0 }
0x1653   :  { %v9224_v37 = vpop.f32.mrb[95].mxu0 }
0x1654   :  { %v7972_v32 = vadd.f32 %v9222_v24, %v7932_v57 }
0x1656   :  { %v9242_v38 = vpop.f32.mrb[92].mxu1 }
0x1657   :  { %v9243_v60 = vpop.f32.mrb[93].mxu1 }
0x1658   :  { %v9244_v43 = vadd.f32 %v9243_v60, %v9242_v38  ;;  %v9245_v36 = vpop.f32.mrb[94].mxu1 }
0x1659   :  { %v9246_v30 = vpop.f32.mrb[95].mxu1 }
0x165a   :  { %v8012_v62 = vadd.f32 %v9244_v43, %v7972_v32 }
0x165c   :  { %v8017_v63 = vsel %vm4063_vm2, %v8012_v62, 0.0 }
0x165d   :  { %8018 = vst [vmem:[%s14073_s25] sm:$0xff] %v8017_v63 }

</bundles_post_ra>
